<compile_context>
chip_gen: v5e
topology: v5e:2x2
jax: 0.10.0
libtpu: 0.0.40
codegen_flags: <defaults>
</compile_context>

<pallas_src>
import functools

import jax
import jax.numpy as jnp
from jax.experimental import pallas as pl
from jax.experimental.pallas import tpu as pltpu

_LANE = 128
_SUBLANE = 8


def _cell_kernel(a_ref, w_ref, b_ref, out_ref, apad_ref, col_ref,
                 *, Bb, H, W, Ctot, Chid, K, pad, w_lo):
    # a_ref   : (Bb, H, W, Ctot)                 [x ; h] NHWC activation, f32
    # w_ref   : (K*LANE, Chid)                   per-kh packed im2col weights, f32
    # b_ref   : (Chid, 1)                        b_xh + b_hh, f32
    # out_ref : (Bb, Chid, H*W)                  NCHW-flattened output, f32
    # apad_ref: (Bb, H+2*pad, w_lo+W+pad, Ctot)  zero-padded activation scratch
    # col_ref : (Bb*H*W, K*LANE)                 im2col slab scratch
    HW = H * W

    # One-time scratch init: scratch persists across grid steps, the data region
    # is fully overwritten every step, so only the halo ring and the packing pad
    # lanes [K*Ctot:128) of each kh block need zeroing once.  Required so stale
    # VMEM NaN/Inf cannot leak through the zero weight rows (0 * NaN = NaN).
    @pl.when(pl.program_id(0) == 0)
    def _init():
        apad_ref[...] = jnp.zeros_like(apad_ref)
        col_ref[...] = jnp.zeros_like(col_ref)

    # "same" zero padding entirely in VMEM: interior lands at (row pad, col w_lo)
    # with w_lo sublane-aligned; channel width equals the source width (Ctot) so
    # there is no channel-pad store traffic.
    apad_ref[:, pad:pad + H, w_lo:w_lo + W, :] = a_ref[...]

    # im2col slab: the K taps of one kh row are packed into a single 128-lane
    # block (lane offsets kw*Ctot), so contraction depth is K*128, not K*K*128.
    for b in range(Bb):
        r0 = b * HW
        for kh in range(K):
            for kw in range(K):
                c0 = w_lo - pad + kw
                dst = kh * _LANE + kw * Ctot
                col_ref[r0:r0 + HW, dst:dst + Ctot] = (
                    apad_ref[b, kh:kh + H, c0:c0 + W, :].reshape(HW, Ctot))

    # Single MXU matmul over all Bb*H*W rows: (Bb*HW, K*128) @ (K*128, Chid).
    acc = jnp.dot(col_ref[...], w_ref[...], preferred_element_type=jnp.float32)

    # Bias + ReLU epilogue, transposed to (Chid, HW): lane-dense stores and the
    # output is already NCHW-flat (no wrapper transpose needed).
    for b in range(Bb):
        blk = acc[b * HW:(b + 1) * HW, :]                   # (HW, Chid)
        out_ref[b] = jnp.maximum(blk.T + b_ref[...], 0.0)   # (Chid, HW)


def pack_conv2d_rnn_params(w_xh, b_xh, w_hh, b_hh):
    """One-time weight/bias packing (hoist out of a per-timestep RNN loop)."""
    Chid, Cin, K, _ = w_xh.shape
    Ctot = Cin + Chid
    assert K * Ctot <= _LANE, "per-kh tap packing needs K*(Cin+hidden) <= 128"
    # TODO(synk): for larger channel counts fall back to per-tap lane padding.
    # PyTorch (out,in,kh,kw) -> (kh,kw,in,out); concat x/h along 'in'.
    w_cat = jnp.concatenate(
        [jnp.transpose(w_xh, (2, 3, 1, 0)),            # (K, K, Cin,  Chid)
         jnp.transpose(w_hh, (2, 3, 1, 0))], axis=2)   # (K, K, Chid, Chid)
    # Pack the K kw taps of each kh row contiguously, pad the block to 128 lanes.
    w_rows = w_cat.reshape(K, K * Ctot, Chid)
    w_rows = jnp.pad(w_rows, ((0, 0), (0, _LANE - K * Ctot), (0, 0)))
    w_flat = w_rows.reshape(K * _LANE, Chid).astype(jnp.float32)
    bias = (b_xh + b_hh).astype(jnp.float32).reshape(Chid, 1)
    return w_flat, bias


def conv2d_rnn_cell_forward(x_nchw, h_nchw, w_xh, b_xh, w_hh, b_hh, *, kernel_size=3):
    """One step of Conv2dRNNCell. Inputs/outputs are NCHW f32, like PyTorch."""
    K = kernel_size
    assert K % 2 == 1, "even kernel_size needs asymmetric padding (not PyTorch-same)"
    pad = K // 2
    B, Cin, H, W = x_nchw.shape
    Chid = w_xh.shape[0]
    assert h_nchw.shape == (B, Chid, H, W)
    Ctot = Cin + Chid
    w_lo = ((pad + _SUBLANE - 1) // _SUBLANE) * _SUBLANE  # sublane-aligned left halo

    # TODO(synk): when this cell is scanned over a sequence, hoist
    # pack_conv2d_rnn_params out of the per-timestep call (weights are invariant).
    w_flat, bias = pack_conv2d_rnn_params(w_xh, b_xh, w_hh, b_hh)

    # TODO(synk): for an RNN scan, carry h in NHWC f32 between steps and keep x
    # pre-transposed for the whole sequence so this concat/transpose/reshape is
    # not a per-timestep HBM round trip.
    a = jnp.concatenate([x_nchw, h_nchw], axis=1)                # (B, Ctot, H, W)
    a_nhwc = jnp.transpose(a, (0, 2, 3, 1)).astype(jnp.float32)  # (B, H, W, Ctot)

    # Batch blocking: Bb batch elements per grid step (matmul M = Bb*H*W), Bb a
    # divisor of B chosen so the im2col slab stays within a conservative budget.
    col_bytes_per_b = H * W * K * _LANE * 4
    budget = 4 * 1024 * 1024
    Bb = 1
    for cand in range(1, B + 1):
        if B % cand == 0 and cand * col_bytes_per_b <= budget:
            Bb = cand
    grid = (B // Bb,)

    kernel = functools.partial(_cell_kernel, Bb=Bb, H=H, W=W, Ctot=Ctot,
                               Chid=Chid, K=K, pad=pad, w_lo=w_lo)

    out_flat = pl.pallas_call(
        kernel,
        out_shape=jax.ShapeDtypeStruct((B, Chid, H * W), jnp.float32),
        grid_spec=pltpu.PrefetchScalarGridSpec(
            num_scalar_prefetch=0,
            grid=grid,
            # TODO(synk): add a second 'parallel' H-row-tile grid axis (with halo
            # rows + per-step halo zeroing) for v7x megacore at larger H, W, B.
            in_specs=[
                pl.BlockSpec((Bb, H, W, Ctot), lambda i: (i, 0, 0, 0)),
                pl.BlockSpec((K * _LANE, Chid), lambda i: (0, 0)),
                pl.BlockSpec((Chid, 1), lambda i: (0, 0)),
            ],
            out_specs=pl.BlockSpec((Bb, Chid, H * W), lambda i: (i, 0, 0)),
            scratch_shapes=[
                pltpu.VMEM((Bb, H + 2 * pad, w_lo + W + pad, Ctot), jnp.float32),
                pltpu.VMEM((Bb * H * W, K * _LANE), jnp.float32),
            ],
        ),
        # 'arbitrary': the grid is tiny/sequential, which keeps the one-time
        # scratch zeroing at program_id==0 valid on a single scratch instance.
        compiler_params=pltpu.CompilerParams(
            dimension_semantics=("arbitrary",),
            vmem_limit_bytes=32 * 1024 * 1024),
    )(a_nhwc, w_flat, bias)

    # Contiguous reshape only (no transpose): kernel output is already NCHW-flat.
    return out_flat.reshape(B, Chid, H, W)


def _reference_forward(x, h, w_xh, b_xh, w_hh, b_hh):
    """Pure-JAX reference (lax conv, NCHW) for verification."""
    dn = jax.lax.conv_dimension_numbers(x.shape, w_xh.shape, ("NCHW", "OIHW", "NCHW"))
    cxh = jax.lax.conv_general_dilated(x, w_xh, (1, 1), "SAME", dimension_numbers=dn,
                                       precision=jax.lax.Precision.HIGHEST)
    chh = jax.lax.conv_general_dilated(h, w_hh, (1, 1), "SAME", dimension_numbers=dn,
                                       precision=jax.lax.Precision.HIGHEST)
    c = cxh + b_xh[None, :, None, None] + chh + b_hh[None, :, None, None]
    return jnp.maximum(c, 0.0)


if __name__ == "__main__":
    # Shapes consistent with Conv2dRNNCell(input_size=4, hidden_size=32)
    B, Cin, H, W = 2, 4, 16, 16
    Chid, K = 32, 3

    key = jax.random.PRNGKey(0)
    kx, kh, kw1, kb1, kw2, kb2 = jax.random.split(key, 6)

    x = jax.random.normal(kx, (B, Cin, H, W), dtype=jnp.float32)
    # hidden state as produced by reset_h (random normal)
    h = jax.random.normal(kh, (B, Chid, H, W), dtype=jnp.float32)

    w_xh = 0.1 * jax.random.normal(kw1, (Chid, Cin, K, K), dtype=jnp.float32)
    b_xh = 0.1 * jax.random.normal(kb1, (Chid,), dtype=jnp.float32)
    w_hh = 0.1 * jax.random.normal(kw2, (Chid, Chid, K, K), dtype=jnp.float32)
    b_hh = 0.1 * jax.random.normal(kb2, (Chid,), dtype=jnp.float32)

    out = jax.block_until_ready(
        conv2d_rnn_cell_forward(x, h, w_xh, b_xh, w_hh, b_hh, kernel_size=K))

    ref = jax.block_until_ready(_reference_forward(x, h, w_xh, b_xh, w_hh, b_hh))

    assert out.shape == (B, Chid, H, W)
    err = float(jnp.max(jnp.abs(out - ref)))
    assert jnp.allclose(out, ref, atol=2e-3, rtol=2e-3), \
        f"mismatch vs reference conv, max err {err}"

    print("KERNEL_OK")
</pallas_src>

<mosaic_0001>
module attributes {stable_mosaic.version = 11 : i64} {
  func.func @_cell_kernel(%arg0: i32, %arg1: memref<2x16x16x36xf32, #tpu.memory_space<vmem>>, %arg2: memref<384x32xf32, #tpu.memory_space<vmem>>, %arg3: memref<32x1xf32, #tpu.memory_space<vmem>>, %arg4: memref<2x32x256xf32, #tpu.memory_space<vmem>>, %arg5: memref<2x18x25x36xf32, #tpu.memory_space<vmem>>, %arg6: memref<512x384xf32, #tpu.memory_space<vmem>>) attributes {dimension_semantics = [#tpu.dimension_semantics<arbitrary>], iteration_bounds = array<i64: 1>, scalar_prefetch = 0 : i64, scratch_operands = 2 : i64, tpu.core_type = #tpu.core_type<tc>, window_params = [{transform_indices = @transform_0, window_bounds = array<i64: 2, 16, 16, 36>}, {pipeline_mode = #tpu.pipeline_mode<synchronous>, transform_indices = @transform_1, window_bounds = array<i64: 384, 32>}, {pipeline_mode = #tpu.pipeline_mode<synchronous>, transform_indices = @transform_2, window_bounds = array<i64: 32, 1>}, {transform_indices = @transform_3, window_bounds = array<i64: 2, 32, 256>}]} {
    %c0_i32 = arith.constant 0 : i32
    %0 = arith.cmpi eq, %arg0, %c0_i32 : i32
    %1 = arith.extui %0 : i1 to i32
    %c0_i32_0 = arith.constant 0 : i32
    %2 = arith.cmpi ne, %1, %c0_i32_0 : i32
    scf.if %2 {
      %cst_119 = arith.constant 0.000000e+00 : f32
      %100 = vector.broadcast %cst_119 : f32 to vector<2x18x25x36xf32>
      %c0_120 = arith.constant 0 : index
      %c0_121 = arith.constant 0 : index
      %c0_122 = arith.constant 0 : index
      %c0_123 = arith.constant 0 : index
      %101 = vector.load %arg5[%c0_120, %c0_121, %c0_122, %c0_123] : memref<2x18x25x36xf32, #tpu.memory_space<vmem>>, vector<2x18x25x36xf32>
      tpu.vector_store %arg5[%c0_120, %c0_121, %c0_122, %c0_123], %100 {strides = array<i32>} : memref<2x18x25x36xf32, #tpu.memory_space<vmem>>, vector<2x18x25x36xf32>,
      %cst_124 = arith.constant 0.000000e+00 : f32
      %102 = vector.broadcast %cst_124 : f32 to vector<512x384xf32>
      %c0_125 = arith.constant 0 : index
      %c0_126 = arith.constant 0 : index
      %103 = vector.load %arg6[%c0_125, %c0_126] : memref<512x384xf32, #tpu.memory_space<vmem>>, vector<512x384xf32>
      tpu.vector_store %arg6[%c0_125, %c0_126], %102 {strides = array<i32>} : memref<512x384xf32, #tpu.memory_space<vmem>>, vector<512x384xf32>,
    } else {
    }
    %c0 = arith.constant 0 : index
    %c0_1 = arith.constant 0 : index
    %c0_2 = arith.constant 0 : index
    %c0_3 = arith.constant 0 : index
    %3 = vector.load %arg1[%c0, %c0_1, %c0_2, %c0_3] : memref<2x16x16x36xf32, #tpu.memory_space<vmem>>, vector<2x16x16x36xf32>
    %c0_4 = arith.constant 0 : index
    %c1 = arith.constant 1 : index
    %c8 = arith.constant 8 : index
    %c0_5 = arith.constant 0 : index
    %4 = vector.load %arg5[%c0_4, %c1, %c8, %c0_5] : memref<2x18x25x36xf32, #tpu.memory_space<vmem>>, vector<2x16x16x36xf32>
    tpu.vector_store %arg5[%c0_4, %c1, %c8, %c0_5], %3 {strides = array<i32>} : memref<2x18x25x36xf32, #tpu.memory_space<vmem>>, vector<2x16x16x36xf32>,
    %c0_6 = arith.constant 0 : index
    %c0_7 = arith.constant 0 : index
    %c7 = arith.constant 7 : index
    %c0_8 = arith.constant 0 : index
    %5 = vector.load %arg5[%c0_6, %c0_7, %c7, %c0_8] : memref<2x18x25x36xf32, #tpu.memory_space<vmem>>, vector<1x16x16x36xf32>
    %6 = vector.shape_cast %5 : vector<1x16x16x36xf32> to vector<16x16x36xf32>
    %7 = vector.shape_cast %6 : vector<16x16x36xf32> to vector<256x36xf32>
    %c0_9 = arith.constant 0 : index
    %c0_10 = arith.constant 0 : index
    %8 = vector.load %arg6[%c0_9, %c0_10] : memref<512x384xf32, #tpu.memory_space<vmem>>, vector<256x36xf32>
    tpu.vector_store %arg6[%c0_9, %c0_10], %7 {strides = array<i32>} : memref<512x384xf32, #tpu.memory_space<vmem>>, vector<256x36xf32>,
    %c0_11 = arith.constant 0 : index
    %c0_12 = arith.constant 0 : index
    %c8_13 = arith.constant 8 : index
    %c0_14 = arith.constant 0 : index
    %9 = vector.load %arg5[%c0_11, %c0_12, %c8_13, %c0_14] : memref<2x18x25x36xf32, #tpu.memory_space<vmem>>, vector<1x16x16x36xf32>
    %10 = vector.shape_cast %9 : vector<1x16x16x36xf32> to vector<16x16x36xf32>
    %11 = vector.shape_cast %10 : vector<16x16x36xf32> to vector<256x36xf32>
    %c0_15 = arith.constant 0 : index
    %c36 = arith.constant 36 : index
    %12 = vector.load %arg6[%c0_15, %c36] : memref<512x384xf32, #tpu.memory_space<vmem>>, vector<256x36xf32>
    tpu.vector_store %arg6[%c0_15, %c36], %11 {strides = array<i32>} : memref<512x384xf32, #tpu.memory_space<vmem>>, vector<256x36xf32>,
    %c0_16 = arith.constant 0 : index
    %c0_17 = arith.constant 0 : index
    %c9 = arith.constant 9 : index
    %c0_18 = arith.constant 0 : index
    %13 = vector.load %arg5[%c0_16, %c0_17, %c9, %c0_18] : memref<2x18x25x36xf32, #tpu.memory_space<vmem>>, vector<1x16x16x36xf32>
    %14 = vector.shape_cast %13 : vector<1x16x16x36xf32> to vector<16x16x36xf32>
    %15 = vector.shape_cast %14 : vector<16x16x36xf32> to vector<256x36xf32>
    %c0_19 = arith.constant 0 : index
    %c72 = arith.constant 72 : index
    %16 = vector.load %arg6[%c0_19, %c72] : memref<512x384xf32, #tpu.memory_space<vmem>>, vector<256x36xf32>
    tpu.vector_store %arg6[%c0_19, %c72], %15 {strides = array<i32>} : memref<512x384xf32, #tpu.memory_space<vmem>>, vector<256x36xf32>,
    %c0_20 = arith.constant 0 : index
    %c1_21 = arith.constant 1 : index
    %c7_22 = arith.constant 7 : index
    %c0_23 = arith.constant 0 : index
    %17 = vector.load %arg5[%c0_20, %c1_21, %c7_22, %c0_23] : memref<2x18x25x36xf32, #tpu.memory_space<vmem>>, vector<1x16x16x36xf32>
    %18 = vector.shape_cast %17 : vector<1x16x16x36xf32> to vector<16x16x36xf32>
    %19 = vector.shape_cast %18 : vector<16x16x36xf32> to vector<256x36xf32>
    %c0_24 = arith.constant 0 : index
    %c128 = arith.constant 128 : index
    %20 = vector.load %arg6[%c0_24, %c128] : memref<512x384xf32, #tpu.memory_space<vmem>>, vector<256x36xf32>
    tpu.vector_store %arg6[%c0_24, %c128], %19 {strides = array<i32>} : memref<512x384xf32, #tpu.memory_space<vmem>>, vector<256x36xf32>,
    %c0_25 = arith.constant 0 : index
    %c1_26 = arith.constant 1 : index
    %c8_27 = arith.constant 8 : index
    %c0_28 = arith.constant 0 : index
    %21 = vector.load %arg5[%c0_25, %c1_26, %c8_27, %c0_28] : memref<2x18x25x36xf32, #tpu.memory_space<vmem>>, vector<1x16x16x36xf32>
    %22 = vector.shape_cast %21 : vector<1x16x16x36xf32> to vector<16x16x36xf32>
    %23 = vector.shape_cast %22 : vector<16x16x36xf32> to vector<256x36xf32>
    %c0_29 = arith.constant 0 : index
    %c164 = arith.constant 164 : index
    %24 = vector.load %arg6[%c0_29, %c164] : memref<512x384xf32, #tpu.memory_space<vmem>>, vector<256x36xf32>
    tpu.vector_store %arg6[%c0_29, %c164], %23 {strides = array<i32>} : memref<512x384xf32, #tpu.memory_space<vmem>>, vector<256x36xf32>,
    %c0_30 = arith.constant 0 : index
    %c1_31 = arith.constant 1 : index
    %c9_32 = arith.constant 9 : index
    %c0_33 = arith.constant 0 : index
    %25 = vector.load %arg5[%c0_30, %c1_31, %c9_32, %c0_33] : memref<2x18x25x36xf32, #tpu.memory_space<vmem>>, vector<1x16x16x36xf32>
    %26 = vector.shape_cast %25 : vector<1x16x16x36xf32> to vector<16x16x36xf32>
    %27 = vector.shape_cast %26 : vector<16x16x36xf32> to vector<256x36xf32>
    %c0_34 = arith.constant 0 : index
    %c200 = arith.constant 200 : index
    %28 = vector.load %arg6[%c0_34, %c200] : memref<512x384xf32, #tpu.memory_space<vmem>>, vector<256x36xf32>
    tpu.vector_store %arg6[%c0_34, %c200], %27 {strides = array<i32>} : memref<512x384xf32, #tpu.memory_space<vmem>>, vector<256x36xf32>,
    %c0_35 = arith.constant 0 : index
    %c2 = arith.constant 2 : index
    %c7_36 = arith.constant 7 : index
    %c0_37 = arith.constant 0 : index
    %29 = vector.load %arg5[%c0_35, %c2, %c7_36, %c0_37] : memref<2x18x25x36xf32, #tpu.memory_space<vmem>>, vector<1x16x16x36xf32>
    %30 = vector.shape_cast %29 : vector<1x16x16x36xf32> to vector<16x16x36xf32>
    %31 = vector.shape_cast %30 : vector<16x16x36xf32> to vector<256x36xf32>
    %c0_38 = arith.constant 0 : index
    %c256 = arith.constant 256 : index
    %32 = vector.load %arg6[%c0_38, %c256] : memref<512x384xf32, #tpu.memory_space<vmem>>, vector<256x36xf32>
    tpu.vector_store %arg6[%c0_38, %c256], %31 {strides = array<i32>} : memref<512x384xf32, #tpu.memory_space<vmem>>, vector<256x36xf32>,
    %c0_39 = arith.constant 0 : index
    %c2_40 = arith.constant 2 : index
    %c8_41 = arith.constant 8 : index
    %c0_42 = arith.constant 0 : index
    %33 = vector.load %arg5[%c0_39, %c2_40, %c8_41, %c0_42] : memref<2x18x25x36xf32, #tpu.memory_space<vmem>>, vector<1x16x16x36xf32>
    %34 = vector.shape_cast %33 : vector<1x16x16x36xf32> to vector<16x16x36xf32>
    %35 = vector.shape_cast %34 : vector<16x16x36xf32> to vector<256x36xf32>
    %c0_43 = arith.constant 0 : index
    %c292 = arith.constant 292 : index
    %36 = vector.load %arg6[%c0_43, %c292] : memref<512x384xf32, #tpu.memory_space<vmem>>, vector<256x36xf32>
    tpu.vector_store %arg6[%c0_43, %c292], %35 {strides = array<i32>} : memref<512x384xf32, #tpu.memory_space<vmem>>, vector<256x36xf32>,
    %c0_44 = arith.constant 0 : index
    %c2_45 = arith.constant 2 : index
    %c9_46 = arith.constant 9 : index
    %c0_47 = arith.constant 0 : index
    %37 = vector.load %arg5[%c0_44, %c2_45, %c9_46, %c0_47] : memref<2x18x25x36xf32, #tpu.memory_space<vmem>>, vector<1x16x16x36xf32>
    %38 = vector.shape_cast %37 : vector<1x16x16x36xf32> to vector<16x16x36xf32>
    %39 = vector.shape_cast %38 : vector<16x16x36xf32> to vector<256x36xf32>
    %c0_48 = arith.constant 0 : index
    %c328 = arith.constant 328 : index
    %40 = vector.load %arg6[%c0_48, %c328] : memref<512x384xf32, #tpu.memory_space<vmem>>, vector<256x36xf32>
    tpu.vector_store %arg6[%c0_48, %c328], %39 {strides = array<i32>} : memref<512x384xf32, #tpu.memory_space<vmem>>, vector<256x36xf32>,
    %c1_49 = arith.constant 1 : index
    %c0_50 = arith.constant 0 : index
    %c7_51 = arith.constant 7 : index
    %c0_52 = arith.constant 0 : index
    %41 = vector.load %arg5[%c1_49, %c0_50, %c7_51, %c0_52] : memref<2x18x25x36xf32, #tpu.memory_space<vmem>>, vector<1x16x16x36xf32>
    %42 = vector.shape_cast %41 : vector<1x16x16x36xf32> to vector<16x16x36xf32>
    %43 = vector.shape_cast %42 : vector<16x16x36xf32> to vector<256x36xf32>
    %c256_53 = arith.constant 256 : index
    %c0_54 = arith.constant 0 : index
    %44 = vector.load %arg6[%c256_53, %c0_54] : memref<512x384xf32, #tpu.memory_space<vmem>>, vector<256x36xf32>
    tpu.vector_store %arg6[%c256_53, %c0_54], %43 {strides = array<i32>} : memref<512x384xf32, #tpu.memory_space<vmem>>, vector<256x36xf32>,
    %c1_55 = arith.constant 1 : index
    %c0_56 = arith.constant 0 : index
    %c8_57 = arith.constant 8 : index
    %c0_58 = arith.constant 0 : index
    %45 = vector.load %arg5[%c1_55, %c0_56, %c8_57, %c0_58] : memref<2x18x25x36xf32, #tpu.memory_space<vmem>>, vector<1x16x16x36xf32>
    %46 = vector.shape_cast %45 : vector<1x16x16x36xf32> to vector<16x16x36xf32>
    %47 = vector.shape_cast %46 : vector<16x16x36xf32> to vector<256x36xf32>
    %c256_59 = arith.constant 256 : index
    %c36_60 = arith.constant 36 : index
    %48 = vector.load %arg6[%c256_59, %c36_60] : memref<512x384xf32, #tpu.memory_space<vmem>>, vector<256x36xf32>
    tpu.vector_store %arg6[%c256_59, %c36_60], %47 {strides = array<i32>} : memref<512x384xf32, #tpu.memory_space<vmem>>, vector<256x36xf32>,
    %c1_61 = arith.constant 1 : index
    %c0_62 = arith.constant 0 : index
    %c9_63 = arith.constant 9 : index
    %c0_64 = arith.constant 0 : index
    %49 = vector.load %arg5[%c1_61, %c0_62, %c9_63, %c0_64] : memref<2x18x25x36xf32, #tpu.memory_space<vmem>>, vector<1x16x16x36xf32>
    %50 = vector.shape_cast %49 : vector<1x16x16x36xf32> to vector<16x16x36xf32>
    %51 = vector.shape_cast %50 : vector<16x16x36xf32> to vector<256x36xf32>
    %c256_65 = arith.constant 256 : index
    %c72_66 = arith.constant 72 : index
    %52 = vector.load %arg6[%c256_65, %c72_66] : memref<512x384xf32, #tpu.memory_space<vmem>>, vector<256x36xf32>
    tpu.vector_store %arg6[%c256_65, %c72_66], %51 {strides = array<i32>} : memref<512x384xf32, #tpu.memory_space<vmem>>, vector<256x36xf32>,
    %c1_67 = arith.constant 1 : index
    %c1_68 = arith.constant 1 : index
    %c7_69 = arith.constant 7 : index
    %c0_70 = arith.constant 0 : index
    %53 = vector.load %arg5[%c1_67, %c1_68, %c7_69, %c0_70] : memref<2x18x25x36xf32, #tpu.memory_space<vmem>>, vector<1x16x16x36xf32>
    %54 = vector.shape_cast %53 : vector<1x16x16x36xf32> to vector<16x16x36xf32>
    %55 = vector.shape_cast %54 : vector<16x16x36xf32> to vector<256x36xf32>
    %c256_71 = arith.constant 256 : index
    %c128_72 = arith.constant 128 : index
    %56 = vector.load %arg6[%c256_71, %c128_72] : memref<512x384xf32, #tpu.memory_space<vmem>>, vector<256x36xf32>
    tpu.vector_store %arg6[%c256_71, %c128_72], %55 {strides = array<i32>} : memref<512x384xf32, #tpu.memory_space<vmem>>, vector<256x36xf32>,
    %c1_73 = arith.constant 1 : index
    %c1_74 = arith.constant 1 : index
    %c8_75 = arith.constant 8 : index
    %c0_76 = arith.constant 0 : index
    %57 = vector.load %arg5[%c1_73, %c1_74, %c8_75, %c0_76] : memref<2x18x25x36xf32, #tpu.memory_space<vmem>>, vector<1x16x16x36xf32>
    %58 = vector.shape_cast %57 : vector<1x16x16x36xf32> to vector<16x16x36xf32>
    %59 = vector.shape_cast %58 : vector<16x16x36xf32> to vector<256x36xf32>
    %c256_77 = arith.constant 256 : index
    %c164_78 = arith.constant 164 : index
    %60 = vector.load %arg6[%c256_77, %c164_78] : memref<512x384xf32, #tpu.memory_space<vmem>>, vector<256x36xf32>
    tpu.vector_store %arg6[%c256_77, %c164_78], %59 {strides = array<i32>} : memref<512x384xf32, #tpu.memory_space<vmem>>, vector<256x36xf32>,
    %c1_79 = arith.constant 1 : index
    %c1_80 = arith.constant 1 : index
    %c9_81 = arith.constant 9 : index
    %c0_82 = arith.constant 0 : index
    %61 = vector.load %arg5[%c1_79, %c1_80, %c9_81, %c0_82] : memref<2x18x25x36xf32, #tpu.memory_space<vmem>>, vector<1x16x16x36xf32>
    %62 = vector.shape_cast %61 : vector<1x16x16x36xf32> to vector<16x16x36xf32>
    %63 = vector.shape_cast %62 : vector<16x16x36xf32> to vector<256x36xf32>
    %c256_83 = arith.constant 256 : index
    %c200_84 = arith.constant 200 : index
    %64 = vector.load %arg6[%c256_83, %c200_84] : memref<512x384xf32, #tpu.memory_space<vmem>>, vector<256x36xf32>
    tpu.vector_store %arg6[%c256_83, %c200_84], %63 {strides = array<i32>} : memref<512x384xf32, #tpu.memory_space<vmem>>, vector<256x36xf32>,
    %c1_85 = arith.constant 1 : index
    %c2_86 = arith.constant 2 : index
    %c7_87 = arith.constant 7 : index
    %c0_88 = arith.constant 0 : index
    %65 = vector.load %arg5[%c1_85, %c2_86, %c7_87, %c0_88] : memref<2x18x25x36xf32, #tpu.memory_space<vmem>>, vector<1x16x16x36xf32>
    %66 = vector.shape_cast %65 : vector<1x16x16x36xf32> to vector<16x16x36xf32>
    %67 = vector.shape_cast %66 : vector<16x16x36xf32> to vector<256x36xf32>
    %c256_89 = arith.constant 256 : index
    %c256_90 = arith.constant 256 : index
    %68 = vector.load %arg6[%c256_89, %c256_90] : memref<512x384xf32, #tpu.memory_space<vmem>>, vector<256x36xf32>
    tpu.vector_store %arg6[%c256_89, %c256_90], %67 {strides = array<i32>} : memref<512x384xf32, #tpu.memory_space<vmem>>, vector<256x36xf32>,
    %c1_91 = arith.constant 1 : index
    %c2_92 = arith.constant 2 : index
    %c8_93 = arith.constant 8 : index
    %c0_94 = arith.constant 0 : index
    %69 = vector.load %arg5[%c1_91, %c2_92, %c8_93, %c0_94] : memref<2x18x25x36xf32, #tpu.memory_space<vmem>>, vector<1x16x16x36xf32>
    %70 = vector.shape_cast %69 : vector<1x16x16x36xf32> to vector<16x16x36xf32>
    %71 = vector.shape_cast %70 : vector<16x16x36xf32> to vector<256x36xf32>
    %c256_95 = arith.constant 256 : index
    %c292_96 = arith.constant 292 : index
    %72 = vector.load %arg6[%c256_95, %c292_96] : memref<512x384xf32, #tpu.memory_space<vmem>>, vector<256x36xf32>
    tpu.vector_store %arg6[%c256_95, %c292_96], %71 {strides = array<i32>} : memref<512x384xf32, #tpu.memory_space<vmem>>, vector<256x36xf32>,
    %c1_97 = arith.constant 1 : index
    %c2_98 = arith.constant 2 : index
    %c9_99 = arith.constant 9 : index
    %c0_100 = arith.constant 0 : index
    %73 = vector.load %arg5[%c1_97, %c2_98, %c9_99, %c0_100] : memref<2x18x25x36xf32, #tpu.memory_space<vmem>>, vector<1x16x16x36xf32>
    %74 = vector.shape_cast %73 : vector<1x16x16x36xf32> to vector<16x16x36xf32>
    %75 = vector.shape_cast %74 : vector<16x16x36xf32> to vector<256x36xf32>
    %c256_101 = arith.constant 256 : index
    %c328_102 = arith.constant 328 : index
    %76 = vector.load %arg6[%c256_101, %c328_102] : memref<512x384xf32, #tpu.memory_space<vmem>>, vector<256x36xf32>
    tpu.vector_store %arg6[%c256_101, %c328_102], %75 {strides = array<i32>} : memref<512x384xf32, #tpu.memory_space<vmem>>, vector<256x36xf32>,
    %c0_103 = arith.constant 0 : index
    %c0_104 = arith.constant 0 : index
    %77 = vector.load %arg6[%c0_103, %c0_104] : memref<512x384xf32, #tpu.memory_space<vmem>>, vector<512x384xf32>
    %c0_105 = arith.constant 0 : index
    %c0_106 = arith.constant 0 : index
    %78 = vector.load %arg2[%c0_105, %c0_106] : memref<384x32xf32, #tpu.memory_space<vmem>>, vector<384x32xf32>
    %cst = arith.constant dense<0.000000e+00> : vector<512x32xf32>
    %79 = tpu.matmul %77, %78, %cst {dimension_numbers = #tpu.dot_dimension_numbers<[1], [0], [0], [1], [0, 0, 1, 1], [], []>} : vector<512x384xf32>, vector<384x32xf32>, vector<512x32xf32> -> vector<512x32xf32>
    %80 = vector.extract_strided_slice %79 {offsets = [0, 0], sizes = [256, 32], strides = [1, 1]} : vector<512x32xf32> to vector<256x32xf32>
    %81 = tpu.transpose %80, [1, 0] : vector<256x32xf32> -> vector<32x256xf32>
    %c0_107 = arith.constant 0 : index
    %c0_108 = arith.constant 0 : index
    %82 = vector.load %arg3[%c0_107, %c0_108] : memref<32x1xf32, #tpu.memory_space<vmem>>, vector<32x1xf32>
    %83 = vector.broadcast %82 : vector<32x1xf32> to vector<32x256xf32>
    %84 = arith.addf %81, %83 : vector<32x256xf32>
    %cst_109 = arith.constant 0.000000e+00 : f32
    %85 = vector.broadcast %cst_109 : f32 to vector<32x256xf32>
    %86 = arith.maximumf %84, %85 : vector<32x256xf32>
    %c0_110 = arith.constant 0 : index
    %c0_111 = arith.constant 0 : index
    %c0_112 = arith.constant 0 : index
    %87 = vector.load %arg4[%c0_110, %c0_111, %c0_112] : memref<2x32x256xf32, #tpu.memory_space<vmem>>, vector<1x32x256xf32>
    %88 = vector.shape_cast %87 : vector<1x32x256xf32> to vector<32x256xf32>
    %89 = vector.shape_cast %86 : vector<32x256xf32> to vector<1x32x256xf32>
    tpu.vector_store %arg4[%c0_110, %c0_111, %c0_112], %89 {strides = array<i32>} : memref<2x32x256xf32, #tpu.memory_space<vmem>>, vector<1x32x256xf32>,
    %90 = vector.extract_strided_slice %79 {offsets = [256, 0], sizes = [256, 32], strides = [1, 1]} : vector<512x32xf32> to vector<256x32xf32>
    %91 = tpu.transpose %90, [1, 0] : vector<256x32xf32> -> vector<32x256xf32>
    %c0_113 = arith.constant 0 : index
    %c0_114 = arith.constant 0 : index
    %92 = vector.load %arg3[%c0_113, %c0_114] : memref<32x1xf32, #tpu.memory_space<vmem>>, vector<32x1xf32>
    %93 = vector.broadcast %92 : vector<32x1xf32> to vector<32x256xf32>
    %94 = arith.addf %91, %93 : vector<32x256xf32>
    %cst_115 = arith.constant 0.000000e+00 : f32
    %95 = vector.broadcast %cst_115 : f32 to vector<32x256xf32>
    %96 = arith.maximumf %94, %95 : vector<32x256xf32>
    %c1_116 = arith.constant 1 : index
    %c0_117 = arith.constant 0 : index
    %c0_118 = arith.constant 0 : index
    %97 = vector.load %arg4[%c1_116, %c0_117, %c0_118] : memref<2x32x256xf32, #tpu.memory_space<vmem>>, vector<1x32x256xf32>
    %98 = vector.shape_cast %97 : vector<1x32x256xf32> to vector<32x256xf32>
    %99 = vector.shape_cast %96 : vector<32x256xf32> to vector<1x32x256xf32>
    tpu.vector_store %arg4[%c1_116, %c0_117, %c0_118], %99 {strides = array<i32>} : memref<2x32x256xf32, #tpu.memory_space<vmem>>, vector<1x32x256xf32>,
    return
  }
  func.func @transform_0(%arg0: i32) -> (i32, i32, i32, i32) {
    %c0_i32 = arith.constant 0 : i32
    %c0_i32_0 = arith.constant 0 : i32
    %c0_i32_1 = arith.constant 0 : i32
    %c0_i32_2 = arith.constant 0 : i32
    return %arg0, %c0_i32, %c0_i32_0, %c0_i32_1 : i32, i32, i32, i32
  }
  func.func @transform_1(%arg0: i32) -> (i32, i32) {
    %c0_i32 = arith.constant 0 : i32
    %c0_i32_0 = arith.constant 0 : i32
    %c0_i32_1 = arith.constant 0 : i32
    return %c0_i32, %c0_i32_0 : i32, i32
  }
  func.func @transform_2(%arg0: i32) -> (i32, i32) {
    %c0_i32 = arith.constant 0 : i32
    %c0_i32_0 = arith.constant 0 : i32
    %c0_i32_1 = arith.constant 0 : i32
    return %c0_i32, %c0_i32_0 : i32, i32
  }
  func.func @transform_3(%arg0: i32) -> (i32, i32, i32) {
    %c0_i32 = arith.constant 0 : i32
    %c0_i32_0 = arith.constant 0 : i32
    %c0_i32_1 = arith.constant 0 : i32
    return %arg0, %c0_i32, %c0_i32_0 : i32, i32, i32
  }
}

</mosaic_0001>

<bundles_post_ra>
// kernel: tpu_custom_call.1
= control target key start
LH: loop header
LB: loop body
LE: loop exit
PB: predicated region body
PF: predicated region fallthrough
CT: control target
= control target key end

     0   :  { %vm19_vm0 = vcmask 293888   ;;  %s7202_s0 = inlined_call_operand.vmem [shape: f32[2,16,16,36], index: 0, kind: input, shape index: {}]   ;;  %s7203_s1 = inlined_call_operand.vmem [shape: f32[384,32], index: 1, kind: input, shape index: {}]   ;;  %s7204_s2 = inlined_call_operand.vmem [shape: f32[32,1], index: 2, kind: input, shape index: {}]   ;;  %s7205_s3 = inlined_call_operand.hbm [shape: f32[2,32,256], index: 3, kind: output, shape index: {}]  }
   0x1   :  { %8 = vsyncpa [#allocation5], 0  ;;  %v4391_v0 = vmov 0.0   ;;  %s4392_s12 = smov 36   ;;  %v359_v3 = vld [vmem:[%s7202_s0 + $0x10] sm:$0xff]  ;;  %v357_v4 = vld [vmem:[%s7202_s0] sm:$0xff] }
   0x2   :  { %21 = vst.msk [vmem:[#allocation2 + $0x8] sm:$0xff] %vm19_vm0, %v4391_v0  ;;  %v360_v5 = vld [vmem:[%s7202_s0 + $0x18] sm:$0xff]  ;;  %v358_v6 = vld [vmem:[%s7202_s0 + $0x8] sm:$0xff]  ;;  %v361_v7 = vld [vmem:[%s7202_s0 + $0x20] sm:$0xff]  ;;  %vm23_vm1 = vcmask 286720   ;;  %s4393_s21 = smov 72  }
   0x3   :  { %20 = vst.msk [vmem:[#allocation2] sm:$0xff] %vm19_vm0, %v4391_v0  ;;  %v363_v8 = vld [vmem:[%s7202_s0 + $0x30] sm:$0xff]  ;;  %v362_v9 = vld [vmem:[%s7202_s0 + $0x28] sm:$0xff]  ;;  %v364_v10 = vld [vmem:[%s7202_s0 + $0x38] sm:$0xff]  ;;  %vm711_vm2 = vcmask 589088   ;;  %vm904_vm3 = vcmask 884288  }
   0x4   :  { %22 = vst.msk [vmem:[#allocation2 + $0x10] sm:$0xff] %vm19_vm0, %v4391_v0  ;;  %v366_v11 = vld [vmem:[%s7202_s0 + $0x48] sm:$0xff]  ;;  %v365_v12 = vld [vmem:[%s7202_s0 + $0x40] sm:$0xff]  ;;  %v367_v14 = vld [vmem:[%s7202_s0 + $0x50] sm:$0xff]  ;;  %s4279_s24 = sshll.u32 %s7205_s3, 4  ;;  %s4396_s25 = smov 256   ;;  %s4280_s24 = int_to_ptr.hbm [resolvable:$true] %s4279_s24 }
   0x5   :  { %25 = vst.msk [vmem:[#allocation2 + $0x20] sm:$0xff] %vm19_vm0, %v4391_v0  ;;  %v369_v16 = vld [vmem:[%s7202_s0 + $0x60] sm:$0xff]  ;;  %v368_v17 = vld [vmem:[%s7202_s0 + $0x58] sm:$0xff]  ;;  %v370_v18 = vld [vmem:[%s7202_s0 + $0x68] sm:$0xff]  ;;  %s4397_s26 = smov 16  }
   0x6   :  { %26 = vst.msk [vmem:[#allocation2 + $0x28] sm:$0xff] %vm19_vm0, %v4391_v0  ;;  %v372_v20 = vld [vmem:[%s7202_s0 + $0x78] sm:$0xff]  ;;  %v371_v21 = vld [vmem:[%s7202_s0 + $0x70] sm:$0xff]  ;;  %v373_v24 = vld [vmem:[%s7202_s0 + $0x80] sm:$0xff] }
   0x7   :  { %27 = vst.msk [vmem:[#allocation2 + $0x30] sm:$0xff] %vm19_vm0, %v4391_v0  ;;  %v375_v25 = vld [vmem:[%s7202_s0 + $0x90] sm:$0xff]  ;;  %v374_v26 = vld [vmem:[%s7202_s0 + $0x88] sm:$0xff]  ;;  %v376_v30 = vld [vmem:[%s7202_s0 + $0x98] sm:$0xff] }
   0x8   :  { %29 = vst.msk [vmem:[#allocation2 + $0x40] sm:$0xff] %vm19_vm0, %v4391_v0  ;;  %v378_v31 = vld [vmem:[%s7202_s0 + $0xa8] sm:$0xff]  ;;  %v377_v32 = vld [vmem:[%s7202_s0 + $0xa0] sm:$0xff]  ;;  %v379_v36 = vld [vmem:[%s7202_s0 + $0xb0] sm:$0xff] }
   0x9   :  { %v551_v1 = vld [vmem:[#allocation2 + $0x8] sm:$0xff]  ;;  %30 = vst.msk [vmem:[#allocation2 + $0x48] sm:$0xff] %vm19_vm0, %v4391_v0  ;;  %v381_v37 = vld [vmem:[%s7202_s0 + $0xc0] sm:$0xff]  ;;  %v380_v38 = vld [vmem:[%s7202_s0 + $0xb8] sm:$0xff] }
   0xa   :  { %615 = vrot.lane.b32.xlu0 %v551_v1, %s4392_s12  ;;  %31 = vst.msk [vmem:[#allocation2 + $0x50] sm:$0xff] %vm19_vm0, %v4391_v0  ;;  %v382_v42 = vld [vmem:[%s7202_s0 + $0xc8] sm:$0xff]  ;;  %v384_v43 = vld [vmem:[%s7202_s0 + $0xd8] sm:$0xff]  ;;  %v383_v44 = vld [vmem:[%s7202_s0 + $0xd0] sm:$0xff] }
   0xb   :  { %33 = vst.msk [vmem:[#allocation2 + $0x60] sm:$0xff] %vm19_vm0, %v4391_v0  ;;  %v552_v2 = vld [vmem:[#allocation2 + $0x10] sm:$0xff]  ;;  %v385_v48 = vld [vmem:[%s7202_s0 + $0xe0] sm:$0xff]  ;;  %v386_v49 = vld [vmem:[%s7202_s0 + $0xe8] sm:$0xff] }
   0xc   :  { %34 = vst.msk [vmem:[#allocation2 + $0x68] sm:$0xff] %vm19_vm0, %v4391_v0  ;;  %v744_v63 = vld [vmem:[#allocation2 + $0x9] sm:$0xff] }
   0xd   :  { %35 = vst.msk [vmem:[#allocation2 + $0x70] sm:$0xff] %vm19_vm0, %v4391_v0 }
   0xe   :  { %37 = vst.msk [vmem:[#allocation2 + $0x80] sm:$0xff] %vm19_vm0, %v4391_v0 }
   0xf   :  { %38 = vst.msk [vmem:[#allocation2 + $0x88] sm:$0xff] %vm19_vm0, %v4391_v0 }
  0x10   :  { %39 = vst.msk [vmem:[#allocation2 + $0x90] sm:$0xff] %vm19_vm0, %v4391_v0 }
  0x11   :  { %41 = vst.msk [vmem:[#allocation2 + $0xa0] sm:$0xff] %vm19_vm0, %v4391_v0 }
  0x12   :  { %42 = vst.msk [vmem:[#allocation2 + $0xa8] sm:$0xff] %vm19_vm0, %v4391_v0  ;;  %617 = vrot.lane.b32.xlu0 %v552_v2, %s4392_s12 }
  0x13   :  { %43 = vst.msk [vmem:[#allocation2 + $0xb0] sm:$0xff] %vm19_vm0, %v4391_v0 }
  0x14   :  { %45 = vst.msk [vmem:[#allocation2 + $0xc0] sm:$0xff] %vm19_vm0, %v4391_v0 }
  0x15   :  { %46 = vst.msk [vmem:[#allocation2 + $0xc8] sm:$0xff] %vm19_vm0, %v4391_v0 }
  0x16   :  { %47 = vst.msk [vmem:[#allocation2 + $0xd0] sm:$0xff] %vm19_vm0, %v4391_v0 }
  0x17   :  { %49 = vst.msk [vmem:[#allocation2 + $0xe0] sm:$0xff] %vm19_vm0, %v4391_v0 }
  0x18   :  { %50 = vst.msk [vmem:[#allocation2 + $0xe8] sm:$0xff] %vm19_vm0, %v4391_v0 }
  0x19   :  { %51 = vst.msk [vmem:[#allocation2 + $0xf0] sm:$0xff] %vm19_vm0, %v4391_v0 }
  0x1a   :  { %53 = vst.msk [vmem:[#allocation2 + $0x100] sm:$0xff] %vm19_vm0, %v4391_v0 }
  0x1b   :  { %54 = vst.msk [vmem:[#allocation2 + $0x108] sm:$0xff] %vm19_vm0, %v4391_v0 }
  0x1c   :  { %55 = vst.msk [vmem:[#allocation2 + $0x110] sm:$0xff] %vm19_vm0, %v4391_v0 }
  0x1d   :  { %57 = vst.msk [vmem:[#allocation2 + $0x120] sm:$0xff] %vm19_vm0, %v4391_v0 }
  0x1e   :  { %58 = vst.msk [vmem:[#allocation2 + $0x128] sm:$0xff] %vm19_vm0, %v4391_v0 }
  0x1f   :  { %59 = vst.msk [vmem:[#allocation2 + $0x130] sm:$0xff] %vm19_vm0, %v4391_v0 }
  0x20   :  { %61 = vst.msk [vmem:[#allocation2 + $0x140] sm:$0xff] %vm19_vm0, %v4391_v0 }
  0x21   :  { %62 = vst.msk [vmem:[#allocation2 + $0x148] sm:$0xff] %vm19_vm0, %v4391_v0 }
  0x22   :  { %63 = vst.msk [vmem:[#allocation2 + $0x150] sm:$0xff] %vm19_vm0, %v4391_v0 }
  0x23   :  { %65 = vst.msk [vmem:[#allocation2 + $0x160] sm:$0xff] %vm19_vm0, %v4391_v0 }
  0x24   :  { %66 = vst.msk [vmem:[#allocation2 + $0x168] sm:$0xff] %vm19_vm0, %v4391_v0 }
  0x25   :  { %67 = vst.msk [vmem:[#allocation2 + $0x170] sm:$0xff] %vm19_vm0, %v4391_v0 }
  0x26   :  { %69 = vst.msk [vmem:[#allocation2 + $0x180] sm:$0xff] %vm19_vm0, %v4391_v0 }
  0x27   :  { %70 = vst.msk [vmem:[#allocation2 + $0x188] sm:$0xff] %vm19_vm0, %v4391_v0 }
  0x28   :  { %71 = vst.msk [vmem:[#allocation2 + $0x190] sm:$0xff] %vm19_vm0, %v4391_v0 }
  0x29   :  { %73 = vst.msk [vmem:[#allocation2 + $0x1a0] sm:$0xff] %vm19_vm0, %v4391_v0 }
  0x2a   :  { %74 = vst.msk [vmem:[#allocation2 + $0x1a8] sm:$0xff] %vm19_vm0, %v4391_v0 }
  0x2b   :  { %75 = vst.msk [vmem:[#allocation2 + $0x1b0] sm:$0xff] %vm19_vm0, %v4391_v0 }
  0x2c   :  { %77 = vst.msk [vmem:[#allocation2 + $0x1c0] sm:$0xff] %vm19_vm0, %v4391_v0 }
  0x2d   :  { %78 = vst.msk [vmem:[#allocation2 + $0x1c8] sm:$0xff] %vm19_vm0, %v4391_v0 }
  0x2e   :  { %79 = vst.msk [vmem:[#allocation2 + $0x1d0] sm:$0xff] %vm19_vm0, %v4391_v0 }
  0x2f   :  { %81 = vst.msk [vmem:[#allocation2 + $0x1e0] sm:$0xff] %vm19_vm0, %v4391_v0 }
  0x30   :  { %82 = vst.msk [vmem:[#allocation2 + $0x1e8] sm:$0xff] %vm19_vm0, %v4391_v0 }
  0x31   :  { %83 = vst.msk [vmem:[#allocation2 + $0x1f0] sm:$0xff] %vm19_vm0, %v4391_v0 }
  0x32   :  { %85 = vst.msk [vmem:[#allocation2 + $0x200] sm:$0xff] %vm19_vm0, %v4391_v0 }
  0x33   :  { %86 = vst.msk [vmem:[#allocation2 + $0x208] sm:$0xff] %vm19_vm0, %v4391_v0 }
  0x34   :  { %87 = vst.msk [vmem:[#allocation2 + $0x210] sm:$0xff] %vm19_vm0, %v4391_v0 }
  0x35   :  { %89 = vst.msk [vmem:[#allocation2 + $0x220] sm:$0xff] %vm19_vm0, %v4391_v0 }
  0x36   :  { %90 = vst.msk [vmem:[#allocation2 + $0x228] sm:$0xff] %vm19_vm0, %v4391_v0 }
  0x37   :  { %91 = vst.msk [vmem:[#allocation2 + $0x230] sm:$0xff] %vm19_vm0, %v4391_v0 }
  0x38   :  { %93 = vst.msk [vmem:[#allocation2 + $0x240] sm:$0xff] %vm19_vm0, %v4391_v0 }
  0x39   :  { %94 = vst.msk [vmem:[#allocation2 + $0x248] sm:$0xff] %vm19_vm0, %v4391_v0 }
  0x3a   :  { %95 = vst.msk [vmem:[#allocation2 + $0x250] sm:$0xff] %vm19_vm0, %v4391_v0 }
  0x3b   :  { %97 = vst.msk [vmem:[#allocation2 + $0x260] sm:$0xff] %vm19_vm0, %v4391_v0 }
  0x3c   :  { %98 = vst.msk [vmem:[#allocation2 + $0x268] sm:$0xff] %vm19_vm0, %v4391_v0 }
  0x3d   :  { %99 = vst.msk [vmem:[#allocation2 + $0x270] sm:$0xff] %vm19_vm0, %v4391_v0 }
  0x3e   :  { %101 = vst.msk [vmem:[#allocation2 + $0x280] sm:$0xff] %vm19_vm0, %v4391_v0 }
  0x3f   :  { %102 = vst.msk [vmem:[#allocation2 + $0x288] sm:$0xff] %vm19_vm0, %v4391_v0 }
  0x40   :  { %103 = vst.msk [vmem:[#allocation2 + $0x290] sm:$0xff] %vm19_vm0, %v4391_v0 }
  0x41   :  { %105 = vst.msk [vmem:[#allocation2 + $0x2a0] sm:$0xff] %vm19_vm0, %v4391_v0 }
  0x42   :  { %106 = vst.msk [vmem:[#allocation2 + $0x2a8] sm:$0xff] %vm19_vm0, %v4391_v0 }
  0x43   :  { %107 = vst.msk [vmem:[#allocation2 + $0x2b0] sm:$0xff] %vm19_vm0, %v4391_v0 }
  0x44   :  { %109 = vst.msk [vmem:[#allocation2 + $0x2c0] sm:$0xff] %vm19_vm0, %v4391_v0 }
  0x45   :  { %110 = vst.msk [vmem:[#allocation2 + $0x2c8] sm:$0xff] %vm19_vm0, %v4391_v0 }
  0x46   :  { %111 = vst.msk [vmem:[#allocation2 + $0x2d0] sm:$0xff] %vm19_vm0, %v4391_v0 }
  0x47   :  { %113 = vst.msk [vmem:[#allocation2 + $0x2e0] sm:$0xff] %vm19_vm0, %v4391_v0 }
  0x48   :  { %114 = vst.msk [vmem:[#allocation2 + $0x2e8] sm:$0xff] %vm19_vm0, %v4391_v0 }
  0x49   :  { %115 = vst.msk [vmem:[#allocation2 + $0x2f0] sm:$0xff] %vm19_vm0, %v4391_v0 }
  0x4a   :  { %117 = vst.msk [vmem:[#allocation2 + $0x300] sm:$0xff] %vm19_vm0, %v4391_v0 }
  0x4b   :  { %118 = vst.msk [vmem:[#allocation2 + $0x308] sm:$0xff] %vm19_vm0, %v4391_v0 }
  0x4c   :  { %119 = vst.msk [vmem:[#allocation2 + $0x310] sm:$0xff] %vm19_vm0, %v4391_v0 }
  0x4d   :  { %121 = vst.msk [vmem:[#allocation2 + $0x320] sm:$0xff] %vm19_vm0, %v4391_v0 }
  0x4e   :  { %122 = vst.msk [vmem:[#allocation2 + $0x328] sm:$0xff] %vm19_vm0, %v4391_v0 }
  0x4f   :  { %123 = vst.msk [vmem:[#allocation2 + $0x330] sm:$0xff] %vm19_vm0, %v4391_v0 }
  0x50   :  { %125 = vst.msk [vmem:[#allocation2 + $0x340] sm:$0xff] %vm19_vm0, %v4391_v0 }
  0x51   :  { %126 = vst.msk [vmem:[#allocation2 + $0x348] sm:$0xff] %vm19_vm0, %v4391_v0 }
  0x52   :  { %127 = vst.msk [vmem:[#allocation2 + $0x350] sm:$0xff] %vm19_vm0, %v4391_v0 }
  0x53   :  { %129 = vst.msk [vmem:[#allocation2 + $0x360] sm:$0xff] %vm19_vm0, %v4391_v0 }
  0x54   :  { %130 = vst.msk [vmem:[#allocation2 + $0x368] sm:$0xff] %vm19_vm0, %v4391_v0 }
  0x55   :  { %131 = vst.msk [vmem:[#allocation2 + $0x370] sm:$0xff] %vm19_vm0, %v4391_v0 }
  0x56   :  { %133 = vst.msk [vmem:[#allocation2 + $0x380] sm:$0xff] %vm19_vm0, %v4391_v0 }
  0x57   :  { %134 = vst.msk [vmem:[#allocation2 + $0x388] sm:$0xff] %vm19_vm0, %v4391_v0 }
  0x58   :  { %135 = vst.msk [vmem:[#allocation2 + $0x390] sm:$0xff] %vm19_vm0, %v4391_v0 }
  0x59   :  { %137 = vst.msk [vmem:[#allocation2 + $0x3a0] sm:$0xff] %vm19_vm0, %v4391_v0 }
  0x5a   :  { %138 = vst.msk [vmem:[#allocation2 + $0x3a8] sm:$0xff] %vm19_vm0, %v4391_v0 }
  0x5b   :  { %139 = vst.msk [vmem:[#allocation2 + $0x3b0] sm:$0xff] %vm19_vm0, %v4391_v0 }
  0x5c   :  { %141 = vst.msk [vmem:[#allocation2 + $0x3c0] sm:$0xff] %vm19_vm0, %v4391_v0 }
  0x5d   :  { %142 = vst.msk [vmem:[#allocation2 + $0x3c8] sm:$0xff] %vm19_vm0, %v4391_v0 }
  0x5e   :  { %143 = vst.msk [vmem:[#allocation2 + $0x3d0] sm:$0xff] %vm19_vm0, %v4391_v0 }
  0x5f   :  { %145 = vst.msk [vmem:[#allocation2 + $0x3e0] sm:$0xff] %vm19_vm0, %v4391_v0 }
  0x60   :  { %146 = vst.msk [vmem:[#allocation2 + $0x3e8] sm:$0xff] %vm19_vm0, %v4391_v0 }
  0x61   :  { %147 = vst.msk [vmem:[#allocation2 + $0x3f0] sm:$0xff] %vm19_vm0, %v4391_v0 }
  0x62   :  { %149 = vst.msk [vmem:[#allocation2 + $0x400] sm:$0xff] %vm19_vm0, %v4391_v0 }
  0x63   :  { %150 = vst.msk [vmem:[#allocation2 + $0x408] sm:$0xff] %vm19_vm0, %v4391_v0 }
  0x64   :  { %151 = vst.msk [vmem:[#allocation2 + $0x410] sm:$0xff] %vm19_vm0, %v4391_v0 }
  0x65   :  { %153 = vst.msk [vmem:[#allocation2 + $0x420] sm:$0xff] %vm19_vm0, %v4391_v0 }
  0x66   :  { %154 = vst.msk [vmem:[#allocation2 + $0x428] sm:$0xff] %vm19_vm0, %v4391_v0 }
  0x67   :  { %155 = vst.msk [vmem:[#allocation2 + $0x430] sm:$0xff] %vm19_vm0, %v4391_v0 }
  0x68   :  { %157 = vst.msk [vmem:[#allocation2 + $0x440] sm:$0xff] %vm19_vm0, %v4391_v0 }
  0x69   :  { %158 = vst.msk [vmem:[#allocation2 + $0x448] sm:$0xff] %vm19_vm0, %v4391_v0 }
  0x6a   :  { %159 = vst.msk [vmem:[#allocation2 + $0x450] sm:$0xff] %vm19_vm0, %v4391_v0 }
  0x6b   :  { %161 = vst.msk [vmem:[#allocation2 + $0x460] sm:$0xff] %vm19_vm0, %v4391_v0 }
  0x6c   :  { %162 = vst.msk [vmem:[#allocation2 + $0x468] sm:$0xff] %vm19_vm0, %v4391_v0 }
  0x6d   :  { %163 = vst.msk [vmem:[#allocation2 + $0x470] sm:$0xff] %vm19_vm0, %v4391_v0 }
  0x6e   :  { %165 = vst [vmem:[#allocation3] sm:$0xff] %v4391_v0 }
  0x6f   :  { %166 = vst [vmem:[#allocation3 + $0x8] sm:$0xff] %v4391_v0 }
  0x70   :  { %167 = vst [vmem:[#allocation3 + $0x10] sm:$0xff] %v4391_v0 }
  0x71   :  { %168 = vst [vmem:[#allocation3 + $0x18] sm:$0xff] %v4391_v0 }
  0x72   :  { %169 = vst [vmem:[#allocation3 + $0x20] sm:$0xff] %v4391_v0 }
  0x73   :  { %170 = vst [vmem:[#allocation3 + $0x28] sm:$0xff] %v4391_v0 }
  0x74   :  { %171 = vst [vmem:[#allocation3 + $0x30] sm:$0xff] %v4391_v0 }
  0x75   :  { %172 = vst [vmem:[#allocation3 + $0x38] sm:$0xff] %v4391_v0 }
  0x76   :  { %173 = vst [vmem:[#allocation3 + $0x40] sm:$0xff] %v4391_v0 }
  0x77   :  { %174 = vst [vmem:[#allocation3 + $0x48] sm:$0xff] %v4391_v0 }
  0x78   :  { %175 = vst [vmem:[#allocation3 + $0x50] sm:$0xff] %v4391_v0 }
  0x79   :  { %176 = vst [vmem:[#allocation3 + $0x58] sm:$0xff] %v4391_v0 }
  0x7a   :  { %177 = vst [vmem:[#allocation3 + $0x60] sm:$0xff] %v4391_v0 }
  0x7b   :  { %178 = vst [vmem:[#allocation3 + $0x68] sm:$0xff] %v4391_v0 }
  0x7c   :  { %179 = vst [vmem:[#allocation3 + $0x70] sm:$0xff] %v4391_v0 }
  0x7d   :  { %180 = vst [vmem:[#allocation3 + $0x78] sm:$0xff] %v4391_v0 }
  0x7e   :  { %181 = vst [vmem:[#allocation3 + $0x80] sm:$0xff] %v4391_v0 }
  0x7f   :  { %182 = vst [vmem:[#allocation3 + $0x88] sm:$0xff] %v4391_v0 }
  0x80   :  { %183 = vst [vmem:[#allocation3 + $0x90] sm:$0xff] %v4391_v0 }
  0x81   :  { %184 = vst [vmem:[#allocation3 + $0x98] sm:$0xff] %v4391_v0 }
  0x82   :  { %185 = vst [vmem:[#allocation3 + $0xa0] sm:$0xff] %v4391_v0 }
  0x83   :  { %186 = vst [vmem:[#allocation3 + $0xa8] sm:$0xff] %v4391_v0 }
  0x84   :  { %187 = vst [vmem:[#allocation3 + $0xb0] sm:$0xff] %v4391_v0 }
  0x85   :  { %188 = vst [vmem:[#allocation3 + $0xb8] sm:$0xff] %v4391_v0 }
  0x86   :  { %189 = vst [vmem:[#allocation3 + $0xc0] sm:$0xff] %v4391_v0 }
  0x87   :  { %190 = vst [vmem:[#allocation3 + $0xc8] sm:$0xff] %v4391_v0 }
  0x88   :  { %191 = vst [vmem:[#allocation3 + $0xd0] sm:$0xff] %v4391_v0 }
  0x89   :  { %192 = vst [vmem:[#allocation3 + $0xd8] sm:$0xff] %v4391_v0 }
  0x8a   :  { %193 = vst [vmem:[#allocation3 + $0xe0] sm:$0xff] %v4391_v0 }
  0x8b   :  { %194 = vst [vmem:[#allocation3 + $0xe8] sm:$0xff] %v4391_v0 }
  0x8c   :  { %195 = vst [vmem:[#allocation3 + $0xf0] sm:$0xff] %v4391_v0 }
  0x8d   :  { %196 = vst [vmem:[#allocation3 + $0xf8] sm:$0xff] %v4391_v0 }
  0x8e   :  { %197 = vst [vmem:[#allocation3 + $0x100] sm:$0xff] %v4391_v0 }
  0x8f   :  { %198 = vst [vmem:[#allocation3 + $0x108] sm:$0xff] %v4391_v0 }
  0x90   :  { %199 = vst [vmem:[#allocation3 + $0x110] sm:$0xff] %v4391_v0 }
  0x91   :  { %200 = vst [vmem:[#allocation3 + $0x118] sm:$0xff] %v4391_v0 }
  0x92   :  { %201 = vst [vmem:[#allocation3 + $0x120] sm:$0xff] %v4391_v0 }
  0x93   :  { %202 = vst [vmem:[#allocation3 + $0x128] sm:$0xff] %v4391_v0 }
  0x94   :  { %203 = vst [vmem:[#allocation3 + $0x130] sm:$0xff] %v4391_v0 }
  0x95   :  { %204 = vst [vmem:[#allocation3 + $0x138] sm:$0xff] %v4391_v0 }
  0x96   :  { %205 = vst [vmem:[#allocation3 + $0x140] sm:$0xff] %v4391_v0 }
  0x97   :  { %206 = vst [vmem:[#allocation3 + $0x148] sm:$0xff] %v4391_v0 }
  0x98   :  { %207 = vst [vmem:[#allocation3 + $0x150] sm:$0xff] %v4391_v0 }
  0x99   :  { %208 = vst [vmem:[#allocation3 + $0x158] sm:$0xff] %v4391_v0 }
  0x9a   :  { %209 = vst [vmem:[#allocation3 + $0x160] sm:$0xff] %v4391_v0 }
  0x9b   :  { %210 = vst [vmem:[#allocation3 + $0x168] sm:$0xff] %v4391_v0 }
  0x9c   :  { %211 = vst [vmem:[#allocation3 + $0x170] sm:$0xff] %v4391_v0 }
  0x9d   :  { %212 = vst [vmem:[#allocation3 + $0x178] sm:$0xff] %v4391_v0 }
  0x9e   :  { %213 = vst [vmem:[#allocation3 + $0x180] sm:$0xff] %v4391_v0 }
  0x9f   :  { %214 = vst [vmem:[#allocation3 + $0x188] sm:$0xff] %v4391_v0 }
  0xa0   :  { %215 = vst [vmem:[#allocation3 + $0x190] sm:$0xff] %v4391_v0 }
  0xa1   :  { %216 = vst [vmem:[#allocation3 + $0x198] sm:$0xff] %v4391_v0 }
  0xa2   :  { %217 = vst [vmem:[#allocation3 + $0x1a0] sm:$0xff] %v4391_v0 }
  0xa3   :  { %218 = vst [vmem:[#allocation3 + $0x1a8] sm:$0xff] %v4391_v0 }
  0xa4   :  { %219 = vst [vmem:[#allocation3 + $0x1b0] sm:$0xff] %v4391_v0 }
  0xa5   :  { %220 = vst [vmem:[#allocation3 + $0x1b8] sm:$0xff] %v4391_v0 }
  0xa6   :  { %221 = vst [vmem:[#allocation3 + $0x1c0] sm:$0xff] %v4391_v0 }
  0xa7   :  { %222 = vst [vmem:[#allocation3 + $0x1c8] sm:$0xff] %v4391_v0 }
  0xa8   :  { %223 = vst [vmem:[#allocation3 + $0x1d0] sm:$0xff] %v4391_v0 }
  0xa9   :  { %224 = vst [vmem:[#allocation3 + $0x1d8] sm:$0xff] %v4391_v0 }
  0xaa   :  { %225 = vst [vmem:[#allocation3 + $0x1e0] sm:$0xff] %v4391_v0 }
  0xab   :  { %226 = vst [vmem:[#allocation3 + $0x1e8] sm:$0xff] %v4391_v0 }
  0xac   :  { %227 = vst [vmem:[#allocation3 + $0x1f0] sm:$0xff] %v4391_v0 }
  0xad   :  { %228 = vst [vmem:[#allocation3 + $0x1f8] sm:$0xff] %v4391_v0 }
  0xae   :  { %229 = vst [vmem:[#allocation3 + $0x200] sm:$0xff] %v4391_v0 }
  0xaf   :  { %230 = vst [vmem:[#allocation3 + $0x208] sm:$0xff] %v4391_v0 }
  0xb0   :  { %231 = vst [vmem:[#allocation3 + $0x210] sm:$0xff] %v4391_v0 }
  0xb1   :  { %232 = vst [vmem:[#allocation3 + $0x218] sm:$0xff] %v4391_v0 }
  0xb2   :  { %233 = vst [vmem:[#allocation3 + $0x220] sm:$0xff] %v4391_v0 }
  0xb3   :  { %234 = vst [vmem:[#allocation3 + $0x228] sm:$0xff] %v4391_v0 }
  0xb4   :  { %235 = vst [vmem:[#allocation3 + $0x230] sm:$0xff] %v4391_v0 }
  0xb5   :  { %236 = vst [vmem:[#allocation3 + $0x238] sm:$0xff] %v4391_v0 }
  0xb6   :  { %237 = vst [vmem:[#allocation3 + $0x240] sm:$0xff] %v4391_v0 }
  0xb7   :  { %238 = vst [vmem:[#allocation3 + $0x248] sm:$0xff] %v4391_v0 }
  0xb8   :  { %239 = vst [vmem:[#allocation3 + $0x250] sm:$0xff] %v4391_v0 }
  0xb9   :  { %240 = vst [vmem:[#allocation3 + $0x258] sm:$0xff] %v4391_v0 }
  0xba   :  { %241 = vst [vmem:[#allocation3 + $0x260] sm:$0xff] %v4391_v0 }
  0xbb   :  { %242 = vst [vmem:[#allocation3 + $0x268] sm:$0xff] %v4391_v0 }
  0xbc   :  { %243 = vst [vmem:[#allocation3 + $0x270] sm:$0xff] %v4391_v0 }
  0xbd   :  { %244 = vst [vmem:[#allocation3 + $0x278] sm:$0xff] %v4391_v0 }
  0xbe   :  { %245 = vst [vmem:[#allocation3 + $0x280] sm:$0xff] %v4391_v0 }
  0xbf   :  { %246 = vst [vmem:[#allocation3 + $0x288] sm:$0xff] %v4391_v0 }
  0xc0   :  { %247 = vst [vmem:[#allocation3 + $0x290] sm:$0xff] %v4391_v0 }
  0xc1   :  { %248 = vst [vmem:[#allocation3 + $0x298] sm:$0xff] %v4391_v0 }
  0xc2   :  { %249 = vst [vmem:[#allocation3 + $0x2a0] sm:$0xff] %v4391_v0 }
  0xc3   :  { %250 = vst [vmem:[#allocation3 + $0x2a8] sm:$0xff] %v4391_v0 }
  0xc4   :  { %251 = vst [vmem:[#allocation3 + $0x2b0] sm:$0xff] %v4391_v0 }
  0xc5   :  { %252 = vst [vmem:[#allocation3 + $0x2b8] sm:$0xff] %v4391_v0 }
  0xc6   :  { %253 = vst [vmem:[#allocation3 + $0x2c0] sm:$0xff] %v4391_v0 }
  0xc7   :  { %254 = vst [vmem:[#allocation3 + $0x2c8] sm:$0xff] %v4391_v0 }
  0xc8   :  { %255 = vst [vmem:[#allocation3 + $0x2d0] sm:$0xff] %v4391_v0 }
  0xc9   :  { %256 = vst [vmem:[#allocation3 + $0x2d8] sm:$0xff] %v4391_v0 }
  0xca   :  { %257 = vst [vmem:[#allocation3 + $0x2e0] sm:$0xff] %v4391_v0 }
  0xcb   :  { %258 = vst [vmem:[#allocation3 + $0x2e8] sm:$0xff] %v4391_v0 }
  0xcc   :  { %259 = vst [vmem:[#allocation3 + $0x2f0] sm:$0xff] %v4391_v0 }
  0xcd   :  { %260 = vst [vmem:[#allocation3 + $0x2f8] sm:$0xff] %v4391_v0 }
  0xce   :  { %261 = vst [vmem:[#allocation3 + $0x300] sm:$0xff] %v4391_v0 }
  0xcf   :  { %262 = vst [vmem:[#allocation3 + $0x308] sm:$0xff] %v4391_v0 }
  0xd0   :  { %263 = vst [vmem:[#allocation3 + $0x310] sm:$0xff] %v4391_v0 }
  0xd1   :  { %264 = vst [vmem:[#allocation3 + $0x318] sm:$0xff] %v4391_v0 }
  0xd2   :  { %265 = vst [vmem:[#allocation3 + $0x320] sm:$0xff] %v4391_v0 }
  0xd3   :  { %266 = vst [vmem:[#allocation3 + $0x328] sm:$0xff] %v4391_v0 }
  0xd4   :  { %267 = vst [vmem:[#allocation3 + $0x330] sm:$0xff] %v4391_v0 }
  0xd5   :  { %268 = vst [vmem:[#allocation3 + $0x338] sm:$0xff] %v4391_v0 }
  0xd6   :  { %269 = vst [vmem:[#allocation3 + $0x340] sm:$0xff] %v4391_v0 }
  0xd7   :  { %270 = vst [vmem:[#allocation3 + $0x348] sm:$0xff] %v4391_v0 }
  0xd8   :  { %271 = vst [vmem:[#allocation3 + $0x350] sm:$0xff] %v4391_v0 }
  0xd9   :  { %272 = vst [vmem:[#allocation3 + $0x358] sm:$0xff] %v4391_v0 }
  0xda   :  { %273 = vst [vmem:[#allocation3 + $0x360] sm:$0xff] %v4391_v0 }
  0xdb   :  { %274 = vst [vmem:[#allocation3 + $0x368] sm:$0xff] %v4391_v0 }
  0xdc   :  { %275 = vst [vmem:[#allocation3 + $0x370] sm:$0xff] %v4391_v0 }
  0xdd   :  { %276 = vst [vmem:[#allocation3 + $0x378] sm:$0xff] %v4391_v0 }
  0xde   :  { %277 = vst [vmem:[#allocation3 + $0x380] sm:$0xff] %v4391_v0 }
  0xdf   :  { %278 = vst [vmem:[#allocation3 + $0x388] sm:$0xff] %v4391_v0 }
  0xe0   :  { %279 = vst [vmem:[#allocation3 + $0x390] sm:$0xff] %v4391_v0 }
  0xe1   :  { %280 = vst [vmem:[#allocation3 + $0x398] sm:$0xff] %v4391_v0 }
  0xe2   :  { %281 = vst [vmem:[#allocation3 + $0x3a0] sm:$0xff] %v4391_v0 }
  0xe3   :  { %282 = vst [vmem:[#allocation3 + $0x3a8] sm:$0xff] %v4391_v0 }
  0xe4   :  { %283 = vst [vmem:[#allocation3 + $0x3b0] sm:$0xff] %v4391_v0 }
  0xe5   :  { %284 = vst [vmem:[#allocation3 + $0x3b8] sm:$0xff] %v4391_v0 }
  0xe6   :  { %285 = vst [vmem:[#allocation3 + $0x3c0] sm:$0xff] %v4391_v0 }
  0xe7   :  { %286 = vst [vmem:[#allocation3 + $0x3c8] sm:$0xff] %v4391_v0 }
  0xe8   :  { %287 = vst [vmem:[#allocation3 + $0x3d0] sm:$0xff] %v4391_v0 }
  0xe9   :  { %288 = vst [vmem:[#allocation3 + $0x3d8] sm:$0xff] %v4391_v0 }
  0xea   :  { %289 = vst [vmem:[#allocation3 + $0x3e0] sm:$0xff] %v4391_v0 }
  0xeb   :  { %290 = vst [vmem:[#allocation3 + $0x3e8] sm:$0xff] %v4391_v0 }
  0xec   :  { %291 = vst [vmem:[#allocation3 + $0x3f0] sm:$0xff] %v4391_v0 }
  0xed   :  { %292 = vst [vmem:[#allocation3 + $0x3f8] sm:$0xff] %v4391_v0 }
  0xee   :  { %293 = vst [vmem:[#allocation3 + $0x400] sm:$0xff] %v4391_v0 }
  0xef   :  { %294 = vst [vmem:[#allocation3 + $0x408] sm:$0xff] %v4391_v0 }
  0xf0   :  { %295 = vst [vmem:[#allocation3 + $0x410] sm:$0xff] %v4391_v0 }
  0xf1   :  { %296 = vst [vmem:[#allocation3 + $0x418] sm:$0xff] %v4391_v0 }
  0xf2   :  { %297 = vst [vmem:[#allocation3 + $0x420] sm:$0xff] %v4391_v0 }
  0xf3   :  { %298 = vst [vmem:[#allocation3 + $0x428] sm:$0xff] %v4391_v0 }
  0xf4   :  { %299 = vst [vmem:[#allocation3 + $0x430] sm:$0xff] %v4391_v0 }
  0xf5   :  { %300 = vst [vmem:[#allocation3 + $0x438] sm:$0xff] %v4391_v0 }
  0xf6   :  { %301 = vst [vmem:[#allocation3 + $0x440] sm:$0xff] %v4391_v0 }
  0xf7   :  { %302 = vst [vmem:[#allocation3 + $0x448] sm:$0xff] %v4391_v0 }
  0xf8   :  { %303 = vst [vmem:[#allocation3 + $0x450] sm:$0xff] %v4391_v0 }
  0xf9   :  { %304 = vst [vmem:[#allocation3 + $0x458] sm:$0xff] %v4391_v0 }
  0xfa   :  { %305 = vst [vmem:[#allocation3 + $0x460] sm:$0xff] %v4391_v0 }
  0xfb   :  { %306 = vst [vmem:[#allocation3 + $0x468] sm:$0xff] %v4391_v0 }
  0xfc   :  { %307 = vst [vmem:[#allocation3 + $0x470] sm:$0xff] %v4391_v0 }
  0xfd   :  { %308 = vst [vmem:[#allocation3 + $0x478] sm:$0xff] %v4391_v0 }
  0xfe   :  { %309 = vst [vmem:[#allocation3 + $0x480] sm:$0xff] %v4391_v0 }
  0xff   :  { %310 = vst [vmem:[#allocation3 + $0x488] sm:$0xff] %v4391_v0 }
 0x100   :  { %311 = vst [vmem:[#allocation3 + $0x490] sm:$0xff] %v4391_v0 }
 0x101   :  { %312 = vst [vmem:[#allocation3 + $0x498] sm:$0xff] %v4391_v0 }
 0x102   :  { %313 = vst [vmem:[#allocation3 + $0x4a0] sm:$0xff] %v4391_v0 }
 0x103   :  { %314 = vst [vmem:[#allocation3 + $0x4a8] sm:$0xff] %v4391_v0 }
 0x104   :  { %315 = vst [vmem:[#allocation3 + $0x4b0] sm:$0xff] %v4391_v0 }
 0x105   :  { %316 = vst [vmem:[#allocation3 + $0x4b8] sm:$0xff] %v4391_v0 }
 0x106   :  { %317 = vst [vmem:[#allocation3 + $0x4c0] sm:$0xff] %v4391_v0 }
 0x107   :  { %318 = vst [vmem:[#allocation3 + $0x4c8] sm:$0xff] %v4391_v0 }
 0x108   :  { %319 = vst [vmem:[#allocation3 + $0x4d0] sm:$0xff] %v4391_v0 }
 0x109   :  { %320 = vst [vmem:[#allocation3 + $0x4d8] sm:$0xff] %v4391_v0 }
 0x10a   :  { %321 = vst [vmem:[#allocation3 + $0x4e0] sm:$0xff] %v4391_v0 }
 0x10b   :  { %322 = vst [vmem:[#allocation3 + $0x4e8] sm:$0xff] %v4391_v0 }
 0x10c   :  { %323 = vst [vmem:[#allocation3 + $0x4f0] sm:$0xff] %v4391_v0 }
 0x10d   :  { %324 = vst [vmem:[#allocation3 + $0x4f8] sm:$0xff] %v4391_v0 }
 0x10e   :  { %325 = vst [vmem:[#allocation3 + $0x500] sm:$0xff] %v4391_v0 }
 0x10f   :  { %326 = vst [vmem:[#allocation3 + $0x508] sm:$0xff] %v4391_v0 }
 0x110   :  { %327 = vst [vmem:[#allocation3 + $0x510] sm:$0xff] %v4391_v0 }
 0x111   :  { %328 = vst [vmem:[#allocation3 + $0x518] sm:$0xff] %v4391_v0 }
 0x112   :  { %329 = vst [vmem:[#allocation3 + $0x520] sm:$0xff] %v4391_v0 }
 0x113   :  { %330 = vst [vmem:[#allocation3 + $0x528] sm:$0xff] %v4391_v0 }
 0x114   :  { %331 = vst [vmem:[#allocation3 + $0x530] sm:$0xff] %v4391_v0 }
 0x115   :  { %332 = vst [vmem:[#allocation3 + $0x538] sm:$0xff] %v4391_v0 }
 0x116   :  { %333 = vst [vmem:[#allocation3 + $0x540] sm:$0xff] %v4391_v0 }
 0x117   :  { %334 = vst [vmem:[#allocation3 + $0x548] sm:$0xff] %v4391_v0 }
 0x118   :  { %335 = vst [vmem:[#allocation3 + $0x550] sm:$0xff] %v4391_v0 }
 0x119   :  { %336 = vst [vmem:[#allocation3 + $0x558] sm:$0xff] %v4391_v0 }
 0x11a   :  { %337 = vst [vmem:[#allocation3 + $0x560] sm:$0xff] %v4391_v0 }
 0x11b   :  { %338 = vst [vmem:[#allocation3 + $0x568] sm:$0xff] %v4391_v0 }
 0x11c   :  { %339 = vst [vmem:[#allocation3 + $0x570] sm:$0xff] %v4391_v0 }
 0x11d   :  { %340 = vst [vmem:[#allocation3 + $0x578] sm:$0xff] %v4391_v0 }
 0x11e   :  { %341 = vst [vmem:[#allocation3 + $0x580] sm:$0xff] %v4391_v0 }
 0x11f   :  { %342 = vst [vmem:[#allocation3 + $0x588] sm:$0xff] %v4391_v0 }
 0x120   :  { %343 = vst [vmem:[#allocation3 + $0x590] sm:$0xff] %v4391_v0 }
 0x121   :  { %344 = vst [vmem:[#allocation3 + $0x598] sm:$0xff] %v4391_v0 }
 0x122   :  { %345 = vst [vmem:[#allocation3 + $0x5a0] sm:$0xff] %v4391_v0 }
 0x123   :  { %346 = vst [vmem:[#allocation3 + $0x5a8] sm:$0xff] %v4391_v0 }
 0x124   :  { %347 = vst [vmem:[#allocation3 + $0x5b0] sm:$0xff] %v4391_v0 }
 0x125   :  { %348 = vst [vmem:[#allocation3 + $0x5b8] sm:$0xff] %v4391_v0 }
 0x126   :  { %349 = vst [vmem:[#allocation3 + $0x5c0] sm:$0xff] %v4391_v0 }
 0x127   :  { %350 = vst [vmem:[#allocation3 + $0x5c8] sm:$0xff] %v4391_v0 }
 0x128   :  { %351 = vst [vmem:[#allocation3 + $0x5d0] sm:$0xff] %v4391_v0 }
 0x129   :  { %352 = vst [vmem:[#allocation3 + $0x5d8] sm:$0xff] %v4391_v0 }
 0x12a   :  { %353 = vst [vmem:[#allocation3 + $0x5e0] sm:$0xff] %v4391_v0 }
 0x12b   :  { %354 = vst [vmem:[#allocation3 + $0x5e8] sm:$0xff] %v4391_v0 }
 0x12c   :  { %355 = vst [vmem:[#allocation3 + $0x5f0] sm:$0xff] %v4391_v0 }
 0x12d   :  { %356 = vst [vmem:[#allocation3 + $0x5f8] sm:$0xff] %v4391_v0 }
 0x12e   :  { %425 = vst.msk [vmem:[#allocation2 + $0x48] sm:$0xff] %vm19_vm0, %v359_v3 }
 0x12f   :  { %423 = vst.msk [vmem:[#allocation2 + $0x28] sm:$0xff] %vm19_vm0, %v357_v4 }
 0x130   :  { %426 = vst.msk [vmem:[#allocation2 + $0x50] sm:$0xff] %vm19_vm0, %v360_v5  ;;  %v616_v5 = vpop.permute.xlu0 %615 }
 0x131   :  { %424 = vst.msk [vmem:[#allocation2 + $0x30] sm:$0xff] %vm19_vm0, %v358_v6 }
 0x132   :  { %427 = vst.msk [vmem:[#allocation2 + $0x68] sm:$0xff] %vm19_vm0, %v361_v7  ;;  %v487_v7 = vld [vmem:[#allocation2 + $0x7] sm:$0xff] }
 0x133   :  { %429 = vst.msk [vmem:[#allocation2 + $0x88] sm:$0xff] %vm19_vm0, %v363_v8 }
 0x134   :  { %428 = vst.msk [vmem:[#allocation2 + $0x70] sm:$0xff] %vm19_vm0, %v362_v9 }
 0x135   :  { %v4865_v13 = vld [vmem:[#allocation2 + $0x48] sm:$0xff]  ;;  %430 = vst.msk [vmem:[#allocation2 + $0x90] sm:$0xff] %vm19_vm0, %v364_v10 }
 0x136   :  { %623 = vrot.lane.b32.xlu2 %v4865_v13, %s4392_s12  ;;  %v4873_v15 = vld [vmem:[#allocation2 + $0x28] sm:$0xff]  ;;  %432 = vst.msk [vmem:[#allocation2 + $0xb0] sm:$0xff] %vm19_vm0, %v366_v11 }
 0x137   :  { %619 = vrot.lane.b32.xlu1 %v4873_v15, %s4392_s12  ;;  %431 = vst.msk [vmem:[#allocation2 + $0xa8] sm:$0xff] %vm19_vm0, %v365_v12  ;;  %v4901_v22 = vld [vmem:[#allocation2 + $0x50] sm:$0xff]  ;;  %v491_v2 = vld [vmem:[#allocation2 + $0x47] sm:$0xff] }
 0x138   :  { %433 = vst.msk [vmem:[#allocation2 + $0xc8] sm:$0xff] %vm19_vm0, %v367_v14  ;;  %v4904_v23 = vld [vmem:[#allocation2 + $0x30] sm:$0xff] }
 0x139   :  { %v4889_v19 = vld [vmem:[#allocation2 + $0x68] sm:$0xff]  ;;  %435 = vst.msk [vmem:[#allocation2 + $0xe8] sm:$0xff] %vm19_vm0, %v369_v16 }
 0x13a   :  { %627 = vrot.lane.b32.xlu0 %v4889_v19, %s4392_s12  ;;  %434 = vst.msk [vmem:[#allocation2 + $0xd0] sm:$0xff] %vm19_vm0, %v368_v17  ;;  %v4928_v28 = vld [vmem:[#allocation2 + $0x88] sm:$0xff]  ;;  %v618_v17 = vpop.permute.xlu0 %617 }
 0x13b   :  { %436 = vst.msk [vmem:[#allocation2 + $0xf0] sm:$0xff] %vm19_vm0, %v370_v18  ;;  %v4930_v29 = vld [vmem:[#allocation2 + $0x70] sm:$0xff]  ;;  %v5144_v6 = vld [vmem:[#allocation2 + $0x87] sm:$0xff] }
 0x13c   :  { %438 = vst.msk [vmem:[#allocation2 + $0x110] sm:$0xff] %vm19_vm0, %v372_v20  ;;  %v4922_v27 = vld [vmem:[#allocation2 + $0x90] sm:$0xff] }
 0x13d   :  { %437 = vst.msk [vmem:[#allocation2 + $0x108] sm:$0xff] %vm19_vm0, %v371_v21  ;;  %v4952_v34 = vld [vmem:[#allocation2 + $0xb0] sm:$0xff] }
 0x13e   :  { %625 = vrot.lane.b32.xlu2 %v4901_v22, %s4392_s12  ;;  %439 = vst.msk [vmem:[#allocation2 + $0x128] sm:$0xff] %vm19_vm0, %v373_v24  ;;  %v4954_v35 = vld [vmem:[#allocation2 + $0xa8] sm:$0xff] }
 0x13f   :  { %621 = vrot.lane.b32.xlu1 %v4904_v23, %s4392_s12  ;;  %441 = vst.msk [vmem:[#allocation2 + $0x148] sm:$0xff] %vm19_vm0, %v375_v25  ;;  %v4946_v33 = vld [vmem:[#allocation2 + $0xc8] sm:$0xff] }
 0x140   :  { %440 = vst.msk [vmem:[#allocation2 + $0x130] sm:$0xff] %vm19_vm0, %v374_v26  ;;  %v4976_v40 = vld [vmem:[#allocation2 + $0xe8] sm:$0xff] }
 0x141   :  { %442 = vst.msk [vmem:[#allocation2 + $0x150] sm:$0xff] %vm19_vm0, %v376_v30  ;;  %v4978_v41 = vld [vmem:[#allocation2 + $0xd0] sm:$0xff]  ;;  %v5170_v16 = vld [vmem:[#allocation2 + $0xe7] sm:$0xff] }
 0x142   :  { %633 = vrot.lane.b32.xlu0 %v4922_v27, %s4392_s12  ;;  %444 = vst.msk [vmem:[#allocation2 + $0x170] sm:$0xff] %vm19_vm0, %v378_v31  ;;  %v4970_v39 = vld [vmem:[#allocation2 + $0xf0] sm:$0xff]  ;;  %v493_v25 = vld [vmem:[#allocation2 + $0x67] sm:$0xff] }
 0x143   :  { %443 = vst.msk [vmem:[#allocation2 + $0x168] sm:$0xff] %vm19_vm0, %v377_v32  ;;  %v5000_v46 = vld [vmem:[#allocation2 + $0x110] sm:$0xff] }
 0x144   :  { %445 = vst.msk [vmem:[#allocation2 + $0x188] sm:$0xff] %vm19_vm0, %v379_v36  ;;  %v5002_v47 = vld [vmem:[#allocation2 + $0x108] sm:$0xff] }
 0x145   :  { %447 = vst.msk [vmem:[#allocation2 + $0x1a8] sm:$0xff] %vm19_vm0, %v381_v37  ;;  %v4994_v45 = vld [vmem:[#allocation2 + $0x128] sm:$0xff] }
 0x146   :  { %631 = vrot.lane.b32.xlu2 %v4928_v28, %s4392_s12  ;;  %446 = vst.msk [vmem:[#allocation2 + $0x190] sm:$0xff] %vm19_vm0, %v380_v38  ;;  %v5020_v51 = vld [vmem:[#allocation2 + $0x148] sm:$0xff] }
 0x147   :  { %629 = vrot.lane.b32.xlu1 %v4930_v29, %s4392_s12  ;;  %448 = vst.msk [vmem:[#allocation2 + $0x1b0] sm:$0xff] %vm19_vm0, %v382_v42  ;;  %v5022_v52 = vld [vmem:[#allocation2 + $0x130] sm:$0xff]  ;;  %v5213_v42 = vld [vmem:[#allocation2 + $0x147] sm:$0xff] }
 0x148   :  { %450 = vst.msk [vmem:[#allocation2 + $0x1d0] sm:$0xff] %vm19_vm0, %v384_v43  ;;  %v5015_v50 = vld [vmem:[#allocation2 + $0x150] sm:$0xff] }
 0x149   :  { %449 = vst.msk [vmem:[#allocation2 + $0x1c8] sm:$0xff] %vm19_vm0, %v383_v44  ;;  %v5042_v54 = vld [vmem:[#allocation2 + $0x170] sm:$0xff]  ;;  %v497_v44 = vld [vmem:[#allocation2 + $0xa7] sm:$0xff] }
 0x14a   :  { %639 = vrot.lane.b32.xlu0 %v4946_v33, %s4392_s12  ;;  %451 = vst.msk [vmem:[#allocation2 + $0x1e8] sm:$0xff] %vm19_vm0, %v385_v48  ;;  %v5046_v55 = vld [vmem:[#allocation2 + $0x168] sm:$0xff] }
 0x14b   :  { %452 = vst.msk [vmem:[#allocation2 + $0x1f0] sm:$0xff] %vm19_vm0, %v386_v49  ;;  %v5030_v53 = vld [vmem:[#allocation2 + $0x188] sm:$0xff] }
 0x14c   :  { %24 = vst.msk [vmem:[#allocation2 + $0x18] sm:$0x1] %vm23_vm1, %v4391_v0  ;;  %v5070_v57 = vld [vmem:[#allocation2 + $0x1a8] sm:$0xff] }
 0x14d   :  { %28 = vst.msk [vmem:[#allocation2 + $0x38] sm:$0x1] %vm23_vm1, %v4391_v0  ;;  %v5074_v58 = vld [vmem:[#allocation2 + $0x190] sm:$0xff] }
 0x14e   :  { %637 = vrot.lane.b32.xlu2 %v4952_v34, %s4392_s12  ;;  %32 = vst.msk [vmem:[#allocation2 + $0x58] sm:$0x1] %vm23_vm1, %v4391_v0  ;;  %v5058_v56 = vld [vmem:[#allocation2 + $0x1b0] sm:$0xff] }
 0x14f   :  { %635 = vrot.lane.b32.xlu1 %v4954_v35, %s4392_s12  ;;  %36 = vst.msk [vmem:[#allocation2 + $0x78] sm:$0x1] %vm23_vm1, %v4391_v0  ;;  %v5098_v60 = vld [vmem:[#allocation2 + $0x1d0] sm:$0xff] }
 0x150   :  { %40 = vst.msk [vmem:[#allocation2 + $0x98] sm:$0x1] %vm23_vm1, %v4391_v0  ;;  %v5102_v61 = vld [vmem:[#allocation2 + $0x1c8] sm:$0xff] }
 0x151   :  { %44 = vst.msk [vmem:[#allocation2 + $0xb8] sm:$0x1] %vm23_vm1, %v4391_v0  ;;  %v5086_v59 = vld [vmem:[#allocation2 + $0x1e8] sm:$0xff] }
 0x152   :  { %645 = vrot.lane.b32.xlu0 %v4970_v39, %s4392_s12  ;;  %48 = vst.msk [vmem:[#allocation2 + $0xd8] sm:$0x1] %vm23_vm1, %v4391_v0  ;;  %v5125_v1 = vld [vmem:[#allocation2 + $0x1f0] sm:$0xff] }
 0x153   :  { %52 = vst.msk [vmem:[#allocation2 + $0xf8] sm:$0x1] %vm23_vm1, %v4391_v0  ;;  %v745_v62 = vld [vmem:[#allocation2 + $0x11] sm:$0xff]  ;;  %v5138_v3 = vld [vmem:[#allocation2 + $0x49] sm:$0xff] }
 0x154   :  { %56 = vst.msk [vmem:[#allocation2 + $0x118] sm:$0x1] %vm23_vm1, %v4391_v0  ;;  %v492_v4 = vld [vmem:[#allocation2 + $0x4f] sm:$0xff] }
 0x155   :  { %60 = vst.msk [vmem:[#allocation2 + $0x138] sm:$0x1] %vm23_vm1, %v4391_v0  ;;  %v5149_v8 = vld [vmem:[#allocation2 + $0x31] sm:$0xff]  ;;  %v5152_v9 = vld [vmem:[#allocation2 + $0x29] sm:$0xff] }
 0x156   :  { %643 = vrot.lane.b32.xlu2 %v4976_v40, %s4392_s12  ;;  %64 = vst.msk [vmem:[#allocation2 + $0x158] sm:$0x1] %vm23_vm1, %v4391_v0  ;;  %v5156_v10 = vld [vmem:[#allocation2 + $0xaf] sm:$0xff] }
 0x157   :  { %641 = vrot.lane.b32.xlu1 %v4978_v41, %s4392_s12  ;;  %68 = vst.msk [vmem:[#allocation2 + $0x178] sm:$0x1] %vm23_vm1, %v4391_v0  ;;  %v5164_v11 = vld [vmem:[#allocation2 + $0x71] sm:$0xff]  ;;  %v5175_v20 = vld [vmem:[#allocation2 + $0x69] sm:$0xff] }
 0x158   :  { %72 = vst.msk [vmem:[#allocation2 + $0x198] sm:$0x1] %vm23_vm1, %v4391_v0  ;;  %v488_v12 = vld [vmem:[#allocation2 + $0xf] sm:$0xff] }
 0x159   :  { %76 = vst.msk [vmem:[#allocation2 + $0x1b8] sm:$0x1] %vm23_vm1, %v4391_v0  ;;  %v490_v18 = vld [vmem:[#allocation2 + $0x2f] sm:$0xff] }
 0x15a   :  { %651 = vrot.lane.b32.xlu0 %v4994_v45, %s4392_s12  ;;  %80 = vst.msk [vmem:[#allocation2 + $0x1d8] sm:$0x1] %vm23_vm1, %v4391_v0  ;;  %v5178_v21 = vld [vmem:[#allocation2 + $0x51] sm:$0xff]  ;;  %v5188_v24 = vld [vmem:[#allocation2 + $0xa9] sm:$0xff] }
 0x15b   :  { %84 = vst.msk [vmem:[#allocation2 + $0x1f8] sm:$0x1] %vm23_vm1, %v4391_v0  ;;  %v5190_v26 = vld [vmem:[#allocation2 + $0x10f] sm:$0xff] }
 0x15c   :  { %88 = vst.msk [vmem:[#allocation2 + $0x218] sm:$0x1] %vm23_vm1, %v4391_v0  ;;  %v494_v31 = vld [vmem:[#allocation2 + $0x6f] sm:$0xff] }
 0x15d   :  { %92 = vst.msk [vmem:[#allocation2 + $0x238] sm:$0x1] %vm23_vm1, %v4391_v0  ;;  %v5199_v32 = vld [vmem:[#allocation2 + $0x91] sm:$0xff]  ;;  %v5202_v36 = vld [vmem:[#allocation2 + $0x89] sm:$0xff] }
 0x15e   :  { %649 = vrot.lane.b32.xlu2 %v5000_v46, %s4392_s12  ;;  %96 = vst.msk [vmem:[#allocation2 + $0x258] sm:$0x1] %vm23_vm1, %v4391_v0  ;;  %v5211_v37 = vld [vmem:[#allocation2 + $0xd1] sm:$0xff]  ;;  %v5222_v48 = vld [vmem:[#allocation2 + $0xc9] sm:$0xff] }
 0x15f   :  { %647 = vrot.lane.b32.xlu1 %v5002_v47, %s4392_s12  ;;  %100 = vst.msk [vmem:[#allocation2 + $0x278] sm:$0x1] %vm23_vm1, %v4391_v0  ;;  %v496_v38 = vld [vmem:[#allocation2 + $0x8f] sm:$0xff] }
 0x160   :  { %104 = vst.msk [vmem:[#allocation2 + $0x298] sm:$0x1] %vm23_vm1, %v4391_v0  ;;  %v5225_v49 = vld [vmem:[#allocation2 + $0xb1] sm:$0xff] }
 0x161   :  { %108 = vst.msk [vmem:[#allocation2 + $0x2b8] sm:$0x1] %vm23_vm1, %v4391_v0 }
 0x162   :  { %657 = vrot.lane.b32.xlu0 %v5015_v50, %s4392_s12  ;;  %112 = vst.msk [vmem:[#allocation2 + $0x2d8] sm:$0x1] %vm23_vm1, %v4391_v0 }
 0x163   :  { %116 = vst.msk [vmem:[#allocation2 + $0x2f8] sm:$0x1] %vm23_vm1, %v4391_v0 }
 0x164   :  { %120 = vst.msk [vmem:[#allocation2 + $0x318] sm:$0x1] %vm23_vm1, %v4391_v0 }
 0x165   :  { %124 = vst.msk [vmem:[#allocation2 + $0x338] sm:$0x1] %vm23_vm1, %v4391_v0 }
 0x166   :  { %655 = vrot.lane.b32.xlu2 %v5020_v51, %s4392_s12  ;;  %128 = vst.msk [vmem:[#allocation2 + $0x358] sm:$0x1] %vm23_vm1, %v4391_v0 }
 0x167   :  { %653 = vrot.lane.b32.xlu1 %v5022_v52, %s4392_s12  ;;  %132 = vst.msk [vmem:[#allocation2 + $0x378] sm:$0x1] %vm23_vm1, %v4391_v0 }
 0x168   :  { %136 = vst.msk [vmem:[#allocation2 + $0x398] sm:$0x1] %vm23_vm1, %v4391_v0 }
 0x169   :  { %140 = vst.msk [vmem:[#allocation2 + $0x3b8] sm:$0x1] %vm23_vm1, %v4391_v0 }
 0x16a   :  { %663 = vrot.lane.b32.xlu0 %v5030_v53, %s4392_s12  ;;  %144 = vst.msk [vmem:[#allocation2 + $0x3d8] sm:$0x1] %vm23_vm1, %v4391_v0 }
 0x16b   :  { %148 = vst.msk [vmem:[#allocation2 + $0x3f8] sm:$0x1] %vm23_vm1, %v4391_v0 }
 0x16c   :  { %152 = vst.msk [vmem:[#allocation2 + $0x418] sm:$0x1] %vm23_vm1, %v4391_v0 }
 0x16d   :  { %156 = vst.msk [vmem:[#allocation2 + $0x438] sm:$0x1] %vm23_vm1, %v4391_v0 }
 0x16e   :  { %661 = vrot.lane.b32.xlu2 %v5042_v54, %s4392_s12  ;;  %160 = vst.msk [vmem:[#allocation2 + $0x458] sm:$0x1] %vm23_vm1, %v4391_v0 }
 0x16f   :  { %659 = vrot.lane.b32.xlu1 %v5046_v55, %s4392_s12  ;;  %164 = vst.msk [vmem:[#allocation2 + $0x478] sm:$0x1] %vm23_vm1, %v4391_v0  ;;  %v489_v0 = vld [vmem:[#allocation2 + $0x27] sm:$0xff] }
 0x170   :  { %523 = vst.msk [vmem:[#allocation3 + $0x60] sm:$0xff] %vm19_vm0, %v491_v2 }
 0x171   :  { %524 = vst.msk [vmem:[#allocation3 + $0x78] sm:$0xff] %vm19_vm0, %v492_v4 }
 0x172   :  { %669 = vrot.lane.b32.xlu0 %v5058_v56, %s4392_s12  ;;  %527 = vst.msk [vmem:[#allocation3 + $0xc0] sm:$0xff] %vm19_vm0, %v5144_v6 }
 0x173   :  { %519 = vst.msk [vmem:[#allocation3] sm:$0xff] %vm19_vm0, %v487_v7  ;;  %v5246_v7 = vld [vmem:[#allocation2 + $0xf1] sm:$0xff] }
 0x174   :  { %712 = vst.msk [vmem:[#allocation3] sm:$0xff] %vm711_vm2, %v616_v5 }
 0x175   :  { %530 = vst.msk [vmem:[#allocation3 + $0x108] sm:$0xff] %vm19_vm0, %v5156_v10 }
 0x176   :  { %667 = vrot.lane.b32.xlu2 %v5070_v57, %s4392_s12  ;;  %521 = vst.msk [vmem:[#allocation3 + $0x30] sm:$0xff] %vm19_vm0, %v489_v0 }
 0x177   :  { %665 = vrot.lane.b32.xlu1 %v5074_v58, %s4392_s12  ;;  %520 = vst.msk [vmem:[#allocation3 + $0x18] sm:$0xff] %vm19_vm0, %v488_v12  ;;  %v5259_v12 = vld [vmem:[#allocation2 + $0x131] sm:$0xff] }
 0x178   :  { %713 = vst.msk [vmem:[#allocation3 + $0x18] sm:$0xff] %vm711_vm2, %v618_v17 }
 0x179   :  { %533 = vst.msk [vmem:[#allocation3 + $0x150] sm:$0xff] %vm19_vm0, %v5170_v16 }
 0x17a   :  { %675 = vrot.lane.b32.xlu0 %v5086_v59, %s4392_s12  ;;  %522 = vst.msk [vmem:[#allocation3 + $0x48] sm:$0xff] %vm19_vm0, %v490_v18 }
 0x17b   :  { %970 = vst.msk [vmem:[#allocation3 + $0x20] sm:$0xff] %vm19_vm0, %v490_v18  ;;  %v5263_v18 = vld [vmem:[#allocation2 + $0x1a7] sm:$0xff] }
 0x17c   :  { %969 = vst.msk [vmem:[#allocation3 + $0x8] sm:$0xff] %vm19_vm0, %v489_v0 }
 0x17d   :  { %525 = vst.msk [vmem:[#allocation3 + $0x90] sm:$0xff] %vm19_vm0, %v493_v25 }
 0x17e   :  { %673 = vrot.lane.b32.xlu2 %v5098_v60, %s4392_s12  ;;  %536 = vst.msk [vmem:[#allocation3 + $0x198] sm:$0xff] %vm19_vm0, %v5190_v26 }
 0x17f   :  { %671 = vrot.lane.b32.xlu1 %v5102_v61, %s4392_s12  ;;  %526 = vst.msk [vmem:[#allocation3 + $0xa8] sm:$0xff] %vm19_vm0, %v494_v31 }
 0x180   :  { %973 = vst.msk [vmem:[#allocation3 + $0x68] sm:$0xff] %vm19_vm0, %v493_v25 }
 0x181   :  { %971 = vst.msk [vmem:[#allocation3 + $0x38] sm:$0xff] %vm19_vm0, %v491_v2 }
 0x182   :  { %810 = vrot.lane.b32.xlu0 %v745_v62, %s4393_s21  ;;  %972 = vst.msk [vmem:[#allocation3 + $0x50] sm:$0xff] %vm19_vm0, %v492_v4  ;;  %v5235_v62 = vld [vmem:[#allocation2 + $0x109] sm:$0xff] }
 0x183   :  { %974 = vst.msk [vmem:[#allocation3 + $0x80] sm:$0xff] %vm19_vm0, %v494_v31  ;;  %v5240_v4 = vld [vmem:[#allocation2 + $0x16f] sm:$0xff] }
 0x184   :  { %528 = vst.msk [vmem:[#allocation3 + $0xd8] sm:$0xff] %vm19_vm0, %v496_v38  ;;  %v5269_v31 = vld [vmem:[#allocation2 + $0x129] sm:$0xff] }
 0x185   :  { %539 = vst.msk [vmem:[#allocation3 + $0x1e0] sm:$0xff] %vm19_vm0, %v5213_v42 }
 0x186   :  { %808 = vrot.lane.b32.xlu2 %v744_v63, %s4393_s21  ;;  %529 = vst.msk [vmem:[#allocation3 + $0xf0] sm:$0xff] %vm19_vm0, %v497_v44  ;;  %v499_v63 = vld [vmem:[#allocation2 + $0xc7] sm:$0xff] }
 0x187   :  { %677 = vrot.lane.b32.xlu1 %v5125_v1, %s4392_s12  ;;  %976 = vst.msk [vmem:[#allocation3 + $0xb0] sm:$0xff] %vm19_vm0, %v496_v38  ;;  %v5273_v38 = vld [vmem:[#allocation2 + $0x111] sm:$0xff] }
 0x188   :  { %975 = vst.msk [vmem:[#allocation3 + $0x98] sm:$0xff] %vm19_vm0, %v5144_v6  ;;  %v500_v6 = vld [vmem:[#allocation2 + $0xcf] sm:$0xff] }
 0x189   :  { %977 = vst.msk [vmem:[#allocation3 + $0xc8] sm:$0xff] %vm19_vm0, %v497_v44  ;;  %v5282_v44 = vld [vmem:[#allocation2 + $0x169] sm:$0xff] }
 0x18a   :  { %816 = vrot.lane.b32.xlu0 %v5138_v3, %s4393_s21  ;;  %978 = vst.msk [vmem:[#allocation3 + $0xe0] sm:$0xff] %vm19_vm0, %v5156_v10  ;;  %v5250_v10 = vld [vmem:[#allocation2 + $0xe9] sm:$0xff] }
 0x18b   :  { %531 = vst.msk [vmem:[#allocation3 + $0x120] sm:$0xff] %vm19_vm0, %v499_v63 }
 0x18c   :  { %542 = vst.msk [vmem:[#allocation3 + $0x228] sm:$0xff] %vm19_vm0, %v5240_v4 }
 0x18d   :  { %532 = vst.msk [vmem:[#allocation3 + $0x138] sm:$0xff] %vm19_vm0, %v500_v6 }
 0x18e   :  { %814 = vrot.lane.b32.xlu2 %v5149_v8, %s4393_s21  ;;  %979 = vst.msk [vmem:[#allocation3 + $0xf8] sm:$0xff] %vm19_vm0, %v499_v63  ;;  %v505_v63 = vld [vmem:[#allocation2 + $0x127] sm:$0xff] }
 0x18f   :  { %812 = vrot.lane.b32.xlu1 %v5152_v9, %s4393_s21  ;;  %980 = vst.msk [vmem:[#allocation3 + $0x110] sm:$0xff] %vm19_vm0, %v500_v6 }
 0x190   :  { %v624_v14 = vpop.permute.xlu2 %623  ;;  %545 = vst.msk [vmem:[#allocation3 + $0x270] sm:$0xff] %vm19_vm0, %v5263_v18 }
 0x191   :  { %716 = vst.msk [vmem:[#allocation3 + $0x60] sm:$0xff] %vm711_vm2, %v624_v14  ;;  %v502_v14 = vld [vmem:[#allocation2 + $0xef] sm:$0xff] }
 0x192   :  { %822 = vrot.lane.b32.xlu0 %v5164_v11, %s4393_s21  ;;  %534 = vst.msk [vmem:[#allocation3 + $0x168] sm:$0xff] %vm19_vm0, %v502_v14 }
 0x193   :  { %982 = vst.msk [vmem:[#allocation3 + $0x140] sm:$0xff] %vm19_vm0, %v502_v14  ;;  %v5293_v14 = vld [vmem:[#allocation2 + $0x151] sm:$0xff] }
 0x194   :  { %7216 = vst [vmem:[#allocation7_spill] sm:$0xff] %v5282_v44 }
 0x195   :  { %981 = vst.msk [vmem:[#allocation3 + $0x128] sm:$0xff] %vm19_vm0, %v5170_v16  ;;  %v5297_v16 = vld [vmem:[#allocation2 + $0x149] sm:$0xff] }
 0x196   :  { %820 = vrot.lane.b32.xlu2 %v5175_v20, %s4393_s21  ;;  %537 = vst.msk [vmem:[#allocation3 + $0x1b0] sm:$0xff] %vm19_vm0, %v505_v63 }
 0x197   :  { %818 = vrot.lane.b32.xlu1 %v5178_v21, %s4393_s21  ;;  %7217 = vst [vmem:[#allocation8_spill] sm:$0xff] %v5293_v14 }
 0x198   :  { %v626_v30 = vpop.permute.xlu2 %625  ;;  %985 = vst.msk [vmem:[#allocation3 + $0x188] sm:$0xff] %vm19_vm0, %v505_v63  ;;  %v5320_v63 = vld [vmem:[#allocation2 + $0x189] sm:$0xff] }
 0x199   :  { %717 = vst.msk [vmem:[#allocation3 + $0x78] sm:$0xff] %vm711_vm2, %v626_v30  ;;  %v503_v30 = vld [vmem:[#allocation2 + $0x107] sm:$0xff] }
 0x19a   :  { %828 = vrot.lane.b32.xlu0 %v5188_v24, %s4393_s21  ;;  %535 = vst.msk [vmem:[#allocation3 + $0x180] sm:$0xff] %vm19_vm0, %v503_v30 }
 0x19b   :  { %983 = vst.msk [vmem:[#allocation3 + $0x158] sm:$0xff] %vm19_vm0, %v503_v30  ;;  %v3387_v30 = vld [vmem:[%s7203_s1 + $0x70] sm:$0xff] }
 0x19c   :  { %7219 = vst [vmem:[#allocation10_spill] sm:$0xff] %v5320_v63 }
 0x19d   :  { %984 = vst.msk [vmem:[#allocation3 + $0x170] sm:$0xff] %vm19_vm0, %v5190_v26 }
 0x19e   :  { %826 = vrot.lane.b32.xlu2 %v5199_v32, %s4393_s21  ;;  %987 = vst.msk [vmem:[#allocation3 + $0x1b8] sm:$0xff] %vm19_vm0, %v5213_v42 }
 0x19f   :  { %824 = vrot.lane.b32.xlu1 %v5202_v36, %s4393_s21  ;;  %990 = vst.msk [vmem:[#allocation3 + $0x200] sm:$0xff] %vm19_vm0, %v5240_v4  ;;  %v3376_v4 = vld [vmem:[%s7203_s1 + $0x18] sm:$0xff] }
 0x1a0   :  { %v632_v43 = vpop.permute.xlu2 %631  ;;  %993 = vst.msk [vmem:[#allocation3 + $0x248] sm:$0xff] %vm19_vm0, %v5263_v18 }
 0x1a1   :  { %720 = vst.msk [vmem:[#allocation3 + $0xc0] sm:$0xff] %vm711_vm2, %v632_v43 }
 0x1a2   :  { %834 = vrot.lane.b32.xlu0 %v5211_v37, %s4393_s21 }
 0x1a6   :  { %832 = vrot.lane.b32.xlu2 %v5222_v48, %s4393_s21 }
 0x1a7   :  { %830 = vrot.lane.b32.xlu1 %v5225_v49, %s4393_s21 }
 0x1a8   :  { %v638_v2 = vpop.permute.xlu2 %637 }
 0x1a9   :  { %723 = vst.msk [vmem:[#allocation3 + $0x108] sm:$0xff] %vm711_vm2, %v638_v2  ;;  %v620_v5 = vpop.permute.xlu1 %619 }
 0x1aa   :  { %714 = vst.msk [vmem:[#allocation3 + $0x30] sm:$0xff] %vm711_vm2, %v620_v5  ;;  %840 = vrot.lane.b32.xlu0 %v5235_v62, %s4393_s21  ;;  %v5287_v5 = vld [vmem:[#allocation2 + $0x1cf] sm:$0xff] }
 0x1ab   :  { %548 = vst.msk [vmem:[#allocation3 + $0x2b8] sm:$0xff] %vm19_vm0, %v5287_v5 }
 0x1ac   :  { %v628_v0 = vpop.permute.xlu0 %627  ;;  %996 = vst.msk [vmem:[#allocation3 + $0x290] sm:$0xff] %vm19_vm0, %v5287_v5 }
 0x1ad   :  { %718 = vst.msk [vmem:[#allocation3 + $0x90] sm:$0xff] %vm711_vm2, %v628_v0  ;;  %v506_v0 = vld [vmem:[#allocation2 + $0x12f] sm:$0xff] }
 0x1ae   :  { %838 = vrot.lane.b32.xlu2 %v5246_v7, %s4393_s21  ;;  %538 = vst.msk [vmem:[#allocation3 + $0x1c8] sm:$0xff] %vm19_vm0, %v506_v0 }
 0x1af   :  { %836 = vrot.lane.b32.xlu1 %v5250_v10, %s4393_s21  ;;  %986 = vst.msk [vmem:[#allocation3 + $0x1a0] sm:$0xff] %vm19_vm0, %v506_v0  ;;  %v3383_v0 = vld [vmem:[%s7203_s1 + $0x50] sm:$0xff] }
 0x1b0   :  { %v644_v17 = vpop.permute.xlu2 %643 }
 0x1b1   :  { %726 = vst.msk [vmem:[#allocation3 + $0x150] sm:$0xff] %vm711_vm2, %v644_v17  ;;  %v622_v25 = vpop.permute.xlu1 %621 }
 0x1b2   :  { %715 = vst.msk [vmem:[#allocation3 + $0x48] sm:$0xff] %vm711_vm2, %v622_v25  ;;  %846 = vrot.lane.b32.xlu0 %v5259_v12, %s4393_s21  ;;  %v5306_v25 = vld [vmem:[#allocation2 + $0x191] sm:$0xff] }
 0x1b3   :  { %7218 = vst [vmem:[#allocation9_spill] sm:$0xff] %v5306_v25 }
 0x1b4   :  { %v634_v43 = vpop.permute.xlu0 %633 }
 0x1b5   :  { %721 = vst.msk [vmem:[#allocation3 + $0xd8] sm:$0xff] %vm711_vm2, %v634_v43  ;;  %v508_v43 = vld [vmem:[#allocation2 + $0x14f] sm:$0xff] }
 0x1b6   :  { %844 = vrot.lane.b32.xlu2 %v5269_v31, %s4393_s21  ;;  %540 = vst.msk [vmem:[#allocation3 + $0x1f8] sm:$0xff] %vm19_vm0, %v508_v43 }
 0x1b7   :  { %842 = vrot.lane.b32.xlu1 %v5273_v38, %s4393_s21  ;;  %988 = vst.msk [vmem:[#allocation3 + $0x1d0] sm:$0xff] %vm19_vm0, %v508_v43  ;;  %v511_v43 = vld [vmem:[#allocation2 + $0x187] sm:$0xff] }
 0x1b8   :  { %v650_v2 = vpop.permute.xlu2 %649  ;;  %543 = vst.msk [vmem:[#allocation3 + $0x240] sm:$0xff] %vm19_vm0, %v511_v43 }
 0x1b9   :  { %729 = vst.msk [vmem:[#allocation3 + $0x198] sm:$0xff] %vm711_vm2, %v650_v2  ;;  %v630_v6 = vpop.permute.xlu1 %629 }
 0x1ba   :  { %719 = vst.msk [vmem:[#allocation3 + $0xa8] sm:$0xff] %vm711_vm2, %v630_v6  ;;  %852 = vrot.lane.b32.xlu0 %v5282_v44, %s4393_s21  ;;  %v509_v6 = vld [vmem:[#allocation2 + $0x167] sm:$0xff]  ;;  %v5326_v44 = vld [vmem:[#allocation2 + $0x171] sm:$0xff] }
 0x1bb   :  { %541 = vst.msk [vmem:[#allocation3 + $0x210] sm:$0xff] %vm19_vm0, %v509_v6 }
 0x1bc   :  { %v640_v17 = vpop.permute.xlu0 %639  ;;  %991 = vst.msk [vmem:[#allocation3 + $0x218] sm:$0xff] %vm19_vm0, %v511_v43  ;;  %v514_v43 = vld [vmem:[#allocation2 + $0x1af] sm:$0xff] }
 0x1bd   :  { %724 = vst.msk [vmem:[#allocation3 + $0x120] sm:$0xff] %vm711_vm2, %v640_v17 }
 0x1be   :  { %850 = vrot.lane.b32.xlu2 %v5293_v14, %s4393_s21  ;;  %v3388_v14 = vld [vmem:[%s7203_s1 + $0x78] sm:$0xff]  ;;  %989 = vst.msk [vmem:[#allocation3 + $0x1e8] sm:$0xff] %vm19_vm0, %v509_v6  ;;  %v3379_v6 = vld [vmem:[%s7203_s1 + $0x30] sm:$0xff] }
 0x1bf   :  { %848 = vrot.lane.b32.xlu1 %v5297_v16, %s4393_s21  ;;  %3421 = vmatpush.msra.mxu0 %v3388_v14  ;;  %546 = vst.msk [vmem:[#allocation3 + $0x288] sm:$0xff] %vm19_vm0, %v514_v43 }
 0x1c0   :  { %v656_v2 = vpop.permute.xlu2 %655  ;;  %4291 = vmatpush.msra.mxu3 %v3388_v14  ;;  %v5336_v14 = vld [vmem:[#allocation2 + $0x1c9] sm:$0xff]  ;;  %994 = vst.msk [vmem:[#allocation3 + $0x260] sm:$0xff] %vm19_vm0, %v514_v43 }
 0x1c1   :  { %732 = vst.msk [vmem:[#allocation3 + $0x1e0] sm:$0xff] %vm711_vm2, %v656_v2  ;;  %v636_v17 = vpop.permute.xlu1 %635  ;;  %v3386_v2 = vld [vmem:[%s7203_s1 + $0x68] sm:$0xff]  ;;  %3422 = vmatpush.msra.mxu0 %v3387_v30 }
 0x1c2   :  { %722 = vst.msk [vmem:[#allocation3 + $0xf0] sm:$0xff] %vm711_vm2, %v636_v17  ;;  %858 = vrot.lane.b32.xlu0 %v5306_v25, %s4393_s21  ;;  %4292 = vmatpush.msra.mxu3 %v3387_v30  ;;  %v3385_v25 = vld [vmem:[%s7203_s1 + $0x60] sm:$0xff] }
 0x1c3   :  { %3423 = vmatpush.msra.mxu0 %v3386_v2  ;;  %7220 = vst [vmem:[#allocation11_spill] sm:$0xff] %v5336_v14 }
 0x1c4   :  { %v646_v17 = vpop.permute.xlu0 %645  ;;  %4293 = vmatpush.msra.mxu3 %v3386_v2  ;;  %v5353_v2 = vld [vmem:[#allocation2 + $0x1b1] sm:$0xff] }
 0x1c5   :  { %727 = vst.msk [vmem:[#allocation3 + $0x168] sm:$0xff] %vm711_vm2, %v646_v17  ;;  %3424 = vmatpush.msra.mxu0 %v3385_v25  ;;  %v512_v17 = vld [vmem:[#allocation2 + $0x18f] sm:$0xff] }
 0x1c6   :  { %856 = vrot.lane.b32.xlu2 %v5320_v63, %s4393_s21  ;;  %v3384_v63 = vld [vmem:[%s7203_s1 + $0x58] sm:$0xff]  ;;  %4294 = vmatpush.msra.mxu3 %v3385_v25  ;;  %7221 = vst [vmem:[#allocation12_spill] sm:$0xff] %v5353_v2  ;;  %v5359_v25 = vld [vmem:[#allocation2 + $0x1a9] sm:$0xff] }
 0x1c7   :  { %854 = vrot.lane.b32.xlu1 %v5326_v44, %s4393_s21  ;;  %3425 = vmatpush.msra.mxu0 %v3384_v63  ;;  %544 = vst.msk [vmem:[#allocation3 + $0x258] sm:$0xff] %vm19_vm0, %v512_v17 }
 0x1c8   :  { %v662_v30 = vpop.permute.xlu2 %661  ;;  %4295 = vmatpush.msra.mxu3 %v3384_v63  ;;  %v5369_v63 = vld [vmem:[#allocation2 + $0x1f1] sm:$0xff]  ;;  %992 = vst.msk [vmem:[#allocation3 + $0x230] sm:$0xff] %vm19_vm0, %v512_v17 }
 0x1c9   :  { %735 = vst.msk [vmem:[#allocation3 + $0x228] sm:$0xff] %vm711_vm2, %v662_v30  ;;  %v642_v26 = vpop.permute.xlu1 %641  ;;  %v3382_v30 = vld [vmem:[%s7203_s1 + $0x48] sm:$0xff]  ;;  %3426 = vmatpush.msra.mxu0 %v3383_v0  ;;  %v3375_v17 = vld [vmem:[%s7203_s1 + $0x10] sm:$0xff] }
 0x1ca   :  { %725 = vst.msk [vmem:[#allocation3 + $0x138] sm:$0xff] %vm711_vm2, %v642_v26  ;;  %864 = vrot.lane.b32.xlu0 %v5336_v14, %s4393_s21  ;;  %4296 = vmatpush.msra.mxu3 %v3383_v0  ;;  %v3381_v14 = vld [vmem:[%s7203_s1 + $0x40] sm:$0xff] }
 0x1cb   :  { %3427 = vmatpush.msra.mxu0 %v3382_v30  ;;  %7222 = vst [vmem:[#allocation13_spill] sm:$0xff] %v5369_v63 }
 0x1cc   :  { %v652_v26 = vpop.permute.xlu0 %651  ;;  %4297 = vmatpush.msra.mxu3 %v3382_v30  ;;  %v5386_v30 = vld [vmem:[#allocation2 + $0x1e9] sm:$0xff] }
 0x1cd   :  { %730 = vst.msk [vmem:[#allocation3 + $0x1b0] sm:$0xff] %vm711_vm2, %v652_v26  ;;  %3428 = vmatpush.msra.mxu0 %v3381_v14  ;;  %v515_v26 = vld [vmem:[#allocation2 + $0x1c7] sm:$0xff] }
 0x1ce   :  { %862 = vrot.lane.b32.xlu2 %v5353_v2, %s4393_s21  ;;  %v3380_v2 = vld [vmem:[%s7203_s1 + $0x38] sm:$0xff]  ;;  %4298 = vmatpush.msra.mxu3 %v3381_v14  ;;  %547 = vst.msk [vmem:[#allocation3 + $0x2a0] sm:$0xff] %vm19_vm0, %v515_v26 }
 0x1cf   :  { %860 = vrot.lane.b32.xlu1 %v5359_v25, %s4393_s21  ;;  %3429 = vmatpush.msra.mxu0 %v3380_v2  ;;  %v5392_v14 = vld [vmem:[#allocation2 + $0x1d1] sm:$0xff]  ;;  %995 = vst.msk [vmem:[#allocation3 + $0x278] sm:$0xff] %vm19_vm0, %v515_v26 }
 0x1d0   :  { %v668_v0 = vpop.permute.xlu2 %667  ;;  %4299 = vmatpush.msra.mxu3 %v3380_v2  ;;  %v3377_v2 = vld [vmem:[%s7203_s1 + $0x20] sm:$0xff] }
 0x1d1   :  { %738 = vst.msk [vmem:[#allocation3 + $0x270] sm:$0xff] %vm711_vm2, %v668_v0  ;;  %v648_v42 = vpop.permute.xlu1 %647  ;;  %v3378_v0 = vld [vmem:[%s7203_s1 + $0x28] sm:$0xff]  ;;  %3430 = vmatpush.msra.mxu0 %v3379_v6 }
 0x1d2   :  { %728 = vst.msk [vmem:[#allocation3 + $0x180] sm:$0xff] %vm711_vm2, %v648_v42  ;;  %870 = vrot.lane.b32.xlu0 %v5369_v63, %s4393_s21  ;;  %4300 = vmatpush.msra.mxu3 %v3379_v6  ;;  %v517_v63 = vld [vmem:[#allocation2 + $0x1e7] sm:$0xff]  ;;  %v518_v6 = vld [vmem:[#allocation2 + $0x1ef] sm:$0xff] }
 0x1d3   :  { %3431 = vmatpush.msra.mxu0 %v3378_v0  ;;  %549 = vst.msk [vmem:[#allocation3 + $0x2d0] sm:$0xff] %vm19_vm0, %v517_v63 }
 0x1d4   :  { %v658_v42 = vpop.permute.xlu0 %657  ;;  %4301 = vmatpush.msra.mxu3 %v3378_v0  ;;  %550 = vst.msk [vmem:[#allocation3 + $0x2e8] sm:$0xff] %vm19_vm0, %v518_v6  ;;  %v3374_v0 = vld [vmem:[%s7203_s1 + $0x8] sm:$0xff] }
 0x1d5   :  { %733 = vst.msk [vmem:[#allocation3 + $0x1f8] sm:$0xff] %vm711_vm2, %v658_v42  ;;  %3432 = vmatpush.msra.mxu0 %v3377_v2 }
 0x1d6   :  { %868 = vrot.lane.b32.xlu2 %v5386_v30, %s4393_s21  ;;  %4302 = vmatpush.msra.mxu3 %v3377_v2  ;;  %997 = vst.msk [vmem:[#allocation3 + $0x2a8] sm:$0xff] %vm19_vm0, %v517_v63 }
 0x1d7   :  { %866 = vrot.lane.b32.xlu1 %v5392_v14, %s4393_s21  ;;  %3433 = vmatpush.msra.mxu0 %v3376_v4  ;;  %998 = vst.msk [vmem:[#allocation3 + $0x2c0] sm:$0xff] %vm19_vm0, %v518_v6 }
 0x1d8   :  { %v674_v43 = vpop.permute.xlu2 %673  ;;  %4303 = vmatpush.msra.mxu3 %v3376_v4 }
 0x1d9   :  { %741 = vst.msk [vmem:[#allocation3 + $0x2b8] sm:$0xff] %vm711_vm2, %v674_v43  ;;  %v654_v42 = vpop.permute.xlu1 %653  ;;  %3434 = vmatpush.msra.mxu0 %v3375_v17 }
 0x1da   :  { %731 = vst.msk [vmem:[#allocation3 + $0x1c8] sm:$0xff] %vm711_vm2, %v654_v42  ;;  %1069 = vrot.lane.b32.xlu0 %v4865_v13, %s4392_s12  ;;  %4304 = vmatpush.msra.mxu3 %v3375_v17  ;;  %v3373_v13 = vld [vmem:[%s7203_s1] sm:$0xff] }
 0x1db   :  { %3435 = vmatpush.msra.mxu0 %v3374_v0 }
 0x1dc   :  { %v664_v43 = vpop.permute.xlu0 %663  ;;  %4305 = vmatpush.msra.mxu3 %v3374_v0 }
 0x1dd   :  { %736 = vst.msk [vmem:[#allocation3 + $0x240] sm:$0xff] %vm711_vm2, %v664_v43  ;;  %3436 = vmatpush.msra.mxu0 %v3373_v13 }
 0x1de   :  { %1067 = vrot.lane.b32.xlu2 %v4904_v23, %s4392_s12  ;;  %4306 = vmatpush.msra.mxu3 %v3373_v13 }
 0x1df   :  { %1065 = vrot.lane.b32.xlu1 %v4873_v15, %s4392_s12 }
 0x1e0   :  { %v809_v63 = vpop.permute.xlu2 %808 }
 0x1e1   :  { %v660_v23 = vpop.permute.xlu1 %659  ;;  %905 = vst.msk [vmem:[#allocation3] sm:$0xff] %vm904_vm3, %v809_v63 }
 0x1e2   :  { %734 = vst.msk [vmem:[#allocation3 + $0x210] sm:$0xff] %vm711_vm2, %v660_v23  ;;  %1075 = vrot.lane.b32.xlu0 %v4930_v29, %s4392_s12 }
 0x1e4   :  { %v670_v15 = vpop.permute.xlu0 %669 }
 0x1e5   :  { %739 = vst.msk [vmem:[#allocation3 + $0x288] sm:$0xff] %vm711_vm2, %v670_v15 }
 0x1e6   :  { %1073 = vrot.lane.b32.xlu2 %v4889_v19, %s4392_s12 }
 0x1e7   :  { %1071 = vrot.lane.b32.xlu1 %v4901_v22, %s4392_s12 }
 0x1e8   :  { %v815_v18 = vpop.permute.xlu2 %814  ;;  %v3181_v5 = vld [vmem:[#allocation3] sm:$0xff] }
 0x1e9   :  { %v666_v26 = vpop.permute.xlu1 %665  ;;  %908 = vst.msk [vmem:[#allocation3 + $0x48] sm:$0xff] %vm904_vm3, %v815_v18  ;;  %3437 = vmatmul.f32.vlgmr.msra.gmra.mxu0 %v3181_v5 }
 0x1ea   :  { %737 = vst.msk [vmem:[#allocation3 + $0x258] sm:$0xff] %vm711_vm2, %v666_v26  ;;  %1081 = vrot.lane.b32.xlu0 %v4954_v35, %s4392_s12 }
 0x1ec   :  { %v676_v29 = vpop.permute.xlu0 %675 }
 0x1ed   :  { %742 = vst.msk [vmem:[#allocation3 + $0x2d0] sm:$0xff] %vm711_vm2, %v676_v29 }
 0x1ee   :  { %1079 = vrot.lane.b32.xlu2 %v4922_v27, %s4392_s12 }
 0x1ef   :  { %1077 = vrot.lane.b32.xlu1 %v4928_v28, %s4392_s12 }
 0x1f0   :  { %v821_v19 = vpop.permute.xlu2 %820  ;;  %v3190_v17 = vld [vmem:[#allocation3 + $0x48] sm:$0xff] }
 0x1f1   :  { %v672_v22 = vpop.permute.xlu1 %671  ;;  %911 = vst.msk [vmem:[#allocation3 + $0x90] sm:$0xff] %vm904_vm3, %v821_v19 }
 0x1f2   :  { %740 = vst.msk [vmem:[#allocation3 + $0x2a0] sm:$0xff] %vm711_vm2, %v672_v22  ;;  %1087 = vrot.lane.b32.xlu0 %v4978_v41, %s4392_s12 }
 0x1f4   :  { %v811_v2 = vpop.permute.xlu0 %810 }
 0x1f5   :  { %906 = vst.msk [vmem:[#allocation3 + $0x18] sm:$0xff] %vm904_vm3, %v811_v2 }
 0x1f6   :  { %1085 = vrot.lane.b32.xlu2 %v4946_v33, %s4392_s12 }
 0x1f7   :  { %1083 = vrot.lane.b32.xlu1 %v4952_v34, %s4392_s12 }
 0x1f8   :  { %v827_v27 = vpop.permute.xlu2 %826  ;;  %v3199_v13 = vld [vmem:[#allocation3 + $0x90] sm:$0xff] }
 0x1f9   :  { %v678_v28 = vpop.permute.xlu1 %677  ;;  %914 = vst.msk [vmem:[#allocation3 + $0xd8] sm:$0xff] %vm904_vm3, %v827_v27 }
 0x1fa   :  { %743 = vst.msk [vmem:[#allocation3 + $0x2e8] sm:$0xff] %vm711_vm2, %v678_v28  ;;  %1093 = vrot.lane.b32.xlu0 %v5002_v47, %s4392_s12  ;;  %v7223_v28 = vld [vmem:[#allocation7_spill] sm:$0xff] }
 0x1fc   :  { %v817_v35 = vpop.permute.xlu0 %816  ;;  %v3184_v41 = vld [vmem:[#allocation3 + $0x18] sm:$0xff] }
 0x1fd   :  { %909 = vst.msk [vmem:[#allocation3 + $0x60] sm:$0xff] %vm904_vm3, %v817_v35  ;;  %3440 = vmatmul.f32.gmra.mxu0 %v3184_v41 }
 0x1fe   :  { %1091 = vrot.lane.b32.xlu2 %v4970_v39, %s4392_s12  ;;  %v387_v39 = vld [vmem:[%s7202_s0 + $0xf0] sm:$0xff] }
 0x1ff   :  { %1089 = vrot.lane.b32.xlu1 %v4976_v40, %s4392_s12  ;;  %v388_v40 = vld [vmem:[%s7202_s0 + $0xf8] sm:$0xff]  ;;  %453 = vst.msk [vmem:[#allocation2 + $0x208] sm:$0xff] %vm19_vm0, %v387_v39 }
 0x200   :  { %v833_v33 = vpop.permute.xlu2 %832  ;;  %454 = vst.msk [vmem:[#allocation2 + $0x210] sm:$0xff] %vm19_vm0, %v388_v40  ;;  %v3208_v29 = vld [vmem:[#allocation3 + $0xd8] sm:$0xff] }
 0x201   :  { %v813_v34 = vpop.permute.xlu1 %812  ;;  %917 = vst.msk [vmem:[#allocation3 + $0x120] sm:$0xff] %vm904_vm3, %v833_v33 }
 0x202   :  { %907 = vst.msk [vmem:[#allocation3 + $0x30] sm:$0xff] %vm904_vm3, %v813_v34  ;;  %1099 = vrot.lane.b32.xlu0 %v5022_v52, %s4392_s12  ;;  %v7225_v34 = vld [vmem:[#allocation9_spill] sm:$0xff] }
 0x204   :  { %v823_v47 = vpop.permute.xlu0 %822  ;;  %v3193_v0 = vld [vmem:[#allocation3 + $0x60] sm:$0xff] }
 0x205   :  { %912 = vst.msk [vmem:[#allocation3 + $0xa8] sm:$0xff] %vm904_vm3, %v823_v47  ;;  %v7226_v47 = vld [vmem:[#allocation10_spill] sm:$0xff] }
 0x206   :  { %1097 = vrot.lane.b32.xlu2 %v4994_v45, %s4392_s12  ;;  %v5531_v63 = vld [vmem:[#allocation2 + $0x208] sm:$0xff] }
 0x207   :  { %1095 = vrot.lane.b32.xlu1 %v5000_v46, %s4392_s12 }
 0x208   :  { %v839_v52 = vpop.permute.xlu2 %838  ;;  %v3217_v2 = vld [vmem:[#allocation3 + $0x120] sm:$0xff] }
 0x209   :  { %v819_v6 = vpop.permute.xlu1 %818  ;;  %920 = vst.msk [vmem:[#allocation3 + $0x168] sm:$0xff] %vm904_vm3, %v839_v52  ;;  %v3187_v45 = vld [vmem:[#allocation3 + $0x30] sm:$0xff] }
 0x20a   :  { %910 = vst.msk [vmem:[#allocation3 + $0x78] sm:$0xff] %vm904_vm3, %v819_v6  ;;  %3443 = vmatmul.f32.gmra.mxu0 %v3187_v45  ;;  %1105 = vrot.lane.b32.xlu0 %v5046_v55, %s4392_s12  ;;  %v3403_v6 = vld [vmem:[%s7203_s1 + $0xf0] sm:$0xff] }
 0x20c   :  { %v829_v42 = vpop.permute.xlu0 %828  ;;  %v3202_v15 = vld [vmem:[#allocation3 + $0xa8] sm:$0xff] }
 0x20d   :  { %915 = vst.msk [vmem:[#allocation3 + $0xf0] sm:$0xff] %vm904_vm3, %v829_v42  ;;  %v3402_v42 = vld [vmem:[%s7203_s1 + $0xe8] sm:$0xff] }
 0x20e   :  { %1103 = vrot.lane.b32.xlu2 %v5015_v50, %s4392_s12 }
 0x20f   :  { %1101 = vrot.lane.b32.xlu1 %v5020_v51, %s4392_s12 }
 0x210   :  { %v845_v46 = vpop.permute.xlu2 %844  ;;  %v3226_v52 = vld [vmem:[#allocation3 + $0x168] sm:$0xff] }
 0x211   :  { %v825_v4 = vpop.permute.xlu1 %824  ;;  %923 = vst.msk [vmem:[#allocation3 + $0x1b0] sm:$0xff] %vm904_vm3, %v845_v46  ;;  %v3196_v43 = vld [vmem:[#allocation3 + $0x78] sm:$0xff]  ;;  %v7227_v46 = vld [vmem:[#allocation11_spill] sm:$0xff] }
 0x212   :  { %913 = vst.msk [vmem:[#allocation3 + $0xc0] sm:$0xff] %vm904_vm3, %v825_v4  ;;  %3446 = vmatmul.f32.gmra.mxu0 %v3190_v17  ;;  %1111 = vrot.lane.b32.xlu0 %v5074_v58, %s4392_s12  ;;  %v5629_v4 = vld [vmem:[#allocation2 + $0x209] sm:$0xff]  ;;  %v3401_v17 = vld [vmem:[%s7203_s1 + $0xe0] sm:$0xff] }
 0x214   :  { %v835_v55 = vpop.permute.xlu0 %834  ;;  %v3211_v19 = vld [vmem:[#allocation3 + $0xf0] sm:$0xff] }
 0x215   :  { %918 = vst.msk [vmem:[#allocation3 + $0x138] sm:$0xff] %vm904_vm3, %v835_v55 }
 0x216   :  { %1109 = vrot.lane.b32.xlu2 %v5030_v53, %s4392_s12 }
 0x217   :  { %1107 = vrot.lane.b32.xlu1 %v5042_v54, %s4392_s12 }
 0x218   :  { %v851_v50 = vpop.permute.xlu2 %850 }
 0x219   :  { %v831_v51 = vpop.permute.xlu1 %830  ;;  %926 = vst.msk [vmem:[#allocation3 + $0x1f8] sm:$0xff] %vm904_vm3, %v851_v50  ;;  %v3205_v26 = vld [vmem:[#allocation3 + $0xc0] sm:$0xff] }
 0x21a   :  { %916 = vst.msk [vmem:[#allocation3 + $0x108] sm:$0xff] %vm904_vm3, %v831_v51  ;;  %3449 = vmatmul.f32.gmra.mxu0 %v3193_v0  ;;  %1117 = vrot.lane.b32.xlu0 %v5102_v61, %s4392_s12  ;;  %v3400_v0 = vld [vmem:[%s7203_s1 + $0xd8] sm:$0xff] }
 0x21c   :  { %v841_v58 = vpop.permute.xlu0 %840  ;;  %v3220_v27 = vld [vmem:[#allocation3 + $0x138] sm:$0xff] }
 0x21d   :  { %921 = vst.msk [vmem:[#allocation3 + $0x180] sm:$0xff] %vm904_vm3, %v841_v58  ;;  %v3399_v58 = vld [vmem:[%s7203_s1 + $0xd0] sm:$0xff] }
 0x21e   :  { %1115 = vrot.lane.b32.xlu2 %v5058_v56, %s4392_s12 }
 0x21f   :  { %1113 = vrot.lane.b32.xlu1 %v5070_v57, %s4392_s12 }
 0x220   :  { %v857_v53 = vpop.permute.xlu2 %856 }
 0x221   :  { %v837_v54 = vpop.permute.xlu1 %836  ;;  %929 = vst.msk [vmem:[#allocation3 + $0x240] sm:$0xff] %vm904_vm3, %v857_v53  ;;  %v3214_v22 = vld [vmem:[#allocation3 + $0x108] sm:$0xff] }
 0x222   :  { %919 = vst.msk [vmem:[#allocation3 + $0x150] sm:$0xff] %vm904_vm3, %v837_v54  ;;  %3452 = vmatmul.f32.gmra.mxu0 %v3196_v43  ;;  %1123 = vrot.lane.b32.xlu0 %v5125_v1, %s4392_s12  ;;  %v5529_v1 = vld [vmem:[#allocation2 + $0x210] sm:$0xff]  ;;  %v3398_v54 = vld [vmem:[%s7203_s1 + $0xc8] sm:$0xff] }
 0x223   :  { %v7229_v43 = vld [vmem:[#allocation13_spill] sm:$0xff] }
 0x224   :  { %v847_v61 = vpop.permute.xlu0 %846  ;;  %v3229_v51 = vld [vmem:[#allocation3 + $0x180] sm:$0xff] }
 0x225   :  { %924 = vst.msk [vmem:[#allocation3 + $0x1c8] sm:$0xff] %vm904_vm3, %v847_v61  ;;  %v1451_v61 = vld [vmem:[#allocation2 + $0x50] sm:$0xff] }
 0x226   :  { %1121 = vrot.lane.b32.xlu2 %v5086_v59, %s4392_s12 }
 0x227   :  { %1119 = vrot.lane.b32.xlu1 %v5098_v60, %s4392_s12 }
 0x228   :  { %v863_v56 = vpop.permute.xlu2 %862 }
 0x229   :  { %v843_v57 = vpop.permute.xlu1 %842  ;;  %932 = vst.msk [vmem:[#allocation3 + $0x288] sm:$0xff] %vm904_vm3, %v863_v56  ;;  %v3223_v41 = vld [vmem:[#allocation3 + $0x150] sm:$0xff]  ;;  %v3397_v56 = vld [vmem:[%s7203_s1 + $0xc0] sm:$0xff] }
 0x22a   :  { %922 = vst.msk [vmem:[#allocation3 + $0x198] sm:$0xff] %vm904_vm3, %v843_v57  ;;  %3455 = vmatmul.f32.gmra.mxu0 %v3199_v13  ;;  %1257 = vrot.lane.b32.xlu0 %v5152_v9, %s4393_s21  ;;  %v967_v57 = vld [vmem:[#allocation2 + $0x207] sm:$0xff] }
 0x22b   :  { %999 = vst.msk [vmem:[#allocation3 + $0x2d8] sm:$0xff] %vm19_vm0, %v967_v57 }
 0x22c   :  { %v853_v23 = vpop.permute.xlu0 %852  ;;  %1446 = vst.msk [vmem:[#allocation3 + $0x2b0] sm:$0xff] %vm19_vm0, %v967_v57 }
 0x22d   :  { %927 = vst.msk [vmem:[#allocation3 + $0x210] sm:$0xff] %vm904_vm3, %v853_v23 }
 0x22e   :  { %1127 = vrot.lane.b32.xlu2 %v5529_v1, %s4392_s12 }
 0x22f   :  { %1125 = vrot.lane.b32.xlu1 %v5531_v63, %s4392_s12 }
 0x230   :  { %v869_v59 = vpop.permute.xlu2 %868 }
 0x231   :  { %v849_v60 = vpop.permute.xlu1 %848  ;;  %935 = vst.msk [vmem:[#allocation3 + $0x2d0] sm:$0xff] %vm904_vm3, %v869_v59  ;;  %v3232_v59 = vld [vmem:[#allocation3 + $0x198] sm:$0xff] }
 0x232   :  { %925 = vst.msk [vmem:[#allocation3 + $0x1e0] sm:$0xff] %vm904_vm3, %v849_v60  ;;  %3458 = vmatmul.f32.gmra.mxu0 %v3202_v15  ;;  %1263 = vrot.lane.b32.xlu0 %v5178_v21, %s4393_s21  ;;  %v3395_v60 = vld [vmem:[%s7203_s1 + $0xb0] sm:$0xff]  ;;  %v1450_v15 = vld [vmem:[#allocation2 + $0x48] sm:$0xff] }
 0x234   :  { %v859_v9 = vpop.permute.xlu0 %858 }
 0x235   :  { %930 = vst.msk [vmem:[#allocation3 + $0x258] sm:$0xff] %vm904_vm3, %v859_v9  ;;  %v5666_v9 = vld [vmem:[#allocation2 + $0x211] sm:$0xff] }
 0x236   :  { %1261 = vrot.lane.b32.xlu2 %v5138_v3, %s4393_s21 }
 0x237   :  { %1259 = vrot.lane.b32.xlu1 %v5149_v8, %s4393_s21 }
 0x238   :  { %v1068_v18 = vpop.permute.xlu2 %1067 }
 0x239   :  { %v855_v5 = vpop.permute.xlu1 %854  ;;  %1162 = vst.msk [vmem:[#allocation3 + $0x20] sm:$0xff] %vm711_vm2, %v1068_v18 }
 0x23a   :  { %928 = vst.msk [vmem:[#allocation3 + $0x228] sm:$0xff] %vm904_vm3, %v855_v5  ;;  %3461 = vmatmul.f32.gmra.mxu0 %v3205_v26  ;;  %1269 = vrot.lane.b32.xlu0 %v5202_v36, %s4393_s21  ;;  %v3394_v5 = vld [vmem:[%s7203_s1 + $0xa8] sm:$0xff] }
 0x23b   :  { %v1454_v26 = vld [vmem:[#allocation2 + $0x88] sm:$0xff] }
 0x23c   :  { %v865_v21 = vpop.permute.xlu0 %864 }
 0x23d   :  { %933 = vst.msk [vmem:[#allocation3 + $0x2a0] sm:$0xff] %vm904_vm3, %v865_v21  ;;  %v3393_v21 = vld [vmem:[%s7203_s1 + $0xa0] sm:$0xff] }
 0x23e   :  { %1267 = vrot.lane.b32.xlu2 %v5164_v11, %s4393_s21 }
 0x23f   :  { %1265 = vrot.lane.b32.xlu1 %v5175_v20, %s4393_s21 }
 0x240   :  { %v1074_v3 = vpop.permute.xlu2 %1073 }
 0x241   :  { %v861_v8 = vpop.permute.xlu1 %860  ;;  %1165 = vst.msk [vmem:[#allocation3 + $0x68] sm:$0xff] %vm711_vm2, %v1074_v3 }
 0x242   :  { %931 = vst.msk [vmem:[#allocation3 + $0x270] sm:$0xff] %vm904_vm3, %v861_v8  ;;  %3464 = vmatmul.f32.gmra.mxu0 %v3208_v29  ;;  %1275 = vrot.lane.b32.xlu0 %v5225_v49, %s4393_s21  ;;  %v3235_v29 = vld [vmem:[#allocation3 + $0x1b0] sm:$0xff] }
 0x244   :  { %v871_v36 = vpop.permute.xlu0 %870 }
 0x245   :  { %936 = vst.msk [vmem:[#allocation3 + $0x2e8] sm:$0xff] %vm904_vm3, %v871_v36  ;;  %v3392_v36 = vld [vmem:[%s7203_s1 + $0x98] sm:$0xff] }
 0x246   :  { %1273 = vrot.lane.b32.xlu2 %v5188_v24, %s4393_s21 }
 0x247   :  { %1271 = vrot.lane.b32.xlu1 %v5199_v32, %s4393_s21 }
 0x248   :  { %v1080_v11 = vpop.permute.xlu2 %1079 }
 0x249   :  { %v867_v20 = vpop.permute.xlu1 %866  ;;  %1168 = vst.msk [vmem:[#allocation3 + $0xb0] sm:$0xff] %vm711_vm2, %v1080_v11  ;;  %v3391_v11 = vld [vmem:[%s7203_s1 + $0x90] sm:$0xff] }
 0x24a   :  { %934 = vst.msk [vmem:[#allocation3 + $0x2b8] sm:$0xff] %vm904_vm3, %v867_v20  ;;  %3467 = vmatmul.f32.gmra.mxu0 %v3211_v19  ;;  %1281 = vrot.lane.b32.xlu0 %v5250_v10, %s4393_s21  ;;  %v1453_v20 = vld [vmem:[#allocation2 + $0x70] sm:$0xff]  ;;  %v1452_v19 = vld [vmem:[#allocation2 + $0x68] sm:$0xff] }
 0x24c   :  { %v1070_v49 = vpop.permute.xlu0 %1069 }
 0x24d   :  { %1163 = vst.msk [vmem:[#allocation3 + $0x38] sm:$0xff] %vm711_vm2, %v1070_v49 }
 0x24e   :  { %1279 = vrot.lane.b32.xlu2 %v5211_v37, %s4393_s21 }
 0x24f   :  { %1277 = vrot.lane.b32.xlu1 %v5222_v48, %s4393_s21 }
 0x250   :  { %v1086_v24 = vpop.permute.xlu2 %1085 }
 0x251   :  { %v1066_v32 = vpop.permute.xlu1 %1065  ;;  %1171 = vst.msk [vmem:[#allocation3 + $0xf8] sm:$0xff] %vm711_vm2, %v1086_v24  ;;  %v3390_v24 = vld [vmem:[%s7203_s1 + $0x88] sm:$0xff] }
 0x252   :  { %1161 = vst.msk [vmem:[#allocation3 + $0x8] sm:$0xff] %vm711_vm2, %v1066_v32  ;;  %3470 = vmatmul.f32.gmra.mxu0 %v3214_v22  ;;  %1287 = vrot.lane.b32.xlu0 %v5273_v38, %s4393_s21  ;;  %v1457_v32 = vld [vmem:[#allocation2 + $0xb0] sm:$0xff]  ;;  %v3389_v22 = vld [vmem:[%s7203_s1 + $0x80] sm:$0xff] }
 0x254   :  { %v1076_v10 = vpop.permute.xlu0 %1075 }
 0x255   :  { %1166 = vst.msk [vmem:[#allocation3 + $0x80] sm:$0xff] %vm711_vm2, %v1076_v10 }
 0x256   :  { %1285 = vrot.lane.b32.xlu2 %v5235_v62, %s4393_s21 }
 0x257   :  { %1283 = vrot.lane.b32.xlu1 %v5246_v7, %s4393_s21 }
 0x258   :  { %v1092_v37 = vpop.permute.xlu2 %1091 }
 0x259   :  { %v1072_v48 = vpop.permute.xlu1 %1071  ;;  %1174 = vst.msk [vmem:[#allocation3 + $0x140] sm:$0xff] %vm711_vm2, %v1092_v37 }
 0x25a   :  { %1164 = vst.msk [vmem:[#allocation3 + $0x50] sm:$0xff] %vm711_vm2, %v1072_v48  ;;  %3473 = vmatmul.f32.gmra.mxu0 %v3217_v2  ;;  %1293 = vrot.lane.b32.xlu0 %v5297_v16, %s4393_s21  ;;  %v3238_v48 = vld [vmem:[#allocation3 + $0x1c8] sm:$0xff] }
 0x25b   :  { %v1456_v2 = vld [vmem:[#allocation2 + $0xa8] sm:$0xff] }
 0x25c   :  { %v1082_v38 = vpop.permute.xlu0 %1081 }
 0x25d   :  { %1169 = vst.msk [vmem:[#allocation3 + $0xc8] sm:$0xff] %vm711_vm2, %v1082_v38  ;;  %v1455_v38 = vld [vmem:[#allocation2 + $0x90] sm:$0xff] }
 0x25e   :  { %1291 = vrot.lane.b32.xlu2 %v5259_v12, %s4393_s21  ;;  %v7224_v12 = vld [vmem:[#allocation8_spill] sm:$0xff] }
 0x25f   :  { %1289 = vrot.lane.b32.xlu1 %v5269_v31, %s4393_s21 }
 0x260   :  { %v1098_v62 = vpop.permute.xlu2 %1097 }
 0x261   :  { %v1078_v7 = vpop.permute.xlu1 %1077  ;;  %1177 = vst.msk [vmem:[#allocation3 + $0x188] sm:$0xff] %vm711_vm2, %v1098_v62 }
 0x262   :  { %1167 = vst.msk [vmem:[#allocation3 + $0x98] sm:$0xff] %vm711_vm2, %v1078_v7  ;;  %3476 = vmatmul.f32.gmra.mxu0 %v3220_v27  ;;  %1299 = vrot.lane.b32.xlu0 %v5326_v44, %s4393_s21  ;;  %v968_v44 = vld [vmem:[#allocation2 + $0x20f] sm:$0xff] }
 0x263   :  { %1000 = vst.msk [vmem:[#allocation3 + $0x2f0] sm:$0xff] %vm19_vm0, %v968_v44  ;;  %v1460_v7 = vld [vmem:[#allocation2 + $0xe8] sm:$0xff] }
 0x264   :  { %v1088_v16 = vpop.permute.xlu0 %1087 }
 0x265   :  { %1172 = vst.msk [vmem:[#allocation3 + $0x110] sm:$0xff] %vm711_vm2, %v1088_v16 }
 0x266   :  { %1297 = vrot.lane.b32.xlu2 %v7223_v28, %s4393_s21  ;;  %v3241_v28 = vld [vmem:[#allocation3 + $0x1e0] sm:$0xff] }
 0x267   :  { %1295 = vrot.lane.b32.xlu1 %v7224_v12, %s4393_s21  ;;  %v1459_v12 = vld [vmem:[#allocation2 + $0xd0] sm:$0xff] }
 0x268   :  { %v1104_v31 = vpop.permute.xlu2 %1103 }
 0x269   :  { %v1084_v35 = vpop.permute.xlu1 %1083  ;;  %1180 = vst.msk [vmem:[#allocation3 + $0x1d0] sm:$0xff] %vm711_vm2, %v1104_v31  ;;  %v1458_v31 = vld [vmem:[#allocation2 + $0xc8] sm:$0xff] }
 0x26a   :  { %1170 = vst.msk [vmem:[#allocation3 + $0xe0] sm:$0xff] %vm711_vm2, %v1084_v35  ;;  %3479 = vmatmul.f32.gmra.mxu0 %v3223_v41  ;;  %1305 = vrot.lane.b32.xlu0 %v5359_v25, %s4393_s21  ;;  %v3404_v25 = vld [vmem:[%s7203_s1 + $0xf8] sm:$0xff]  ;;  %v1463_v41 = vld [vmem:[#allocation2 + $0x110] sm:$0xff] }
 0x26b   :  { %3630 = vmatpush.msra.mxu1 %v3404_v25  ;;  %4307 = vmatpush.msrb.mxu3 %v3404_v25  ;;  %v1466_v25 = vld [vmem:[#allocation2 + $0x148] sm:$0xff] }
 0x26c   :  { %v1094_v33 = vpop.permute.xlu0 %1093 }
 0x26d   :  { %1175 = vst.msk [vmem:[#allocation3 + $0x158] sm:$0xff] %vm711_vm2, %v1094_v33  ;;  %3631 = vmatpush.msra.mxu1 %v3403_v6  ;;  %4308 = vmatpush.msrb.mxu3 %v3403_v6 }
 0x26e   :  { %1303 = vrot.lane.b32.xlu2 %v7225_v34, %s4393_s21  ;;  %v3244_v34 = vld [vmem:[#allocation3 + $0x1f8] sm:$0xff] }
 0x26f   :  { %1301 = vrot.lane.b32.xlu1 %v7226_v47, %s4393_s21  ;;  %3632 = vmatpush.msra.mxu1 %v3402_v42  ;;  %v1462_v47 = vld [vmem:[#allocation2 + $0x108] sm:$0xff] }
 0x270   :  { %v1110_v39 = vpop.permute.xlu2 %1109  ;;  %4309 = vmatpush.msrb.mxu3 %v3402_v42  ;;  %v3247_v42 = vld [vmem:[#allocation3 + $0x210] sm:$0xff] }
 0x271   :  { %v1090_v40 = vpop.permute.xlu1 %1089  ;;  %1183 = vst.msk [vmem:[#allocation3 + $0x218] sm:$0xff] %vm711_vm2, %v1110_v39  ;;  %3633 = vmatpush.msra.mxu1 %v3401_v17  ;;  %v1461_v39 = vld [vmem:[#allocation2 + $0xf0] sm:$0xff] }
 0x272   :  { %1173 = vst.msk [vmem:[#allocation3 + $0x128] sm:$0xff] %vm711_vm2, %v1090_v40  ;;  %3482 = vmatmul.f32.gmra.mxu0 %v3226_v52  ;;  %1311 = vrot.lane.b32.xlu0 %v5392_v14, %s4393_s21  ;;  %v7228_v14 = vld [vmem:[#allocation12_spill] sm:$0xff] }
 0x273   :  { %3634 = vmatpush.msra.mxu1 %v3400_v0  ;;  %4310 = vmatpush.msrb.mxu3 %v3401_v17  ;;  %v1464_v17 = vld [vmem:[#allocation2 + $0x128] sm:$0xff] }
 0x274   :  { %v1100_v45 = vpop.permute.xlu0 %1099 }
 0x275   :  { %1178 = vst.msk [vmem:[#allocation3 + $0x1a0] sm:$0xff] %vm711_vm2, %v1100_v45  ;;  %3635 = vmatpush.msra.mxu1 %v3399_v58  ;;  %4311 = vmatpush.msrb.mxu3 %v3400_v0 }
 0x276   :  { %1309 = vrot.lane.b32.xlu2 %v7227_v46, %s4393_s21  ;;  %v1465_v46 = vld [vmem:[#allocation2 + $0x130] sm:$0xff] }
 0x277   :  { %1307 = vrot.lane.b32.xlu1 %v7228_v14, %s4393_s21  ;;  %3636 = vmatpush.msra.mxu1 %v3398_v54  ;;  %v5717_v14 = vpop.f32.mrf.mxu0 }
 0x278   :  { %v1116_v55 = vpop.permute.xlu2 %1115  ;;  %4312 = vmatpush.msrb.mxu3 %v3399_v58  ;;  %7230 = vst [vmem:[#allocation7_spill] sm:$0xff] %v5717_v14  ;;  %v3250_v58 = vld [vmem:[#allocation3 + $0x228] sm:$0xff] }
 0x279   :  { %v1096_v50 = vpop.permute.xlu1 %1095  ;;  %1186 = vst.msk [vmem:[#allocation3 + $0x260] sm:$0xff] %vm711_vm2, %v1116_v55  ;;  %3637 = vmatpush.msra.mxu1 %v3397_v56 }
 0x27a   :  { %1176 = vst.msk [vmem:[#allocation3 + $0x170] sm:$0xff] %vm711_vm2, %v1096_v50  ;;  %3485 = vmatmul.f32.gmra.mxu0 %v3229_v51  ;;  %1317 = vrot.lane.b32.xlu0 %v5629_v4, %s4393_s21  ;;  %v1469_v51 = vld [vmem:[#allocation2 + $0x170] sm:$0xff] }
 0x27b   :  { %4313 = vmatpush.msrb.mxu3 %v3398_v54  ;;  %v1468_v54 = vld [vmem:[#allocation2 + $0x168] sm:$0xff] }
 0x27c   :  { %v1106_v53 = vpop.permute.xlu0 %1105 }
 0x27d   :  { %1181 = vst.msk [vmem:[#allocation3 + $0x1e8] sm:$0xff] %vm711_vm2, %v1106_v53  ;;  %4314 = vmatpush.msrb.mxu3 %v3397_v56 }
 0x27e   :  { %1315 = vrot.lane.b32.xlu2 %v7229_v43, %s4393_s21  ;;  %v1467_v43 = vld [vmem:[#allocation2 + $0x150] sm:$0xff] }
 0x27f   :  { %1313 = vrot.lane.b32.xlu1 %v5386_v30, %s4393_s21  ;;  %v3396_v30 = vld [vmem:[%s7203_s1 + $0xb8] sm:$0xff]  ;;  %v5726_v56 = vpop.f32.mrf.mxu0 }
 0x280   :  { %v1122_v13 = vpop.permute.xlu2 %1121  ;;  %3638 = vmatpush.msra.mxu1 %v3396_v30  ;;  %4315 = vmatpush.msrb.mxu3 %v3396_v30  ;;  %7231 = vst [vmem:[#allocation8_spill] sm:$0xff] %v5726_v56 }
 0x281   :  { %v1102_v23 = vpop.permute.xlu1 %1101  ;;  %1189 = vst.msk [vmem:[#allocation3 + $0x2a8] sm:$0xff] %vm711_vm2, %v1122_v13  ;;  %v1472_v13 = vld [vmem:[#allocation2 + $0x1a8] sm:$0xff] }
 0x282   :  { %1179 = vst.msk [vmem:[#allocation3 + $0x1b8] sm:$0xff] %vm711_vm2, %v1102_v23  ;;  %3488 = vmatmul.f32.gmra.mxu0 %v3232_v59  ;;  %1516 = vrot.lane.b32.xlu0 %v1451_v61, %s4392_s12  ;;  %v3253_v59 = vld [vmem:[#allocation3 + $0x240] sm:$0xff] }
 0x283   :  { %3639 = vmatpush.msra.mxu1 %v3395_v60  ;;  %4316 = vmatpush.msrb.mxu3 %v3395_v60  ;;  %v1471_v60 = vld [vmem:[#allocation2 + $0x190] sm:$0xff] }
 0x284   :  { %v1112_v18 = vpop.permute.xlu0 %1111 }
 0x285   :  { %1184 = vst.msk [vmem:[#allocation3 + $0x230] sm:$0xff] %vm711_vm2, %v1112_v18  ;;  %3640 = vmatpush.msra.mxu1 %v3394_v5  ;;  %4317 = vmatpush.msrb.mxu3 %v3394_v5 }
 0x286   :  { %1514 = vrot.lane.b32.xlu2 %v1450_v15, %s4392_s12  ;;  %v1470_v15 = vld [vmem:[#allocation2 + $0x188] sm:$0xff] }
 0x287   :  { %1319 = vrot.lane.b32.xlu1 %v5666_v9, %s4393_s21  ;;  %3641 = vmatpush.msra.mxu1 %v3393_v21  ;;  %v5736_v5 = vpop.f32.mrf.mxu0 }
 0x288   :  { %v1128_v3 = vpop.permute.xlu2 %1127  ;;  %4318 = vmatpush.msrb.mxu3 %v3393_v21  ;;  %7232 = vst [vmem:[#allocation9_spill] sm:$0xff] %v5736_v5  ;;  %v1475_v21 = vld [vmem:[#allocation2 + $0x1d0] sm:$0xff] }
 0x289   :  { %v1108_v8 = vpop.permute.xlu1 %1107  ;;  %1192 = vst.msk [vmem:[#allocation3 + $0x2f0] sm:$0xff] %vm711_vm2, %v1128_v3  ;;  %3642 = vmatpush.msra.mxu1 %v3392_v36 }
 0x28a   :  { %1182 = vst.msk [vmem:[#allocation3 + $0x200] sm:$0xff] %vm711_vm2, %v1108_v8  ;;  %3491 = vmatmul.f32.gmra.mxu0 %v3235_v29  ;;  %1522 = vrot.lane.b32.xlu0 %v1454_v26, %s4392_s12  ;;  %v3256_v8 = vld [vmem:[#allocation3 + $0x258] sm:$0xff] }
 0x28b   :  { %3643 = vmatpush.msra.mxu1 %v3391_v11  ;;  %4319 = vmatpush.msrb.mxu3 %v3392_v36  ;;  %v1386_v36 = vld [vmem:[#allocation2 + $0x47] sm:$0xff] }
 0x28c   :  { %v1118_v49 = vpop.permute.xlu0 %1117  ;;  %1418 = vst.msk [vmem:[#allocation3 + $0x10] sm:$0xff] %vm19_vm0, %v1386_v36 }
 0x28d   :  { %1187 = vst.msk [vmem:[#allocation3 + $0x278] sm:$0xff] %vm711_vm2, %v1118_v49  ;;  %3644 = vmatpush.msra.mxu1 %v3390_v24  ;;  %4320 = vmatpush.msrb.mxu3 %v3391_v11  ;;  %v1474_v11 = vld [vmem:[#allocation2 + $0x1c8] sm:$0xff] }
 0x28e   :  { %1520 = vrot.lane.b32.xlu2 %v1453_v20, %s4392_s12  ;;  %v1473_v20 = vld [vmem:[#allocation2 + $0x1b0] sm:$0xff] }
 0x28f   :  { %1518 = vrot.lane.b32.xlu1 %v1452_v19, %s4392_s12  ;;  %3645 = vmatpush.msra.mxu1 %v3389_v22 }
 0x290   :  { %v1262_v10 = vpop.permute.xlu2 %1261  ;;  %4321 = vmatpush.msrb.mxu3 %v3390_v24 }
 0x291   :  { %v1114_v37 = vpop.permute.xlu1 %1113  ;;  %1355 = vst.msk [vmem:[#allocation3 + $0x38] sm:$0xff] %vm904_vm3, %v1262_v10  ;;  %v5746_v10 = vpop.f32.mrf.mxu0 }
 0x292   :  { %1185 = vst.msk [vmem:[#allocation3 + $0x248] sm:$0xff] %vm711_vm2, %v1114_v37  ;;  %3494 = vmatmul.f32.gmra.mxu0 %v3238_v48  ;;  %1528 = vrot.lane.b32.xlu0 %v1457_v32, %s4392_s12  ;;  %v3259_v32 = vld [vmem:[#allocation3 + $0x270] sm:$0xff] }
 0x293   :  { %4322 = vmatpush.msrb.mxu3 %v3389_v22  ;;  %7233 = vst [vmem:[#allocation10_spill] sm:$0xff] %v5746_v10  ;;  %v1389_v37 = vld [vmem:[#allocation2 + $0x6f] sm:$0xff] }
 0x294   :  { %v1124_v62 = vpop.permute.xlu0 %1123  ;;  %v1477_v48 = vld [vmem:[#allocation2 + $0x1f0] sm:$0xff]  ;;  %1421 = vst.msk [vmem:[#allocation3 + $0x58] sm:$0xff] %vm19_vm0, %v1389_v37  ;;  %v1396_v37 = vld [vmem:[#allocation2 + $0xe7] sm:$0xff] }
 0x295   :  { %1190 = vst.msk [vmem:[#allocation3 + $0x2c0] sm:$0xff] %vm711_vm2, %v1124_v62 }
 0x296   :  { %1526 = vrot.lane.b32.xlu2 %v1456_v2, %s4392_s12  ;;  %v1476_v2 = vld [vmem:[#allocation2 + $0x1e8] sm:$0xff]  ;;  %1428 = vst.msk [vmem:[#allocation3 + $0x100] sm:$0xff] %vm19_vm0, %v1396_v37 }
 0x297   :  { %1524 = vrot.lane.b32.xlu1 %v1455_v38, %s4392_s12 }
 0x298   :  { %v1268_v27 = vpop.permute.xlu2 %1267  ;;  %v3188_v30 = vld [vmem:[#allocation3 + $0x38] sm:$0xff] }
 0x299   :  { %v1120_v16 = vpop.permute.xlu1 %1119  ;;  %1358 = vst.msk [vmem:[#allocation3 + $0x80] sm:$0xff] %vm904_vm3, %v1268_v27 }
 0x29a   :  { %1188 = vst.msk [vmem:[#allocation3 + $0x290] sm:$0xff] %vm711_vm2, %v1120_v16  ;;  %3497 = vmatmul.f32.gmra.mxu0 %v3241_v28  ;;  %1534 = vrot.lane.b32.xlu0 %v1460_v7, %s4392_s12  ;;  %v1481_v7 = vld [vmem:[#allocation2 + $0x230] sm:$0xff]  ;;  %v3262_v16 = vld [vmem:[#allocation3 + $0x288] sm:$0xff] }
 0x29c   :  { %v1258_v35 = vpop.permute.xlu0 %1257 }
 0x29d   :  { %1353 = vst.msk [vmem:[#allocation3 + $0x8] sm:$0xff] %vm904_vm3, %v1258_v35 }
 0x29e   :  { %1532 = vrot.lane.b32.xlu2 %v1459_v12, %s4392_s12  ;;  %v1480_v12 = vld [vmem:[#allocation2 + $0x228] sm:$0xff] }
 0x29f   :  { %1530 = vrot.lane.b32.xlu1 %v1458_v31, %s4392_s12  ;;  %v5759_v31 = vpop.f32.mrf.mxu0 }
 0x2a0   :  { %v1274_v44 = vpop.permute.xlu2 %1273  ;;  %v3197_v28 = vld [vmem:[#allocation3 + $0x80] sm:$0xff]  ;;  %7234 = vst [vmem:[#allocation11_spill] sm:$0xff] %v5759_v31 }
 0x2a1   :  { %v1126_v33 = vpop.permute.xlu1 %1125  ;;  %1361 = vst.msk [vmem:[#allocation3 + $0xc8] sm:$0xff] %vm904_vm3, %v1274_v44  ;;  %v1644_v44 = vld [vmem:[#allocation2 + $0x69] sm:$0xff] }
 0x2a2   :  { %1191 = vst.msk [vmem:[#allocation3 + $0x2d8] sm:$0xff] %vm711_vm2, %v1126_v33  ;;  %3500 = vmatmul.f32.gmra.mxu0 %v3244_v34  ;;  %1540 = vrot.lane.b32.xlu0 %v1463_v41, %s4392_s12  ;;  %v3265_v34 = vld [vmem:[#allocation3 + $0x2a0] sm:$0xff] }
 0x2a4   :  { %v1264_v40 = vpop.permute.xlu0 %1263  ;;  %v3182_v52 = vld [vmem:[#allocation3 + $0x8] sm:$0xff] }
 0x2a5   :  { %1356 = vst.msk [vmem:[#allocation3 + $0x50] sm:$0xff] %vm904_vm3, %v1264_v40  ;;  %3646 = vmatmul.f32.vlgmr.msra.gmra.mxu1 %v3182_v52  ;;  %v1643_v40 = vld [vmem:[#allocation2 + $0x51] sm:$0xff]  ;;  %v1642_v52 = vld [vmem:[#allocation2 + $0x49] sm:$0xff] }
 0x2a6   :  { %1538 = vrot.lane.b32.xlu2 %v1462_v47, %s4392_s12 }
 0x2a7   :  { %1536 = vrot.lane.b32.xlu1 %v1461_v39, %s4392_s12  ;;  %v1395_v39 = vld [vmem:[#allocation2 + $0xcf] sm:$0xff] }
 0x2a8   :  { %v1280_v6 = vpop.permute.xlu2 %1279  ;;  %1427 = vst.msk [vmem:[#allocation3 + $0xe8] sm:$0xff] %vm19_vm0, %v1395_v39  ;;  %v1658_v39 = vld [vmem:[#allocation2 + $0x149] sm:$0xff] }
 0x2a9   :  { %v1260_v45 = vpop.permute.xlu1 %1259  ;;  %1364 = vst.msk [vmem:[#allocation3 + $0x110] sm:$0xff] %vm904_vm3, %v1280_v6  ;;  %v1387_v6 = vld [vmem:[#allocation2 + $0x4f] sm:$0xff] }
 0x2aa   :  { %1354 = vst.msk [vmem:[#allocation3 + $0x20] sm:$0xff] %vm904_vm3, %v1260_v45  ;;  %3503 = vmatmul.f32.gmra.mxu0 %v3247_v42  ;;  %1546 = vrot.lane.b32.xlu0 %v1466_v25, %s4392_s12  ;;  %v1647_v42 = vld [vmem:[#allocation2 + $0x91] sm:$0xff] }
 0x2ab   :  { %1419 = vst.msk [vmem:[#allocation3 + $0x28] sm:$0xff] %vm19_vm0, %v1387_v6 }
 0x2ac   :  { %v1270_v55 = vpop.permute.xlu0 %1269  ;;  %v3191_v29 = vld [vmem:[#allocation3 + $0x50] sm:$0xff] }
 0x2ad   :  { %1359 = vst.msk [vmem:[#allocation3 + $0x98] sm:$0xff] %vm904_vm3, %v1270_v55  ;;  %v3268_v55 = vld [vmem:[#allocation3 + $0x2b8] sm:$0xff] }
 0x2ae   :  { %1544 = vrot.lane.b32.xlu2 %v1465_v46, %s4392_s12  ;;  %v1388_v46 = vld [vmem:[#allocation2 + $0x67] sm:$0xff] }
 0x2af   :  { %1542 = vrot.lane.b32.xlu1 %v1464_v17, %s4392_s12  ;;  %1420 = vst.msk [vmem:[#allocation3 + $0x40] sm:$0xff] %vm19_vm0, %v1388_v46 }
 0x2b0   :  { %v1286_v50 = vpop.permute.xlu2 %1285 }
 0x2b1   :  { %v1266_v0 = vpop.permute.xlu1 %1265  ;;  %1367 = vst.msk [vmem:[#allocation3 + $0x158] sm:$0xff] %vm904_vm3, %v1286_v50  ;;  %v3185_v53 = vld [vmem:[#allocation3 + $0x20] sm:$0xff] }
 0x2b2   :  { %1357 = vst.msk [vmem:[#allocation3 + $0x68] sm:$0xff] %vm904_vm3, %v1266_v0  ;;  %3506 = vmatmul.f32.gmra.mxu0 %v3250_v58  ;;  %3649 = vmatmul.f32.gmra.mxu1 %v3185_v53  ;;  %v1646_v0 = vld [vmem:[#allocation2 + $0x89] sm:$0xff]  ;;  %v1645_v58 = vld [vmem:[#allocation2 + $0x71] sm:$0xff] }
 0x2b3   :  { %1552 = vrot.lane.b32.xlu0 %v1469_v51, %s4392_s12  ;;  %v1398_v51 = vld [vmem:[#allocation2 + $0x107] sm:$0xff] }
 0x2b4   :  { %v1276_v61 = vpop.permute.xlu0 %1275  ;;  %v3200_v47 = vld [vmem:[#allocation3 + $0x98] sm:$0xff]  ;;  %1430 = vst.msk [vmem:[#allocation3 + $0x130] sm:$0xff] %vm19_vm0, %v1398_v51  ;;  %v1660_v51 = vld [vmem:[#allocation2 + $0x169] sm:$0xff] }
 0x2b5   :  { %1362 = vst.msk [vmem:[#allocation3 + $0xe0] sm:$0xff] %vm904_vm3, %v1276_v61 }
 0x2b6   :  { %1550 = vrot.lane.b32.xlu2 %v1468_v54, %s4392_s12  ;;  %v1390_v54 = vld [vmem:[#allocation2 + $0x87] sm:$0xff] }
 0x2b7   :  { %1548 = vrot.lane.b32.xlu1 %v1467_v43, %s4392_s12  ;;  %1422 = vst.msk [vmem:[#allocation3 + $0x70] sm:$0xff] %vm19_vm0, %v1390_v54 }
 0x2b8   :  { %v1292_v57 = vpop.permute.xlu2 %1291 }
 0x2b9   :  { %v1272_v23 = vpop.permute.xlu1 %1271  ;;  %1370 = vst.msk [vmem:[#allocation3 + $0x1a0] sm:$0xff] %vm904_vm3, %v1292_v57  ;;  %v3194_v22 = vld [vmem:[#allocation3 + $0x68] sm:$0xff] }
 0x2ba   :  { %1360 = vst.msk [vmem:[#allocation3 + $0xb0] sm:$0xff] %vm904_vm3, %v1272_v23  ;;  %3509 = vmatmul.f32.gmra.mxu0 %v3253_v59  ;;  %3652 = vmatmul.f32.gmra.mxu1 %v3188_v30  ;;  %v1650_v57 = vld [vmem:[#allocation2 + $0xc9] sm:$0xff] }
 0x2bb   :  { %1558 = vrot.lane.b32.xlu0 %v1472_v13, %s4392_s12  ;;  %v1391_v13 = vld [vmem:[#allocation2 + $0x8f] sm:$0xff] }
 0x2bc   :  { %v1282_v18 = vpop.permute.xlu0 %1281  ;;  %v3271_v59 = vld [vmem:[#allocation3 + $0x2d0] sm:$0xff]  ;;  %v3206_v30 = vld [vmem:[#allocation3 + $0xc8] sm:$0xff]  ;;  %1423 = vst.msk [vmem:[#allocation3 + $0x88] sm:$0xff] %vm19_vm0, %v1391_v13 }
 0x2bd   :  { %1365 = vst.msk [vmem:[#allocation3 + $0x128] sm:$0xff] %vm904_vm3, %v1282_v18  ;;  %v1648_v18 = vld [vmem:[#allocation2 + $0xa9] sm:$0xff] }
 0x2be   :  { %1556 = vrot.lane.b32.xlu2 %v1471_v60, %s4392_s12  ;;  %v1401_v60 = vld [vmem:[#allocation2 + $0x12f] sm:$0xff] }
 0x2bf   :  { %1554 = vrot.lane.b32.xlu1 %v1470_v15, %s4392_s12  ;;  %v1649_v15 = vld [vmem:[#allocation2 + $0xb1] sm:$0xff]  ;;  %1433 = vst.msk [vmem:[#allocation3 + $0x178] sm:$0xff] %vm19_vm0, %v1401_v60 }
 0x2c0   :  { %v1298_v26 = vpop.permute.xlu2 %1297  ;;  %v1663_v60 = vld [vmem:[#allocation2 + $0x191] sm:$0xff] }
 0x2c1   :  { %v1278_v3 = vpop.permute.xlu1 %1277  ;;  %1373 = vst.msk [vmem:[#allocation3 + $0x1e8] sm:$0xff] %vm904_vm3, %v1298_v26  ;;  %v3203_v50 = vld [vmem:[#allocation3 + $0xb0] sm:$0xff] }
 0x2c2   :  { %1363 = vst.msk [vmem:[#allocation3 + $0xf8] sm:$0xff] %vm904_vm3, %v1278_v3  ;;  %3512 = vmatmul.f32.gmra.mxu0 %v3256_v8  ;;  %3655 = vmatmul.f32.gmra.mxu1 %v3191_v29  ;;  %v1653_v8 = vld [vmem:[#allocation2 + $0xf1] sm:$0xff]  ;;  %v1394_v29 = vld [vmem:[#allocation2 + $0xc7] sm:$0xff] }
 0x2c3   :  { %1564 = vrot.lane.b32.xlu0 %v1475_v21, %s4392_s12  ;;  %v1393_v21 = vld [vmem:[#allocation2 + $0xaf] sm:$0xff]  ;;  %1426 = vst.msk [vmem:[#allocation3 + $0xd0] sm:$0xff] %vm19_vm0, %v1394_v29 }
 0x2c4   :  { %v1288_v19 = vpop.permute.xlu0 %1287  ;;  %1425 = vst.msk [vmem:[#allocation3 + $0xb8] sm:$0xff] %vm19_vm0, %v1393_v21  ;;  %v1408_v21 = vld [vmem:[#allocation2 + $0x1a7] sm:$0xff]  ;;  %v1409_v29 = vld [vmem:[#allocation2 + $0x1af] sm:$0xff] }
 0x2c5   :  { %1368 = vst.msk [vmem:[#allocation3 + $0x170] sm:$0xff] %vm904_vm3, %v1288_v19 }
 0x2c6   :  { %1562 = vrot.lane.b32.xlu2 %v1474_v11, %s4392_s12  ;;  %v3274_v11 = vld [vmem:[#allocation3 + $0x2e8] sm:$0xff]  ;;  %1440 = vst.msk [vmem:[#allocation3 + $0x220] sm:$0xff] %vm19_vm0, %v1408_v21 }
 0x2c7   :  { %1560 = vrot.lane.b32.xlu1 %v1473_v20, %s4392_s12  ;;  %v3209_v20 = vld [vmem:[#allocation3 + $0xe0] sm:$0xff]  ;;  %1441 = vst.msk [vmem:[#allocation3 + $0x238] sm:$0xff] %vm19_vm0, %v1409_v29 }
 0x2c8   :  { %v1304_v49 = vpop.permute.xlu2 %1303  ;;  %v3405_v29 = vld [vmem:[%s7203_s1 + $0x100] sm:$0xff] }
 0x2c9   :  { %v1284_v24 = vpop.permute.xlu1 %1283  ;;  %1376 = vst.msk [vmem:[#allocation3 + $0x230] sm:$0xff] %vm904_vm3, %v1304_v49  ;;  %v1404_v49 = vld [vmem:[#allocation2 + $0x167] sm:$0xff] }
 0x2ca   :  { %1366 = vst.msk [vmem:[#allocation3 + $0x140] sm:$0xff] %vm904_vm3, %v1284_v24  ;;  %3515 = vmatmul.f32.gmra.mxu0 %v3259_v32  ;;  %3658 = vmatmul.f32.gmra.mxu1 %v3194_v22  ;;  %v1652_v24 = vld [vmem:[#allocation2 + $0xe9] sm:$0xff]  ;;  %v1651_v32 = vld [vmem:[#allocation2 + $0xd1] sm:$0xff] }
 0x2cb   :  { %1570 = vrot.lane.b32.xlu0 %v5531_v63, %s4392_s12  ;;  %v1392_v63 = vld [vmem:[#allocation2 + $0xa7] sm:$0xff]  ;;  %1436 = vst.msk [vmem:[#allocation3 + $0x1c0] sm:$0xff] %vm19_vm0, %v1404_v49  ;;  %v3420_v49 = vld [vmem:[%s7203_s1 + $0x178] sm:$0xff] }
 0x2cc   :  { %v1294_v38 = vpop.permute.xlu0 %1293  ;;  %1424 = vst.msk [vmem:[#allocation3 + $0xa0] sm:$0xff] %vm19_vm0, %v1392_v63  ;;  %3839 = vmatpush.msra.mxu2 %v3420_v49 }
 0x2cd   :  { %1371 = vst.msk [vmem:[#allocation3 + $0x1b8] sm:$0xff] %vm904_vm3, %v1294_v38  ;;  %v1397_v38 = vld [vmem:[#allocation2 + $0xef] sm:$0xff] }
 0x2ce   :  { %1568 = vrot.lane.b32.xlu2 %v1477_v48, %s4392_s12  ;;  %1429 = vst.msk [vmem:[#allocation3 + $0x118] sm:$0xff] %vm19_vm0, %v1397_v38  ;;  %v394_v38 = vld [vmem:[%s7202_s0 + $0x128] sm:$0xff] }
 0x2cf   :  { %1566 = vrot.lane.b32.xlu1 %v1476_v2, %s4392_s12  ;;  %v1656_v2 = vld [vmem:[#allocation2 + $0x129] sm:$0xff]  ;;  %460 = vst.msk [vmem:[#allocation2 + $0x2b0] sm:$0xff] %vm19_vm0, %v394_v38 }
 0x2d0   :  { %v1310_v62 = vpop.permute.xlu2 %1309 }
 0x2d1   :  { %v1290_v27 = vpop.permute.xlu1 %1289  ;;  %1379 = vst.msk [vmem:[#allocation3 + $0x278] sm:$0xff] %vm904_vm3, %v1310_v62 }
 0x2d2   :  { %1369 = vst.msk [vmem:[#allocation3 + $0x188] sm:$0xff] %vm904_vm3, %v1290_v27  ;;  %3518 = vmatmul.f32.gmra.mxu0 %v3262_v16  ;;  %3661 = vmatmul.f32.gmra.mxu1 %v3197_v28  ;;  %v1407_v27 = vld [vmem:[#allocation2 + $0x18f] sm:$0xff] }
 0x2d3   :  { %1576 = vrot.lane.b32.xlu0 %v1481_v7, %s4392_s12  ;;  %v3212_v7 = vld [vmem:[#allocation3 + $0xf8] sm:$0xff]  ;;  %v1654_v28 = vld [vmem:[#allocation2 + $0x109] sm:$0xff]  ;;  %1439 = vst.msk [vmem:[#allocation3 + $0x208] sm:$0xff] %vm19_vm0, %v1407_v27 }
 0x2d4   :  { %v1300_v35 = vpop.permute.xlu0 %1299  ;;  %v1655_v16 = vld [vmem:[#allocation2 + $0x111] sm:$0xff] }
 0x2d5   :  { %1374 = vst.msk [vmem:[#allocation3 + $0x200] sm:$0xff] %vm904_vm3, %v1300_v35 }
 0x2d6   :  { %1574 = vrot.lane.b32.xlu2 %v1480_v12, %s4392_s12  ;;  %v1399_v12 = vld [vmem:[#allocation2 + $0x10f] sm:$0xff] }
 0x2d7   :  { %1572 = vrot.lane.b32.xlu1 %v5529_v1, %s4392_s12  ;;  %v5770_v1 = vpop.f32.mrf.mxu0  ;;  %1431 = vst.msk [vmem:[#allocation3 + $0x148] sm:$0xff] %vm19_vm0, %v1399_v12  ;;  %v395_v12 = vld [vmem:[%s7202_s0 + $0x130] sm:$0xff] }
 0x2d8   :  { %v1316_v41 = vpop.permute.xlu2 %1315  ;;  %7235 = vst [vmem:[#allocation12_spill] sm:$0xff] %v5770_v1 }
 0x2d9   :  { %v1296_v33 = vpop.permute.xlu1 %1295  ;;  %1382 = vst.msk [vmem:[#allocation3 + $0x2c0] sm:$0xff] %vm904_vm3, %v1316_v41  ;;  %v1659_v41 = vld [vmem:[#allocation2 + $0x151] sm:$0xff] }
 0x2da   :  { %1372 = vst.msk [vmem:[#allocation3 + $0x1d0] sm:$0xff] %vm904_vm3, %v1296_v33  ;;  %3521 = vmatmul.f32.gmra.mxu0 %v3265_v34  ;;  %3664 = vmatmul.f32.gmra.mxu1 %v3200_v47  ;;  %v3215_v34 = vld [vmem:[#allocation3 + $0x110] sm:$0xff]  ;;  %v1410_v47 = vld [vmem:[#allocation2 + $0x1c7] sm:$0xff] }
 0x2db   :  { %1710 = vrot.lane.b32.xlu0 %v1644_v44, %s4393_s21  ;;  %v1400_v44 = vld [vmem:[#allocation2 + $0x127] sm:$0xff]  ;;  %1442 = vst.msk [vmem:[#allocation3 + $0x250] sm:$0xff] %vm19_vm0, %v1410_v47  ;;  %v396_v47 = vld [vmem:[%s7202_s0 + $0x138] sm:$0xff] }
 0x2dc   :  { %v1306_v25 = vpop.permute.xlu0 %1305  ;;  %1432 = vst.msk [vmem:[#allocation3 + $0x160] sm:$0xff] %vm19_vm0, %v1400_v44  ;;  %v1669_v44 = vld [vmem:[#allocation2 + $0x1f1] sm:$0xff] }
 0x2dd   :  { %1377 = vst.msk [vmem:[#allocation3 + $0x248] sm:$0xff] %vm904_vm3, %v1306_v25  ;;  %v1402_v25 = vld [vmem:[#allocation2 + $0x147] sm:$0xff] }
 0x2de   :  { %1708 = vrot.lane.b32.xlu2 %v1643_v40, %s4393_s21  ;;  %v1657_v40 = vld [vmem:[#allocation2 + $0x131] sm:$0xff]  ;;  %1434 = vst.msk [vmem:[#allocation3 + $0x190] sm:$0xff] %vm19_vm0, %v1402_v25 }
 0x2df   :  { %1706 = vrot.lane.b32.xlu1 %v1642_v52, %s4393_s21  ;;  %v5783_v43 = vpop.f32.mrf.mxu0  ;;  %461 = vst.msk [vmem:[#allocation2 + $0x2c8] sm:$0xff] %vm19_vm0, %v395_v12 }
 0x2e0   :  { %v1515_v45 = vpop.permute.xlu2 %1514  ;;  %7236 = vst [vmem:[#allocation13_spill] sm:$0xff] %v5783_v43 }
 0x2e1   :  { %v1302_v17 = vpop.permute.xlu1 %1301  ;;  %1610 = vst.msk [vmem:[#allocation3 + $0x10] sm:$0xff] %vm711_vm2, %v1515_v45  ;;  %v1662_v45 = vld [vmem:[#allocation2 + $0x189] sm:$0xff] }
 0x2e2   :  { %1375 = vst.msk [vmem:[#allocation3 + $0x218] sm:$0xff] %vm904_vm3, %v1302_v17  ;;  %3524 = vmatmul.f32.gmra.mxu0 %v3268_v55  ;;  %3667 = vmatmul.f32.gmra.mxu1 %v3203_v50  ;;  %v3218_v17 = vld [vmem:[#allocation3 + $0x128] sm:$0xff]  ;;  %v1661_v50 = vld [vmem:[#allocation2 + $0x171] sm:$0xff] }
 0x2e3   :  { %1716 = vrot.lane.b32.xlu0 %v1647_v42, %s4393_s21  ;;  %v1403_v42 = vld [vmem:[#allocation2 + $0x14f] sm:$0xff]  ;;  %462 = vst.msk [vmem:[#allocation2 + $0x2d0] sm:$0xff] %vm19_vm0, %v396_v47 }
 0x2e4   :  { %v1312_v53 = vpop.permute.xlu0 %1311  ;;  %v1413_v55 = vld [vmem:[#allocation2 + $0x1ef] sm:$0xff]  ;;  %1435 = vst.msk [vmem:[#allocation3 + $0x1a8] sm:$0xff] %vm19_vm0, %v1403_v42  ;;  %v3412_v42 = vld [vmem:[%s7203_s1 + $0x138] sm:$0xff] }
 0x2e5   :  { %1380 = vst.msk [vmem:[#allocation3 + $0x290] sm:$0xff] %vm904_vm3, %v1312_v53  ;;  %v1405_v53 = vld [vmem:[#allocation2 + $0x16f] sm:$0xff] }
 0x2e6   :  { %1714 = vrot.lane.b32.xlu2 %v1646_v0, %s4393_s21  ;;  %1445 = vst.msk [vmem:[#allocation3 + $0x298] sm:$0xff] %vm19_vm0, %v1413_v55  ;;  %v1672_v55 = vld [vmem:[#allocation2 + $0x229] sm:$0xff] }
 0x2e7   :  { %1712 = vrot.lane.b32.xlu1 %v1645_v58, %s4393_s21  ;;  %v5796_v19 = vpop.f32.mrf.mxu0  ;;  %v389_v58 = vld [vmem:[%s7202_s0 + $0x100] sm:$0xff]  ;;  %1437 = vst.msk [vmem:[#allocation3 + $0x1d8] sm:$0xff] %vm19_vm0, %v1405_v53 }
 0x2e8   :  { %v1521_v61 = vpop.permute.xlu2 %1520  ;;  %7237 = vst [vmem:[#allocation14_spill] sm:$0xff] %v5796_v19  ;;  %v3409_v53 = vld [vmem:[%s7203_s1 + $0x120] sm:$0xff] }
 0x2e9   :  { %v1308_v23 = vpop.permute.xlu1 %1307  ;;  %1613 = vst.msk [vmem:[#allocation3 + $0x58] sm:$0xff] %vm711_vm2, %v1521_v61  ;;  %v1665_v61 = vld [vmem:[#allocation2 + $0x1b1] sm:$0xff] }
 0x2ea   :  { %1378 = vst.msk [vmem:[#allocation3 + $0x260] sm:$0xff] %vm904_vm3, %v1308_v23  ;;  %3527 = vmatmul.f32.gmra.mxu0 %v3271_v59  ;;  %3670 = vmatmul.f32.gmra.mxu1 %v3206_v30  ;;  %v3221_v23 = vld [vmem:[#allocation3 + $0x140] sm:$0xff]  ;;  %v1664_v30 = vld [vmem:[#allocation2 + $0x1a9] sm:$0xff] }
 0x2eb   :  { %1722 = vrot.lane.b32.xlu0 %v1650_v57, %s4393_s21  ;;  %455 = vst.msk [vmem:[#allocation2 + $0x268] sm:$0xff] %vm19_vm0, %v389_v58  ;;  %v1406_v57 = vld [vmem:[#allocation2 + $0x187] sm:$0xff]  ;;  %v1417_v58 = vld [vmem:[#allocation2 + $0x22f] sm:$0xff] }
 0x2ec   :  { %v1318_v26 = vpop.permute.xlu0 %1317  ;;  %v1416_v59 = vld [vmem:[#allocation2 + $0x227] sm:$0xff]  ;;  %1438 = vst.msk [vmem:[#allocation3 + $0x1f0] sm:$0xff] %vm19_vm0, %v1406_v57  ;;  %v400_v57 = vld [vmem:[%s7202_s0 + $0x158] sm:$0xff] }
 0x2ed   :  { %1383 = vst.msk [vmem:[#allocation3 + $0x2d8] sm:$0xff] %vm904_vm3, %v1318_v26  ;;  %v391_v26 = vld [vmem:[%s7202_s0 + $0x110] sm:$0xff] }
 0x2ee   :  { %1720 = vrot.lane.b32.xlu2 %v1649_v15, %s4393_s21  ;;  %1448 = vst.msk [vmem:[#allocation3 + $0x2e0] sm:$0xff] %vm19_vm0, %v1416_v59  ;;  %v401_v59 = vld [vmem:[%s7202_s0 + $0x160] sm:$0xff] }
 0x2ef   :  { %1718 = vrot.lane.b32.xlu1 %v1648_v18, %s4393_s21  ;;  %v390_v18 = vld [vmem:[%s7202_s0 + $0x108] sm:$0xff]  ;;  %457 = vst.msk [vmem:[#allocation2 + $0x288] sm:$0xff] %vm19_vm0, %v391_v26 }
 0x2f0   :  { %v1527_v3 = vpop.permute.xlu2 %1526  ;;  %456 = vst.msk [vmem:[#allocation2 + $0x270] sm:$0xff] %vm19_vm0, %v390_v18  ;;  %v1900_v18 = vld [vmem:[#allocation2 + $0x250] sm:$0xff]  ;;  %v3406_v26 = vld [vmem:[%s7203_s1 + $0x108] sm:$0xff] }
 0x2f1   :  { %v1314_v36 = vpop.permute.xlu1 %1313  ;;  %1616 = vst.msk [vmem:[#allocation3 + $0xa0] sm:$0xff] %vm711_vm2, %v1527_v3 }
 0x2f2   :  { %1381 = vst.msk [vmem:[#allocation3 + $0x2a8] sm:$0xff] %vm904_vm3, %v1314_v36  ;;  %3530 = vmatmul.f32.gmra.mxu0 %v3274_v11  ;;  %3673 = vmatmul.f32.gmra.mxu1 %v3209_v20  ;;  %v3224_v11 = vld [vmem:[#allocation3 + $0x158] sm:$0xff] }
 0x2f3   :  { %1728 = vrot.lane.b32.xlu0 %v1653_v8, %s4393_s21  ;;  %v1668_v8 = vld [vmem:[#allocation2 + $0x1e9] sm:$0xff]  ;;  %v392_v20 = vld [vmem:[%s7202_s0 + $0x118] sm:$0xff]  ;;  %1449 = vst.msk [vmem:[#allocation3 + $0x2f8] sm:$0xff] %vm19_vm0, %v1417_v58 }
 0x2f4   :  { %v1517_v22 = vpop.permute.xlu0 %1516  ;;  %458 = vst.msk [vmem:[#allocation2 + $0x290] sm:$0xff] %vm19_vm0, %v392_v20  ;;  %v404_v20 = vld [vmem:[%s7202_s0 + $0x178] sm:$0xff]  ;;  %v415_v58 = vld [vmem:[%s7202_s0 + $0x1d0] sm:$0xff] }
 0x2f5   :  { %1611 = vst.msk [vmem:[#allocation3 + $0x28] sm:$0xff] %vm711_vm2, %v1517_v22  ;;  %v1666_v22 = vld [vmem:[#allocation2 + $0x1c9] sm:$0xff] }
 0x2f6   :  { %1726 = vrot.lane.b32.xlu2 %v1652_v24, %s4393_s21  ;;  %v3419_v24 = vld [vmem:[%s7203_s1 + $0x170] sm:$0xff]  ;;  %466 = vst.msk [vmem:[#allocation2 + $0x310] sm:$0xff] %vm19_vm0, %v400_v57  ;;  %v416_v57 = vld [vmem:[%s7202_s0 + $0x1d8] sm:$0xff] }
 0x2f7   :  { %1724 = vrot.lane.b32.xlu1 %v1651_v32, %s4393_s21  ;;  %v1667_v32 = vld [vmem:[#allocation2 + $0x1d1] sm:$0xff]  ;;  %3840 = vmatpush.msra.mxu2 %v3419_v24  ;;  %467 = vst.msk [vmem:[#allocation2 + $0x328] sm:$0xff] %vm19_vm0, %v401_v59 }
 0x2f8   :  { %v1533_v48 = vpop.permute.xlu2 %1532  ;;  %v3236_v24 = vld [vmem:[#allocation3 + $0x1b8] sm:$0xff]  ;;  %470 = vst.msk [vmem:[#allocation2 + $0x350] sm:$0xff] %vm19_vm0, %v404_v20  ;;  %v3251_v20 = vld [vmem:[#allocation3 + $0x230] sm:$0xff] }
 0x2f9   :  { %v1320_v62 = vpop.permute.xlu1 %1319  ;;  %1619 = vst.msk [vmem:[#allocation3 + $0xe8] sm:$0xff] %vm711_vm2, %v1533_v48  ;;  %v3418_v48 = vld [vmem:[%s7203_s1 + $0x168] sm:$0xff]  ;;  %v3248_v59 = vld [vmem:[#allocation3 + $0x218] sm:$0xff] }
 0x2fa   :  { %1384 = vst.msk [vmem:[#allocation3 + $0x2f0] sm:$0xff] %vm904_vm3, %v1320_v62  ;;  %3676 = vmatmul.f32.gmra.mxu1 %v3212_v7  ;;  %3841 = vmatpush.msra.mxu2 %v3418_v48  ;;  %v1411_v62 = vld [vmem:[#allocation2 + $0x1cf] sm:$0xff]  ;;  %v3417_v7 = vld [vmem:[%s7203_s1 + $0x160] sm:$0xff] }
 0x2fb   :  { %1734 = vrot.lane.b32.xlu0 %v1656_v2, %s4393_s21  ;;  %v393_v2 = vld [vmem:[%s7202_s0 + $0x120] sm:$0xff]  ;;  %1443 = vst.msk [vmem:[#allocation3 + $0x268] sm:$0xff] %vm19_vm0, %v1411_v62  ;;  %v6010_v62 = vld [vmem:[#allocation2 + $0x2d0] sm:$0xff] }
 0x2fc   :  { %v1523_v63 = vpop.permute.xlu0 %1522  ;;  %459 = vst.msk [vmem:[#allocation2 + $0x2a8] sm:$0xff] %vm19_vm0, %v393_v2  ;;  %3842 = vmatpush.msra.mxu2 %v3417_v7  ;;  %v405_v48 = vld [vmem:[%s7202_s0 + $0x180] sm:$0xff]  ;;  %v406_v2 = vld [vmem:[%s7202_s0 + $0x188] sm:$0xff]  ;;  %v407_v7 = vld [vmem:[%s7202_s0 + $0x190] sm:$0xff] }
 0x2fd   :  { %1614 = vst.msk [vmem:[#allocation3 + $0x70] sm:$0xff] %vm711_vm2, %v1523_v63  ;;  %v3227_v63 = vld [vmem:[#allocation3 + $0x170] sm:$0xff] }
 0x2fe   :  { %1732 = vrot.lane.b32.xlu2 %v1655_v16, %s4393_s21  ;;  %v1412_v16 = vld [vmem:[#allocation2 + $0x1e7] sm:$0xff]  ;;  %471 = vst.msk [vmem:[#allocation2 + $0x368] sm:$0xff] %vm19_vm0, %v405_v48 }
 0x2ff   :  { %1730 = vrot.lane.b32.xlu1 %v1654_v28, %s4393_s21  ;;  %1444 = vst.msk [vmem:[#allocation3 + $0x280] sm:$0xff] %vm19_vm0, %v1412_v16  ;;  %v3239_v16 = vld [vmem:[#allocation3 + $0x1d0] sm:$0xff] }
 0x300   :  { %v1539_v35 = vpop.permute.xlu2 %1538  ;;  %472 = vst.msk [vmem:[#allocation2 + $0x370] sm:$0xff] %vm19_vm0, %v406_v2 }
 0x301   :  { %v1519_v33 = vpop.permute.xlu1 %1518  ;;  %1622 = vst.msk [vmem:[#allocation3 + $0x130] sm:$0xff] %vm711_vm2, %v1539_v35  ;;  %v3416_v35 = vld [vmem:[%s7203_s1 + $0x158] sm:$0xff] }
 0x302   :  { %1612 = vst.msk [vmem:[#allocation3 + $0x40] sm:$0xff] %vm711_vm2, %v1519_v33  ;;  %3679 = vmatmul.f32.gmra.mxu1 %v3215_v34  ;;  %3843 = vmatpush.msra.mxu2 %v3416_v35  ;;  %v3414_v33 = vld [vmem:[%s7203_s1 + $0x148] sm:$0xff]  ;;  %v408_v35 = vld [vmem:[%s7202_s0 + $0x198] sm:$0xff] }
 0x303   :  { %1740 = vrot.lane.b32.xlu0 %v1659_v41, %s4393_s21  ;;  %v3415_v41 = vld [vmem:[%s7203_s1 + $0x150] sm:$0xff]  ;;  %473 = vst.msk [vmem:[#allocation2 + $0x388] sm:$0xff] %vm19_vm0, %v407_v7 }
 0x304   :  { %v1529_v52 = vpop.permute.xlu0 %1528  ;;  %3844 = vmatpush.msra.mxu2 %v3415_v41  ;;  %v409_v41 = vld [vmem:[%s7202_s0 + $0x1a0] sm:$0xff]  ;;  %474 = vst.msk [vmem:[#allocation2 + $0x390] sm:$0xff] %vm19_vm0, %v408_v35 }
 0x305   :  { %1617 = vst.msk [vmem:[#allocation3 + $0xb8] sm:$0xff] %vm711_vm2, %v1529_v52  ;;  %v1899_v52 = vld [vmem:[#allocation2 + $0x248] sm:$0xff] }
 0x306   :  { %1738 = vrot.lane.b32.xlu2 %v1658_v39, %s4393_s21  ;;  %3845 = vmatpush.msra.mxu2 %v3414_v33  ;;  %v1415_v39 = vld [vmem:[#allocation2 + $0x20f] sm:$0xff]  ;;  %475 = vst.msk [vmem:[#allocation2 + $0x3a8] sm:$0xff] %vm19_vm0, %v409_v41 }
 0x307   :  { %1736 = vrot.lane.b32.xlu1 %v1657_v40, %s4393_s21  ;;  %1447 = vst.msk [vmem:[#allocation3 + $0x2c8] sm:$0xff] %vm19_vm0, %v1415_v39 }
 0x308   :  { %v1545_v6 = vpop.permute.xlu2 %1544  ;;  %481 = vst.msk [vmem:[#allocation2 + $0x408] sm:$0xff] %vm19_vm0, %v415_v58 }
 0x309   :  { %v1525_v46 = vpop.permute.xlu1 %1524  ;;  %1625 = vst.msk [vmem:[#allocation3 + $0x178] sm:$0xff] %vm711_vm2, %v1545_v6  ;;  %v3230_v6 = vld [vmem:[#allocation3 + $0x188] sm:$0xff] }
 0x30a   :  { %1615 = vst.msk [vmem:[#allocation3 + $0x88] sm:$0xff] %vm711_vm2, %v1525_v46  ;;  %3682 = vmatmul.f32.gmra.mxu1 %v3218_v17  ;;  %v3411_v46 = vld [vmem:[%s7203_s1 + $0x130] sm:$0xff] }
 0x30b   :  { %1746 = vrot.lane.b32.xlu0 %v1662_v45, %s4393_s21  ;;  %v398_v45 = vld [vmem:[%s7202_s0 + $0x148] sm:$0xff]  ;;  %v1673_v17 = vld [vmem:[#allocation2 + $0x231] sm:$0xff]  ;;  %482 = vst.msk [vmem:[#allocation2 + $0x410] sm:$0xff] %vm19_vm0, %v416_v57 }
 0x30c   :  { %v1535_v0 = vpop.permute.xlu0 %1534  ;;  %464 = vst.msk [vmem:[#allocation2 + $0x2f0] sm:$0xff] %vm19_vm0, %v398_v45  ;;  %v6330_v31 = vld [vmem:[#allocation2 + $0x391] sm:$0xff] }
 0x30d   :  { %1620 = vst.msk [vmem:[#allocation3 + $0x100] sm:$0xff] %vm711_vm2, %v1535_v0  ;;  %v399_v0 = vld [vmem:[%s7202_s0 + $0x150] sm:$0xff]  ;;  %v6146_v35 = vld [vmem:[#allocation2 + $0x3a8] sm:$0xff] }
 0x30e   :  { %1744 = vrot.lane.b32.xlu2 %v1661_v50, %s4393_s21  ;;  %v3410_v50 = vld [vmem:[%s7203_s1 + $0x128] sm:$0xff]  ;;  %465 = vst.msk [vmem:[#allocation2 + $0x308] sm:$0xff] %vm19_vm0, %v399_v0 }
 0x30f   :  { %1742 = vrot.lane.b32.xlu1 %v1660_v51, %s4393_s21  ;;  %v414_v0 = vld [vmem:[%s7202_s0 + $0x1c8] sm:$0xff] }
 0x310   :  { %v1551_v54 = vpop.permute.xlu2 %1550  ;;  %480 = vst.msk [vmem:[#allocation2 + $0x3f0] sm:$0xff] %vm19_vm0, %v414_v0 }
 0x311   :  { %v1531_v13 = vpop.permute.xlu1 %1530  ;;  %1628 = vst.msk [vmem:[#allocation3 + $0x1c0] sm:$0xff] %vm711_vm2, %v1551_v54 }
 0x312   :  { %1618 = vst.msk [vmem:[#allocation3 + $0xd0] sm:$0xff] %vm711_vm2, %v1531_v13  ;;  %3685 = vmatmul.f32.gmra.mxu1 %v3221_v23  ;;  %v3233_v23 = vld [vmem:[#allocation3 + $0x1a0] sm:$0xff] }
 0x313   :  { %1752 = vrot.lane.b32.xlu0 %v1665_v61, %s4393_s21  ;;  %v5946_v61 = vld [vmem:[#allocation2 + $0x270] sm:$0xff] }
 0x314   :  { %v1541_v15 = vpop.permute.xlu0 %1540  ;;  %v6045_v39 = vld [vmem:[#allocation2 + $0x2f0] sm:$0xff] }
 0x315   :  { %1623 = vst.msk [vmem:[#allocation3 + $0x148] sm:$0xff] %vm711_vm2, %v1541_v15  ;;  %v1901_v15 = vld [vmem:[#allocation2 + $0x268] sm:$0xff] }
 0x316   :  { %1750 = vrot.lane.b32.xlu2 %v1664_v30, %s4393_s21  ;;  %v3408_v30 = vld [vmem:[%s7203_s1 + $0x118] sm:$0xff]  ;;  %v6037_v33 = vld [vmem:[#allocation2 + $0x308] sm:$0xff] }
 0x317   :  { %1748 = vrot.lane.b32.xlu1 %v1663_v60, %s4393_s21  ;;  %v3407_v60 = vld [vmem:[%s7203_s1 + $0x110] sm:$0xff] }
 0x318   :  { %v1557_v3 = vpop.permute.xlu2 %1556 }
 0x319   :  { %v1537_v36 = vpop.permute.xlu1 %1536  ;;  %1631 = vst.msk [vmem:[#allocation3 + $0x208] sm:$0xff] %vm711_vm2, %v1557_v3  ;;  %v402_v3 = vld [vmem:[%s7202_s0 + $0x168] sm:$0xff] }
 0x31a   :  { %1621 = vst.msk [vmem:[#allocation3 + $0x118] sm:$0xff] %vm711_vm2, %v1537_v36  ;;  %3688 = vmatmul.f32.gmra.mxu1 %v3224_v11  ;;  %v5983_v11 = vld [vmem:[#allocation2 + $0x2a8] sm:$0xff] }
 0x31b   :  { %1758 = vrot.lane.b32.xlu0 %v1668_v8, %s4393_s21  ;;  %v403_v8 = vld [vmem:[%s7202_s0 + $0x170] sm:$0xff]  ;;  %468 = vst.msk [vmem:[#allocation2 + $0x330] sm:$0xff] %vm19_vm0, %v402_v3 }
 0x31c   :  { %v1547_v37 = vpop.permute.xlu0 %1546  ;;  %469 = vst.msk [vmem:[#allocation2 + $0x348] sm:$0xff] %vm19_vm0, %v403_v8 }
 0x31d   :  { %1626 = vst.msk [vmem:[#allocation3 + $0x190] sm:$0xff] %vm711_vm2, %v1547_v37 }
 0x31e   :  { %1756 = vrot.lane.b32.xlu2 %v1667_v32, %s4393_s21  ;;  %v5991_v32 = vld [vmem:[#allocation2 + $0x290] sm:$0xff] }
 0x31f   :  { %1754 = vrot.lane.b32.xlu1 %v1666_v22, %s4393_s21  ;;  %v5996_v22 = vld [vmem:[#allocation2 + $0x288] sm:$0xff] }
 0x320   :  { %v1563_v27 = vpop.permute.xlu2 %1562 }
 0x321   :  { %v1543_v28 = vpop.permute.xlu1 %1542  ;;  %1634 = vst.msk [vmem:[#allocation3 + $0x250] sm:$0xff] %vm711_vm2, %v1563_v27 }
 0x322   :  { %1624 = vst.msk [vmem:[#allocation3 + $0x160] sm:$0xff] %vm711_vm2, %v1543_v28  ;;  %3691 = vmatmul.f32.gmra.mxu1 %v3227_v63  ;;  %v6018_v28 = vld [vmem:[#allocation2 + $0x2c8] sm:$0xff]  ;;  %v6023_v63 = vld [vmem:[#allocation2 + $0x2b0] sm:$0xff] }
 0x323   :  { %1764 = vrot.lane.b32.xlu0 %v5666_v9, %s4393_s21  ;;  %v3413_v9 = vld [vmem:[%s7203_s1 + $0x140] sm:$0xff]  ;;  %v6064_v45 = vld [vmem:[#allocation2 + $0x330] sm:$0xff] }
 0x324   :  { %3846 = vmatpush.msra.mxu2 %v3413_v9  ;;  %v3242_v9 = vld [vmem:[#allocation3 + $0x1e8] sm:$0xff]  ;;  %v6290_v19 = vld [vmem:[#allocation2 + $0x331] sm:$0xff] }
 0x325   :  { %v1553_v34 = vpop.permute.xlu0 %1552 }
 0x326   :  { %1762 = vrot.lane.b32.xlu2 %v5629_v4, %s4393_s21  ;;  %1629 = vst.msk [vmem:[#allocation3 + $0x1d8] sm:$0xff] %vm711_vm2, %v1553_v34  ;;  %v397_v4 = vld [vmem:[%s7202_s0 + $0x140] sm:$0xff]  ;;  %3847 = vmatpush.msra.mxu2 %v3412_v42  ;;  %v410_v34 = vld [vmem:[%s7202_s0 + $0x1a8] sm:$0xff] }
 0x327   :  { %1760 = vrot.lane.b32.xlu1 %v1669_v44, %s4393_s21  ;;  %463 = vst.msk [vmem:[#allocation2 + $0x2e8] sm:$0xff] %vm19_vm0, %v397_v4  ;;  %v411_v4 = vld [vmem:[%s7202_s0 + $0x1b0] sm:$0xff]  ;;  %v413_v42 = vld [vmem:[%s7202_s0 + $0x1c0] sm:$0xff] }
 0x328   :  { %v1569_v40 = vpop.permute.xlu2 %1568  ;;  %3848 = vmatpush.msra.mxu2 %v3411_v46  ;;  %476 = vst.msk [vmem:[#allocation2 + $0x3b0] sm:$0xff] %vm19_vm0, %v410_v34 }
 0x329   :  { %v1549_v25 = vpop.permute.xlu1 %1548  ;;  %1637 = vst.msk [vmem:[#allocation3 + $0x298] sm:$0xff] %vm711_vm2, %v1569_v40 }
 0x32a   :  { %1627 = vst.msk [vmem:[#allocation3 + $0x1a8] sm:$0xff] %vm711_vm2, %v1549_v25  ;;  %3694 = vmatmul.f32.gmra.mxu1 %v3230_v6  ;;  %3849 = vmatpush.msra.mxu2 %v3410_v50  ;;  %v412_v25 = vld [vmem:[%s7202_s0 + $0x1b8] sm:$0xff]  ;;  %v6077_v50 = vld [vmem:[#allocation2 + $0x310] sm:$0xff] }
 0x32b   :  { %1963 = vrot.lane.b32.xlu0 %v1899_v52, %s4392_s12  ;;  %477 = vst.msk [vmem:[#allocation2 + $0x3c8] sm:$0xff] %vm19_vm0, %v411_v4  ;;  %v3257_v4 = vld [vmem:[#allocation3 + $0x260] sm:$0xff] }
 0x32c   :  { %3850 = vmatpush.msra.mxu2 %v3409_v53  ;;  %478 = vst.msk [vmem:[#allocation2 + $0x3d0] sm:$0xff] %vm19_vm0, %v412_v25  ;;  %v1837_v25 = vld [vmem:[#allocation2 + $0x267] sm:$0xff] }
 0x32d   :  { %v1559_v51 = vpop.permute.xlu0 %1558  ;;  %479 = vst.msk [vmem:[#allocation2 + $0x3e8] sm:$0xff] %vm19_vm0, %v413_v42 }
 0x32e   :  { %1768 = vrot.lane.b32.xlu2 %v1673_v17, %s4393_s21  ;;  %1632 = vst.msk [vmem:[#allocation3 + $0x220] sm:$0xff] %vm711_vm2, %v1559_v51  ;;  %3851 = vmatpush.msra.mxu2 %v3408_v30  ;;  %v6050_v40 = vld [vmem:[#allocation2 + $0x2e8] sm:$0xff]  ;;  %v3245_v17 = vld [vmem:[#allocation3 + $0x200] sm:$0xff]  ;;  %v6099_v30 = vld [vmem:[#allocation2 + $0x350] sm:$0xff] }
 0x32f   :  { %1766 = vrot.lane.b32.xlu1 %v1672_v55, %s4393_s21  ;;  %v6072_v55 = vld [vmem:[#allocation2 + $0x328] sm:$0xff]  ;;  %1869 = vst.msk [vmem:[#allocation3 + $0x330] sm:$0xff] %vm19_vm0, %v1837_v25 }
 0x330   :  { %v1575_v54 = vpop.permute.xlu2 %1574  ;;  %3852 = vmatpush.msra.mxu2 %v3407_v60  ;;  %v6104_v60 = vpop.f32.mrf.mxu1  ;;  %v3266_v25 = vld [vmem:[#allocation3 + $0x2a8] sm:$0xff] }
 0x331   :  { %v1555_v13 = vpop.permute.xlu1 %1554  ;;  %1640 = vst.msk [vmem:[#allocation3 + $0x2e0] sm:$0xff] %vm711_vm2, %v1575_v54  ;;  %v6091_v54 = vld [vmem:[#allocation2 + $0x368] sm:$0xff] }
 0x332   :  { %1630 = vst.msk [vmem:[#allocation3 + $0x1f0] sm:$0xff] %vm711_vm2, %v1555_v13  ;;  %3697 = vmatmul.f32.gmra.mxu1 %v3233_v23  ;;  %3853 = vmatpush.msra.mxu2 %v3406_v26  ;;  %v417_v26 = vld [vmem:[%s7202_s0 + $0x1e0] sm:$0xff]  ;;  %v6138_v7 = vld [vmem:[#allocation2 + $0x3c8] sm:$0xff] }
 0x333   :  { %1969 = vrot.lane.b32.xlu0 %v5946_v61, %s4392_s12  ;;  %7238 = vst [vmem:[#allocation15_spill] sm:$0xff] %v6104_v60  ;;  %v6164_v42 = vld [vmem:[#allocation2 + $0x3d0] sm:$0xff]  ;;  %v1863_v60 = vld [vmem:[#allocation2 + $0x407] sm:$0xff] }
 0x334   :  { %3854 = vmatpush.msra.mxu2 %v3405_v29  ;;  %483 = vst.msk [vmem:[#allocation2 + $0x428] sm:$0xff] %vm19_vm0, %v417_v26  ;;  %v6120_v29 = vld [vmem:[#allocation2 + $0x390] sm:$0xff] }
 0x335   :  { %v1565_v21 = vpop.permute.xlu0 %1564  ;;  %v1860_v5 = vld [vmem:[#allocation2 + $0x3cf] sm:$0xff]  ;;  %1895 = vst.msk [vmem:[#allocation3 + $0x5a0] sm:$0xff] %vm19_vm0, %v1863_v60 }
 0x336   :  { %1967 = vrot.lane.b32.xlu2 %v1901_v15, %s4392_s12  ;;  %1635 = vst.msk [vmem:[#allocation3 + $0x268] sm:$0xff] %vm711_vm2, %v1565_v21  ;;  %v6106_v15 = vld [vmem:[#allocation2 + $0x348] sm:$0xff] }
 0x337   :  { %1965 = vrot.lane.b32.xlu1 %v1900_v18, %s4392_s12  ;;  %v418_v21 = vld [vmem:[%s7202_s0 + $0x1e8] sm:$0xff]  ;;  %1892 = vst.msk [vmem:[#allocation3 + $0x558] sm:$0xff] %vm19_vm0, %v1860_v5 }
 0x338   :  { %v1709_v36 = vpop.permute.xlu2 %1708  ;;  %484 = vst.msk [vmem:[#allocation2 + $0x430] sm:$0xff] %vm19_vm0, %v418_v21  ;;  %v6131_v48 = vpop.f32.mrf.mxu1  ;;  %v2092_v21 = vld [vmem:[#allocation2 + $0x251] sm:$0xff] }
 0x339   :  { %v1561_v49 = vpop.permute.xlu1 %1560  ;;  %1803 = vst.msk [vmem:[#allocation3 + $0x28] sm:$0xff] %vm904_vm3, %v1709_v36 }
 0x33a   :  { %1633 = vst.msk [vmem:[#allocation3 + $0x238] sm:$0xff] %vm711_vm2, %v1561_v49  ;;  %3700 = vmatmul.f32.gmra.mxu1 %v3236_v24  ;;  %v6125_v49 = vld [vmem:[#allocation2 + $0x388] sm:$0xff]  ;;  %v6129_v24 = vld [vmem:[#allocation2 + $0x370] sm:$0xff] }
 0x33b   :  { %1975 = vrot.lane.b32.xlu0 %v5983_v11, %s4392_s12  ;;  %7239 = vst [vmem:[#allocation16_spill] sm:$0xff] %v6131_v48 }
 0x33c   :  { %2339 = vst.msk [vmem:[#allocation3 + $0x530] sm:$0xff] %vm19_vm0, %v1860_v5 }
 0x33d   :  { %v1571_v37 = vpop.permute.xlu0 %1570  ;;  %2342 = vst.msk [vmem:[#allocation3 + $0x578] sm:$0xff] %vm19_vm0, %v1863_v60  ;;  %v6408_v60 = vpop.f32.mrf.mxu0 }
 0x33e   :  { %1973 = vrot.lane.b32.xlu2 %v5991_v32, %s4392_s12  ;;  %1638 = vst.msk [vmem:[#allocation3 + $0x2b0] sm:$0xff] %vm711_vm2, %v1571_v37 }
 0x33f   :  { %1971 = vrot.lane.b32.xlu1 %v5996_v22, %s4392_s12  ;;  %v6388_v5 = vld [vmem:[#allocation2 + $0x429] sm:$0xff] }
 0x340   :  { %v1715_v38 = vpop.permute.xlu2 %1714  ;;  %v3186_v3 = vld [vmem:[#allocation3 + $0x28] sm:$0xff]  ;;  %7248 = vst [vmem:[#allocation25_spill] sm:$0xff] %v6388_v5 }
 0x341   :  { %v1567_v27 = vpop.permute.xlu1 %1566  ;;  %1806 = vst.msk [vmem:[#allocation3 + $0x70] sm:$0xff] %vm904_vm3, %v1715_v38 }
 0x342   :  { %1636 = vst.msk [vmem:[#allocation3 + $0x280] sm:$0xff] %vm711_vm2, %v1567_v27  ;;  %3703 = vmatmul.f32.gmra.mxu1 %v3239_v16  ;;  %v3254_v16 = vld [vmem:[#allocation3 + $0x248] sm:$0xff] }
 0x343   :  { %1981 = vrot.lane.b32.xlu0 %v6010_v62, %s4392_s12 }
 0x345   :  { %v1577_v12 = vpop.permute.xlu0 %1576 }
 0x346   :  { %1979 = vrot.lane.b32.xlu2 %v6018_v28, %s4392_s12  ;;  %1641 = vst.msk [vmem:[#allocation3 + $0x2f8] sm:$0xff] %vm711_vm2, %v1577_v12  ;;  %v6142_v12 = vld [vmem:[#allocation2 + $0x3b0] sm:$0xff] }
 0x347   :  { %1977 = vrot.lane.b32.xlu1 %v6023_v63, %s4392_s12 }
 0x348   :  { %v1721_v44 = vpop.permute.xlu2 %1720  ;;  %v3195_v58 = vld [vmem:[#allocation3 + $0x70] sm:$0xff] }
 0x349   :  { %v1573_v47 = vpop.permute.xlu1 %1572  ;;  %1809 = vst.msk [vmem:[#allocation3 + $0xb8] sm:$0xff] %vm904_vm3, %v1721_v44  ;;  %v6153_v44 = vpop.f32.mrf.mxu1 }
 0x34a   :  { %1639 = vst.msk [vmem:[#allocation3 + $0x2c8] sm:$0xff] %vm711_vm2, %v1573_v47  ;;  %3706 = vmatmul.f32.gmra.mxu1 %v3242_v9  ;;  %v6155_v47 = vld [vmem:[#allocation2 + $0x3f0] sm:$0xff] }
 0x34b   :  { %1987 = vrot.lane.b32.xlu0 %v6037_v33, %s4392_s12  ;;  %7240 = vst [vmem:[#allocation17_spill] sm:$0xff] %v6153_v44 }
 0x34d   :  { %v1711_v52 = vpop.permute.xlu0 %1710 }
 0x34e   :  { %1985 = vrot.lane.b32.xlu2 %v6045_v39, %s4392_s12  ;;  %1804 = vst.msk [vmem:[#allocation3 + $0x40] sm:$0xff] %vm904_vm3, %v1711_v52 }
 0x34f   :  { %1983 = vrot.lane.b32.xlu1 %v6050_v40, %s4392_s12 }
 0x350   :  { %v1727_v6 = vpop.permute.xlu2 %1726 }
 0x351   :  { %v1707_v46 = vpop.permute.xlu1 %1706  ;;  %1812 = vst.msk [vmem:[#allocation3 + $0x100] sm:$0xff] %vm904_vm3, %v1727_v6  ;;  %v6159_v6 = vld [vmem:[#allocation2 + $0x3e8] sm:$0xff]  ;;  %v6174_v57 = vpop.f32.mrf.mxu1 }
 0x352   :  { %1802 = vst.msk [vmem:[#allocation3 + $0x10] sm:$0xff] %vm904_vm3, %v1707_v46  ;;  %3709 = vmatmul.f32.gmra.mxu1 %v3245_v17 }
 0x353   :  { %1993 = vrot.lane.b32.xlu0 %v6064_v45, %s4392_s12  ;;  %7241 = vst [vmem:[#allocation18_spill] sm:$0xff] %v6174_v57 }
 0x355   :  { %v1717_v51 = vpop.permute.xlu0 %1716  ;;  %v3189_v2 = vld [vmem:[#allocation3 + $0x40] sm:$0xff] }
 0x356   :  { %1991 = vrot.lane.b32.xlu2 %v6072_v55, %s4392_s12  ;;  %1807 = vst.msk [vmem:[#allocation3 + $0x88] sm:$0xff] %vm904_vm3, %v1717_v51  ;;  %v6171_v51 = vld [vmem:[#allocation2 + $0x428] sm:$0xff] }
 0x357   :  { %1989 = vrot.lane.b32.xlu1 %v6077_v50, %s4392_s12 }
 0x358   :  { %v1733_v53 = vpop.permute.xlu2 %1732 }
 0x359   :  { %v1713_v13 = vpop.permute.xlu1 %1712  ;;  %1815 = vst.msk [vmem:[#allocation3 + $0x148] sm:$0xff] %vm904_vm3, %v1733_v53  ;;  %v3183_v23 = vld [vmem:[#allocation3 + $0x10] sm:$0xff]  ;;  %v3260_v53 = vld [vmem:[#allocation3 + $0x278] sm:$0xff] }
 0x35a   :  { %1805 = vst.msk [vmem:[#allocation3 + $0x58] sm:$0xff] %vm904_vm3, %v1713_v13  ;;  %3855 = vmatmul.f32.vlgmr.msra.gmra.mxu2 %v3183_v23  ;;  %3712 = vmatmul.f32.gmra.mxu1 %v3248_v59  ;;  %v1840_v13 = vld [vmem:[#allocation2 + $0x28f] sm:$0xff] }
 0x35b   :  { %1999 = vrot.lane.b32.xlu0 %v6091_v54, %s4392_s12  ;;  %v6177_v23 = vld [vmem:[#allocation2 + $0x410] sm:$0xff]  ;;  %1872 = vst.msk [vmem:[#allocation3 + $0x378] sm:$0xff] %vm19_vm0, %v1840_v13  ;;  %v6182_v59 = vld [vmem:[#allocation2 + $0x408] sm:$0xff] }
 0x35c   :  { %v1838_v13 = vld [vmem:[#allocation2 + $0x26f] sm:$0xff] }
 0x35d   :  { %v1723_v18 = vpop.permute.xlu0 %1722  ;;  %1870 = vst.msk [vmem:[#allocation3 + $0x348] sm:$0xff] %vm19_vm0, %v1838_v13 }
 0x35e   :  { %1997 = vrot.lane.b32.xlu2 %v6099_v30, %s4392_s12  ;;  %1810 = vst.msk [vmem:[#allocation3 + $0xd0] sm:$0xff] %vm904_vm3, %v1723_v18 }
 0x35f   :  { %1995 = vrot.lane.b32.xlu1 %v6106_v15, %s4392_s12  ;;  %2317 = vst.msk [vmem:[#allocation3 + $0x320] sm:$0xff] %vm19_vm0, %v1838_v13  ;;  %v3272_v13 = vld [vmem:[#allocation3 + $0x2d8] sm:$0xff] }
 0x360   :  { %v1739_v8 = vpop.permute.xlu2 %1738 }
 0x361   :  { %v1719_v36 = vpop.permute.xlu1 %1718  ;;  %1818 = vst.msk [vmem:[#allocation3 + $0x190] sm:$0xff] %vm904_vm3, %v1739_v8  ;;  %v3192_v52 = vld [vmem:[#allocation3 + $0x58] sm:$0xff]  ;;  %v3198_v8 = vld [vmem:[#allocation3 + $0x88] sm:$0xff] }
 0x362   :  { %1808 = vst.msk [vmem:[#allocation3 + $0xa0] sm:$0xff] %vm904_vm3, %v1719_v36  ;;  %3858 = vmatmul.f32.gmra.mxu2 %v3186_v3  ;;  %3715 = vmatmul.f32.gmra.mxu1 %v3251_v20  ;;  %v3263_v36 = vld [vmem:[#allocation3 + $0x290] sm:$0xff]  ;;  %v1843_v20 = vld [vmem:[#allocation2 + $0x2c7] sm:$0xff] }
 0x363   :  { %2005 = vrot.lane.b32.xlu0 %v6120_v29, %s4392_s12  ;;  %1875 = vst.msk [vmem:[#allocation3 + $0x3c0] sm:$0xff] %vm19_vm0, %v1843_v20  ;;  %v1849_v20 = vld [vmem:[#allocation2 + $0x327] sm:$0xff] }
 0x364   :  { %1881 = vst.msk [vmem:[#allocation3 + $0x450] sm:$0xff] %vm19_vm0, %v1849_v20 }
 0x365   :  { %v1729_v37 = vpop.permute.xlu0 %1728 }
 0x366   :  { %2003 = vrot.lane.b32.xlu2 %v6125_v49, %s4392_s12  ;;  %1813 = vst.msk [vmem:[#allocation3 + $0x118] sm:$0xff] %vm904_vm3, %v1729_v37  ;;  %v2091_v37 = vld [vmem:[#allocation2 + $0x249] sm:$0xff] }
 0x367   :  { %2001 = vrot.lane.b32.xlu1 %v6129_v24, %s4392_s12 }
 0x368   :  { %v1745_v38 = vpop.permute.xlu2 %1744 }
 0x369   :  { %v1725_v27 = vpop.permute.xlu1 %1724  ;;  %1821 = vst.msk [vmem:[#allocation3 + $0x1d8] sm:$0xff] %vm904_vm3, %v1745_v38  ;;  %v6195_v38 = vld [vmem:[#allocation2 + $0x430] sm:$0xff] }
 0x36a   :  { %1811 = vst.msk [vmem:[#allocation3 + $0xe8] sm:$0xff] %vm904_vm3, %v1725_v27  ;;  %3861 = vmatmul.f32.gmra.mxu2 %v3189_v2  ;;  %3718 = vmatmul.f32.gmra.mxu1 %v3254_v16  ;;  %v6193_v2 = vpop.f32.mrf.mxu1  ;;  %v1835_v16 = vld [vmem:[#allocation2 + $0x247] sm:$0xff] }
 0x36b   :  { %2011 = vrot.lane.b32.xlu0 %v6138_v7, %s4392_s12  ;;  %7242 = vst [vmem:[#allocation19_spill] sm:$0xff] %v6193_v2 }
 0x36c   :  { %1867 = vst.msk [vmem:[#allocation3 + $0x300] sm:$0xff] %vm19_vm0, %v1835_v16 }
 0x36d   :  { %v1735_v41 = vpop.permute.xlu0 %1734 }
 0x36e   :  { %2009 = vrot.lane.b32.xlu2 %v6142_v12, %s4392_s12  ;;  %1816 = vst.msk [vmem:[#allocation3 + $0x160] sm:$0xff] %vm904_vm3, %v1735_v41 }
 0x36f   :  { %2007 = vrot.lane.b32.xlu1 %v6146_v35, %s4392_s12 }
 0x370   :  { %v1751_v34 = vpop.permute.xlu2 %1750 }
 0x371   :  { %v1731_v9 = vpop.permute.xlu1 %1730  ;;  %1824 = vst.msk [vmem:[#allocation3 + $0x220] sm:$0xff] %vm904_vm3, %v1751_v34  ;;  %v6201_v34 = vld [vmem:[#allocation2 + $0x289] sm:$0xff] }
 0x372   :  { %1814 = vst.msk [vmem:[#allocation3 + $0x130] sm:$0xff] %vm904_vm3, %v1731_v9  ;;  %3864 = vmatmul.f32.gmra.mxu2 %v3192_v52  ;;  %3721 = vmatmul.f32.gmra.mxu1 %v3257_v4  ;;  %v1836_v9 = vld [vmem:[#allocation2 + $0x24f] sm:$0xff]  ;;  %v3201_v4 = vld [vmem:[#allocation3 + $0xa0] sm:$0xff] }
 0x373   :  { %2017 = vrot.lane.b32.xlu0 %v6155_v47, %s4392_s12  ;;  %1868 = vst.msk [vmem:[#allocation3 + $0x318] sm:$0xff] %vm19_vm0, %v1836_v9 }
 0x375   :  { %v1741_v46 = vpop.permute.xlu0 %1740 }
 0x376   :  { %2015 = vrot.lane.b32.xlu2 %v6159_v6, %s4392_s12  ;;  %1819 = vst.msk [vmem:[#allocation3 + $0x1a8] sm:$0xff] %vm904_vm3, %v1741_v46  ;;  %v1846_v46 = vld [vmem:[#allocation2 + $0x2ef] sm:$0xff] }
 0x377   :  { %2013 = vrot.lane.b32.xlu1 %v6164_v42, %s4392_s12  ;;  %1878 = vst.msk [vmem:[#allocation3 + $0x408] sm:$0xff] %vm19_vm0, %v1846_v46 }
 0x378   :  { %v1757_v17 = vpop.permute.xlu2 %1756 }
 0x379   :  { %v1737_v0 = vpop.permute.xlu1 %1736  ;;  %1827 = vst.msk [vmem:[#allocation3 + $0x268] sm:$0xff] %vm904_vm3, %v1757_v17  ;;  %v6206_v17 = vld [vmem:[#allocation2 + $0x271] sm:$0xff] }
 0x37a   :  { %1817 = vst.msk [vmem:[#allocation3 + $0x178] sm:$0xff] %vm904_vm3, %v1737_v0  ;;  %3867 = vmatmul.f32.gmra.mxu2 %v3195_v58  ;;  %3724 = vmatmul.f32.gmra.mxu1 %v3260_v53  ;;  %v6211_v0 = vld [vmem:[#allocation2 + $0x269] sm:$0xff]  ;;  %v6214_v53 = vpop.f32.mrf.mxu1 }
 0x37b   :  { %2023 = vrot.lane.b32.xlu0 %v6171_v51, %s4392_s12  ;;  %7243 = vst [vmem:[#allocation20_spill] sm:$0xff] %v6214_v53  ;;  %v6310_v53 = vld [vmem:[#allocation2 + $0x369] sm:$0xff] }
 0x37d   :  { %v1747_v18 = vpop.permute.xlu0 %1746 }
 0x37e   :  { %2021 = vrot.lane.b32.xlu2 %v6177_v23, %s4392_s12  ;;  %1822 = vst.msk [vmem:[#allocation3 + $0x1f0] sm:$0xff] %vm904_vm3, %v1747_v18 }
 0x37f   :  { %2019 = vrot.lane.b32.xlu1 %v6182_v59, %s4392_s12 }
 0x380   :  { %v1763_v26 = vpop.permute.xlu2 %1762 }
 0x381   :  { %v1743_v3 = vpop.permute.xlu1 %1742  ;;  %1830 = vst.msk [vmem:[#allocation3 + $0x2b0] sm:$0xff] %vm904_vm3, %v1763_v26  ;;  %v6221_v26 = vld [vmem:[#allocation2 + $0x2b1] sm:$0xff] }
 0x382   :  { %1820 = vst.msk [vmem:[#allocation3 + $0x1c0] sm:$0xff] %vm904_vm3, %v1743_v3  ;;  %3870 = vmatmul.f32.gmra.mxu2 %v3198_v8  ;;  %3727 = vmatmul.f32.gmra.mxu1 %v3263_v36  ;;  %v3204_v8 = vld [vmem:[#allocation3 + $0xb8] sm:$0xff]  ;;  %v3269_v36 = vld [vmem:[#allocation3 + $0x2c0] sm:$0xff]  ;;  %v6241_v9 = vpop.f32.mrf.mxu1 }
 0x383   :  { %2157 = vrot.lane.b32.xlu0 %v2092_v21, %s4393_s21  ;;  %v1839_v21 = vld [vmem:[#allocation2 + $0x287] sm:$0xff]  ;;  %7244 = vst [vmem:[#allocation21_spill] sm:$0xff] %v6241_v9 }
 0x384   :  { %1871 = vst.msk [vmem:[#allocation3 + $0x360] sm:$0xff] %vm19_vm0, %v1839_v21 }
 0x385   :  { %v1753_v27 = vpop.permute.xlu0 %1752  ;;  %2318 = vst.msk [vmem:[#allocation3 + $0x338] sm:$0xff] %vm19_vm0, %v1839_v21  ;;  %v6253_v21 = vld [vmem:[#allocation2 + $0x2c9] sm:$0xff] }
 0x386   :  { %2155 = vrot.lane.b32.xlu2 %v2091_v37, %s4393_s21  ;;  %1825 = vst.msk [vmem:[#allocation3 + $0x238] sm:$0xff] %vm904_vm3, %v1753_v27  ;;  %v6226_v37 = vld [vmem:[#allocation2 + $0x2a9] sm:$0xff]  ;;  %v6231_v27 = vld [vmem:[#allocation2 + $0x291] sm:$0xff] }
 0x387   :  { %2025 = vrot.lane.b32.xlu1 %v6195_v38, %s4392_s12 }
 0x388   :  { %v1769_v41 = vpop.permute.xlu2 %1768 }
 0x389   :  { %v1749_v52 = vpop.permute.xlu1 %1748  ;;  %1833 = vst.msk [vmem:[#allocation3 + $0x2f8] sm:$0xff] %vm904_vm3, %v1769_v41  ;;  %v1841_v41 = vld [vmem:[#allocation2 + $0x2a7] sm:$0xff] }
 0x38a   :  { %1823 = vst.msk [vmem:[#allocation3 + $0x208] sm:$0xff] %vm904_vm3, %v1749_v52  ;;  %3873 = vmatmul.f32.gmra.mxu2 %v3201_v4  ;;  %3730 = vmatmul.f32.gmra.mxu1 %v3266_v25  ;;  %v6243_v4 = vld [vmem:[#allocation2 + $0x2e9] sm:$0xff] }
 0x38b   :  { %2163 = vrot.lane.b32.xlu0 %v6201_v34, %s4393_s21  ;;  %1873 = vst.msk [vmem:[#allocation3 + $0x390] sm:$0xff] %vm19_vm0, %v1841_v41  ;;  %v1842_v25 = vld [vmem:[#allocation2 + $0x2af] sm:$0xff] }
 0x38c   :  { %1874 = vst.msk [vmem:[#allocation3 + $0x3a8] sm:$0xff] %vm19_vm0, %v1842_v25 }
 0x38d   :  { %v1759_v58 = vpop.permute.xlu0 %1758  ;;  %2320 = vst.msk [vmem:[#allocation3 + $0x368] sm:$0xff] %vm19_vm0, %v1841_v41  ;;  %v3210_v41 = vld [vmem:[#allocation3 + $0xe8] sm:$0xff] }
 0x38e   :  { %2161 = vrot.lane.b32.xlu2 %v6206_v17, %s4393_s21  ;;  %1828 = vst.msk [vmem:[#allocation3 + $0x280] sm:$0xff] %vm904_vm3, %v1759_v58  ;;  %v3207_v58 = vld [vmem:[#allocation3 + $0xd0] sm:$0xff] }
 0x38f   :  { %2159 = vrot.lane.b32.xlu1 %v6211_v0, %s4393_s21  ;;  %2321 = vst.msk [vmem:[#allocation3 + $0x380] sm:$0xff] %vm19_vm0, %v1842_v25  ;;  %v6275_v25 = vld [vmem:[#allocation2 + $0x2f1] sm:$0xff] }
 0x390   :  { %v1968_v18 = vpop.permute.xlu2 %1967 }
 0x391   :  { %v1755_v3 = vpop.permute.xlu1 %1754  ;;  %2061 = vst.msk [vmem:[#allocation3 + $0x330] sm:$0xff] %vm711_vm2, %v1968_v18  ;;  %v1852_v18 = vld [vmem:[#allocation2 + $0x34f] sm:$0xff] }
 0x392   :  { %1826 = vst.msk [vmem:[#allocation3 + $0x250] sm:$0xff] %vm904_vm3, %v1755_v3  ;;  %3876 = vmatmul.f32.gmra.mxu2 %v3204_v8  ;;  %3733 = vmatmul.f32.gmra.mxu1 %v3269_v36  ;;  %v6248_v3 = vld [vmem:[#allocation2 + $0x2d1] sm:$0xff] }
 0x393   :  { %2169 = vrot.lane.b32.xlu0 %v6221_v26, %s4393_s21  ;;  %1884 = vst.msk [vmem:[#allocation3 + $0x498] sm:$0xff] %vm19_vm0, %v1852_v18  ;;  %v1844_v36 = vld [vmem:[#allocation2 + $0x2cf] sm:$0xff]  ;;  %v1855_v18 = vld [vmem:[#allocation2 + $0x387] sm:$0xff] }
 0x394   :  { %1876 = vst.msk [vmem:[#allocation3 + $0x3d8] sm:$0xff] %vm19_vm0, %v1844_v36 }
 0x395   :  { %v1765_v16 = vpop.permute.xlu0 %1764  ;;  %1887 = vst.msk [vmem:[#allocation3 + $0x4e0] sm:$0xff] %vm19_vm0, %v1855_v18  ;;  %v1848_v18 = vld [vmem:[#allocation2 + $0x30f] sm:$0xff] }
 0x396   :  { %2167 = vrot.lane.b32.xlu2 %v6226_v37, %s4393_s21  ;;  %1831 = vst.msk [vmem:[#allocation3 + $0x2c8] sm:$0xff] %vm904_vm3, %v1765_v16  ;;  %v6263_v16 = vld [vmem:[#allocation2 + $0x311] sm:$0xff] }
 0x397   :  { %2165 = vrot.lane.b32.xlu1 %v6231_v27, %s4393_s21  ;;  %2323 = vst.msk [vmem:[#allocation3 + $0x3b0] sm:$0xff] %vm19_vm0, %v1844_v36  ;;  %v3213_v36 = vld [vmem:[#allocation3 + $0x100] sm:$0xff] }
 0x398   :  { %v1974_v52 = vpop.permute.xlu2 %1973  ;;  %1880 = vst.msk [vmem:[#allocation3 + $0x438] sm:$0xff] %vm19_vm0, %v1848_v18 }
 0x399   :  { %v1761_v46 = vpop.permute.xlu1 %1760  ;;  %2064 = vst.msk [vmem:[#allocation3 + $0x378] sm:$0xff] %vm711_vm2, %v1974_v52  ;;  %v1845_v52 = vld [vmem:[#allocation2 + $0x2e7] sm:$0xff] }
 0x39a   :  { %1829 = vst.msk [vmem:[#allocation3 + $0x298] sm:$0xff] %vm904_vm3, %v1761_v46  ;;  %3879 = vmatmul.f32.gmra.mxu2 %v3207_v58  ;;  %3736 = vmatmul.f32.gmra.mxu1 %v3272_v13  ;;  %v3275_v58 = vld [vmem:[#allocation3 + $0x2f0] sm:$0xff]  ;;  %v6267_v13 = vpop.f32.mrf.mxu1 }
 0x39b   :  { %2175 = vrot.lane.b32.xlu0 %v6243_v4, %s4393_s21  ;;  %7245 = vst [vmem:[#allocation22_spill] sm:$0xff] %v6267_v13 }
 0x39c   :  { %1877 = vst.msk [vmem:[#allocation3 + $0x3f0] sm:$0xff] %vm19_vm0, %v1845_v52 }
 0x39d   :  { %v1964_v8 = vpop.permute.xlu0 %1963  ;;  %2324 = vst.msk [vmem:[#allocation3 + $0x3c8] sm:$0xff] %vm19_vm0, %v1845_v52  ;;  %v6295_v52 = vld [vmem:[#allocation2 + $0x329] sm:$0xff] }
 0x39e   :  { %2173 = vrot.lane.b32.xlu2 %v6248_v3, %s4393_s21  ;;  %2059 = vst.msk [vmem:[#allocation3 + $0x300] sm:$0xff] %vm711_vm2, %v1964_v8  ;;  %v6270_v8 = vld [vmem:[#allocation2 + $0x309] sm:$0xff] }
 0x39f   :  { %2171 = vrot.lane.b32.xlu1 %v6253_v21, %s4393_s21  ;;  %2327 = vst.msk [vmem:[#allocation3 + $0x410] sm:$0xff] %vm19_vm0, %v1848_v18  ;;  %v6315_v18 = vld [vmem:[#allocation2 + $0x351] sm:$0xff] }
 0x3a0   :  { %v1980_v20 = vpop.permute.xlu2 %1979 }
 0x3a1   :  { %v1767_v46 = vpop.permute.xlu1 %1766  ;;  %2067 = vst.msk [vmem:[#allocation3 + $0x3c0] sm:$0xff] %vm711_vm2, %v1980_v20 }
 0x3a2   :  { %1832 = vst.msk [vmem:[#allocation3 + $0x2e0] sm:$0xff] %vm904_vm3, %v1767_v46  ;;  %3882 = vmatmul.f32.gmra.mxu2 %v3210_v41  ;;  %3739 = vmatmul.f32.gmra.mxu1 %v3275_v58  ;;  %v1847_v46 = vld [vmem:[#allocation2 + $0x307] sm:$0xff] }
 0x3a3   :  { %2181 = vrot.lane.b32.xlu0 %v6263_v16, %s4393_s21  ;;  %v6285_v58 = vld [vmem:[#allocation2 + $0x349] sm:$0xff]  ;;  %1879 = vst.msk [vmem:[#allocation3 + $0x420] sm:$0xff] %vm19_vm0, %v1847_v46 }
 0x3a4   :  { %2326 = vst.msk [vmem:[#allocation3 + $0x3f8] sm:$0xff] %vm19_vm0, %v1847_v46  ;;  %v3216_v46 = vld [vmem:[#allocation3 + $0x118] sm:$0xff] }
 0x3a5   :  { %v1970_v20 = vpop.permute.xlu0 %1969 }
 0x3a6   :  { %2179 = vrot.lane.b32.xlu2 %v6270_v8, %s4393_s21  ;;  %2062 = vst.msk [vmem:[#allocation3 + $0x348] sm:$0xff] %vm711_vm2, %v1970_v20  ;;  %v1858_v20 = vld [vmem:[#allocation2 + $0x3af] sm:$0xff] }
 0x3a7   :  { %2177 = vrot.lane.b32.xlu1 %v6275_v25, %s4393_s21  ;;  %1890 = vst.msk [vmem:[#allocation3 + $0x528] sm:$0xff] %vm19_vm0, %v1858_v20  ;;  %v1851_v20 = vld [vmem:[#allocation2 + $0x347] sm:$0xff] }
 0x3a8   :  { %v1986_v41 = vpop.permute.xlu2 %1985  ;;  %1883 = vst.msk [vmem:[#allocation3 + $0x480] sm:$0xff] %vm19_vm0, %v1851_v20 }
 0x3a9   :  { %v1966_v13 = vpop.permute.xlu1 %1965  ;;  %2070 = vst.msk [vmem:[#allocation3 + $0x408] sm:$0xff] %vm711_vm2, %v1986_v41 }
 0x3aa   :  { %2060 = vst.msk [vmem:[#allocation3 + $0x318] sm:$0xff] %vm711_vm2, %v1966_v13  ;;  %3885 = vmatmul.f32.gmra.mxu2 %v3213_v36  ;;  %v1850_v13 = vld [vmem:[#allocation2 + $0x32f] sm:$0xff] }
 0x3ab   :  { %2187 = vrot.lane.b32.xlu0 %v6285_v58, %s4393_s21  ;;  %v6305_v36 = vld [vmem:[#allocation2 + $0x371] sm:$0xff]  ;;  %1882 = vst.msk [vmem:[#allocation3 + $0x468] sm:$0xff] %vm19_vm0, %v1850_v13 }
 0x3ac   :  { %2329 = vst.msk [vmem:[#allocation3 + $0x440] sm:$0xff] %vm19_vm0, %v1850_v13  ;;  %v3219_v13 = vld [vmem:[#allocation3 + $0x130] sm:$0xff] }
 0x3ad   :  { %v1976_v9 = vpop.permute.xlu0 %1975  ;;  %2330 = vst.msk [vmem:[#allocation3 + $0x458] sm:$0xff] %vm19_vm0, %v1851_v20  ;;  %v6335_v20 = vld [vmem:[#allocation2 + $0x389] sm:$0xff] }
 0x3ae   :  { %2185 = vrot.lane.b32.xlu2 %v6290_v19, %s4393_s21  ;;  %2065 = vst.msk [vmem:[#allocation3 + $0x390] sm:$0xff] %vm711_vm2, %v1976_v9  ;;  %v1861_v9 = vld [vmem:[#allocation2 + $0x3e7] sm:$0xff] }
 0x3af   :  { %2183 = vrot.lane.b32.xlu1 %v6295_v52, %s4393_s21  ;;  %1893 = vst.msk [vmem:[#allocation3 + $0x570] sm:$0xff] %vm19_vm0, %v1861_v9  ;;  %v1854_v9 = vld [vmem:[#allocation2 + $0x36f] sm:$0xff] }
 0x3b0   :  { %v1992_v41 = vpop.permute.xlu2 %1991  ;;  %1886 = vst.msk [vmem:[#allocation3 + $0x4c8] sm:$0xff] %vm19_vm0, %v1854_v9 }
 0x3b1   :  { %v1972_v43 = vpop.permute.xlu1 %1971  ;;  %2073 = vst.msk [vmem:[#allocation3 + $0x450] sm:$0xff] %vm711_vm2, %v1992_v41 }
 0x3b2   :  { %2063 = vst.msk [vmem:[#allocation3 + $0x360] sm:$0xff] %vm711_vm2, %v1972_v43  ;;  %3888 = vmatmul.f32.gmra.mxu2 %v3216_v46  ;;  %v1853_v43 = vld [vmem:[#allocation2 + $0x367] sm:$0xff] }
 0x3b3   :  { %2193 = vrot.lane.b32.xlu0 %v6305_v36, %s4393_s21  ;;  %v6325_v46 = vld [vmem:[#allocation2 + $0x3a9] sm:$0xff]  ;;  %1885 = vst.msk [vmem:[#allocation3 + $0x4b0] sm:$0xff] %vm19_vm0, %v1853_v43 }
 0x3b4   :  { %2332 = vst.msk [vmem:[#allocation3 + $0x488] sm:$0xff] %vm19_vm0, %v1853_v43  ;;  %v3222_v43 = vld [vmem:[#allocation3 + $0x148] sm:$0xff] }
 0x3b5   :  { %v1982_v1 = vpop.permute.xlu0 %1981  ;;  %2333 = vst.msk [vmem:[#allocation3 + $0x4a0] sm:$0xff] %vm19_vm0, %v1854_v9  ;;  %v6355_v9 = vld [vmem:[#allocation2 + $0x3b1] sm:$0xff] }
 0x3b6   :  { %2191 = vrot.lane.b32.xlu2 %v6310_v53, %s4393_s21  ;;  %2068 = vst.msk [vmem:[#allocation3 + $0x3d8] sm:$0xff] %vm711_vm2, %v1982_v1  ;;  %v1864_v1 = vld [vmem:[#allocation2 + $0x40f] sm:$0xff] }
 0x3b7   :  { %2189 = vrot.lane.b32.xlu1 %v6315_v18, %s4393_s21  ;;  %1896 = vst.msk [vmem:[#allocation3 + $0x5b8] sm:$0xff] %vm19_vm0, %v1864_v1  ;;  %v1857_v1 = vld [vmem:[#allocation2 + $0x3a7] sm:$0xff] }
 0x3b8   :  { %v1998_v41 = vpop.permute.xlu2 %1997  ;;  %1889 = vst.msk [vmem:[#allocation3 + $0x510] sm:$0xff] %vm19_vm0, %v1857_v1 }
 0x3b9   :  { %v1978_v2 = vpop.permute.xlu1 %1977  ;;  %2076 = vst.msk [vmem:[#allocation3 + $0x498] sm:$0xff] %vm711_vm2, %v1998_v41 }
 0x3ba   :  { %2066 = vst.msk [vmem:[#allocation3 + $0x3a8] sm:$0xff] %vm711_vm2, %v1978_v2  ;;  %3891 = vmatmul.f32.gmra.mxu2 %v3219_v13  ;;  %v1856_v2 = vld [vmem:[#allocation2 + $0x38f] sm:$0xff] }
 0x3bb   :  { %2199 = vrot.lane.b32.xlu0 %v6325_v46, %s4393_s21  ;;  %v6345_v13 = vld [vmem:[#allocation2 + $0x3d1] sm:$0xff]  ;;  %1888 = vst.msk [vmem:[#allocation3 + $0x4f8] sm:$0xff] %vm19_vm0, %v1856_v2 }
 0x3bc   :  { %2335 = vst.msk [vmem:[#allocation3 + $0x4d0] sm:$0xff] %vm19_vm0, %v1856_v2  ;;  %v3225_v2 = vld [vmem:[#allocation3 + $0x160] sm:$0xff] }
 0x3bd   :  { %v1988_v57 = vpop.permute.xlu0 %1987  ;;  %2336 = vst.msk [vmem:[#allocation3 + $0x4e8] sm:$0xff] %vm19_vm0, %v1857_v1  ;;  %v6369_v1 = vld [vmem:[#allocation2 + $0x3f1] sm:$0xff] }
 0x3be   :  { %2197 = vrot.lane.b32.xlu2 %v6330_v31, %s4393_s21  ;;  %2071 = vst.msk [vmem:[#allocation3 + $0x420] sm:$0xff] %vm711_vm2, %v1988_v57  ;;  %v6350_v57 = vld [vmem:[#allocation2 + $0x3c9] sm:$0xff] }
 0x3bf   :  { %2195 = vrot.lane.b32.xlu1 %v6335_v20, %s4393_s21  ;;  %7246 = vst [vmem:[#allocation23_spill] sm:$0xff] %v6369_v1 }
 0x3c0   :  { %v2004_v41 = vpop.permute.xlu2 %2003 }
 0x3c1   :  { %v1984_v10 = vpop.permute.xlu1 %1983  ;;  %2079 = vst.msk [vmem:[#allocation3 + $0x4e0] sm:$0xff] %vm711_vm2, %v2004_v41 }
 0x3c2   :  { %2069 = vst.msk [vmem:[#allocation3 + $0x3f0] sm:$0xff] %vm711_vm2, %v1984_v10  ;;  %3894 = vmatmul.f32.gmra.mxu2 %v3222_v43  ;;  %v1859_v10 = vld [vmem:[#allocation2 + $0x3c7] sm:$0xff] }
 0x3c3   :  { %2205 = vrot.lane.b32.xlu0 %v6345_v13, %s4393_s21  ;;  %v6364_v43 = vld [vmem:[#allocation2 + $0x409] sm:$0xff]  ;;  %1891 = vst.msk [vmem:[#allocation3 + $0x540] sm:$0xff] %vm19_vm0, %v1859_v10 }
 0x3c4   :  { %2338 = vst.msk [vmem:[#allocation3 + $0x518] sm:$0xff] %vm19_vm0, %v1859_v10  ;;  %v3228_v10 = vld [vmem:[#allocation3 + $0x178] sm:$0xff] }
 0x3c5   :  { %v1994_v44 = vpop.permute.xlu0 %1993 }
 0x3c6   :  { %2203 = vrot.lane.b32.xlu2 %v6350_v57, %s4393_s21  ;;  %2074 = vst.msk [vmem:[#allocation3 + $0x468] sm:$0xff] %vm711_vm2, %v1994_v44  ;;  %v6374_v44 = vld [vmem:[#allocation2 + $0x3e9] sm:$0xff] }
 0x3c7   :  { %2201 = vrot.lane.b32.xlu1 %v6355_v9, %s4393_s21 }
 0x3c8   :  { %v2010_v41 = vpop.permute.xlu2 %2009 }
 0x3c9   :  { %v1990_v48 = vpop.permute.xlu1 %1989  ;;  %2082 = vst.msk [vmem:[#allocation3 + $0x528] sm:$0xff] %vm711_vm2, %v2010_v41 }
 0x3ca   :  { %2072 = vst.msk [vmem:[#allocation3 + $0x438] sm:$0xff] %vm711_vm2, %v1990_v48  ;;  %3897 = vmatmul.f32.gmra.mxu2 %v3225_v2  ;;  %v1862_v48 = vld [vmem:[#allocation2 + $0x3ef] sm:$0xff] }
 0x3cb   :  { %2211 = vrot.lane.b32.xlu0 %v6364_v43, %s4393_s21  ;;  %v6383_v2 = vld [vmem:[#allocation2 + $0x431] sm:$0xff]  ;;  %1894 = vst.msk [vmem:[#allocation3 + $0x588] sm:$0xff] %vm19_vm0, %v1862_v48 }
 0x3cc   :  { %7247 = vst [vmem:[#allocation24_spill] sm:$0xff] %v6383_v2 }
 0x3cd   :  { %v2000_v56 = vpop.permute.xlu0 %1999  ;;  %2341 = vst.msk [vmem:[#allocation3 + $0x560] sm:$0xff] %vm19_vm0, %v1862_v48  ;;  %v3231_v48 = vld [vmem:[#allocation3 + $0x190] sm:$0xff] }
 0x3ce   :  { %2209 = vrot.lane.b32.xlu2 %v6369_v1, %s4393_s21  ;;  %2077 = vst.msk [vmem:[#allocation3 + $0x4b0] sm:$0xff] %vm711_vm2, %v2000_v56  ;;  %v6393_v56 = vld [vmem:[#allocation2 + $0x411] sm:$0xff] }
 0x3cf   :  { %2207 = vrot.lane.b32.xlu1 %v6374_v44, %s4393_s21 }
 0x3d0   :  { %v2016_v41 = vpop.permute.xlu2 %2015 }
 0x3d1   :  { %v1996_v14 = vpop.permute.xlu1 %1995  ;;  %2085 = vst.msk [vmem:[#allocation3 + $0x570] sm:$0xff] %vm711_vm2, %v2016_v41 }
 0x3d2   :  { %2075 = vst.msk [vmem:[#allocation3 + $0x480] sm:$0xff] %vm711_vm2, %v1996_v14  ;;  %3900 = vmatmul.f32.gmra.mxu2 %v3228_v10  ;;  %v1865_v14 = vld [vmem:[#allocation2 + $0x427] sm:$0xff]  ;;  %v1866_v10 = vld [vmem:[#allocation2 + $0x42f] sm:$0xff] }
 0x3d3   :  { %2217 = vrot.lane.b32.xlu0 %v6383_v2, %s4393_s21  ;;  %1897 = vst.msk [vmem:[#allocation3 + $0x5d0] sm:$0xff] %vm19_vm0, %v1865_v14 }
 0x3d4   :  { %1898 = vst.msk [vmem:[#allocation3 + $0x5e8] sm:$0xff] %vm19_vm0, %v1866_v10 }
 0x3d5   :  { %v2006_v1 = vpop.permute.xlu0 %2005  ;;  %2344 = vst.msk [vmem:[#allocation3 + $0x5a8] sm:$0xff] %vm19_vm0, %v1865_v14 }
 0x3d6   :  { %2215 = vrot.lane.b32.xlu2 %v6388_v5, %s4393_s21  ;;  %2080 = vst.msk [vmem:[#allocation3 + $0x4f8] sm:$0xff] %vm711_vm2, %v2006_v1  ;;  %v2348_v1 = vld [vmem:[#allocation2 + $0x268] sm:$0xff] }
 0x3d7   :  { %2213 = vrot.lane.b32.xlu1 %v6393_v56, %s4393_s21  ;;  %2345 = vst.msk [vmem:[#allocation3 + $0x5c0] sm:$0xff] %vm19_vm0, %v1866_v10  ;;  %v6420_v10 = vpop.f32.mrf.mxu0 }
 0x3d8   :  { %v2022_v41 = vpop.permute.xlu2 %2021 }
 0x3d9   :  { %v2002_v2 = vpop.permute.xlu1 %2001  ;;  %2088 = vst.msk [vmem:[#allocation3 + $0x5b8] sm:$0xff] %vm711_vm2, %v2022_v41 }
 0x3da   :  { %2078 = vst.msk [vmem:[#allocation3 + $0x4c8] sm:$0xff] %vm711_vm2, %v2002_v2  ;;  %3903 = vmatmul.f32.gmra.mxu2 %v3231_v48 }
 0x3db   :  { %2416 = vrot.lane.b32.xlu0 %v5996_v22, %s4392_s12  ;;  %v3234_v22 = vld [vmem:[#allocation3 + $0x1a8] sm:$0xff] }
 0x3dd   :  { %v2012_v5 = vpop.permute.xlu0 %2011 }
 0x3de   :  { %2414 = vrot.lane.b32.xlu2 %v5946_v61, %s4392_s12  ;;  %2083 = vst.msk [vmem:[#allocation3 + $0x540] sm:$0xff] %vm711_vm2, %v2012_v5 }
 0x3df   :  { %2412 = vrot.lane.b32.xlu1 %v2348_v1, %s4392_s12  ;;  %v3237_v1 = vld [vmem:[#allocation3 + $0x1c0] sm:$0xff] }
 0x3e0   :  { %v2156_v2 = vpop.permute.xlu2 %2155 }
 0x3e1   :  { %v2008_v41 = vpop.permute.xlu1 %2007  ;;  %2251 = vst.msk [vmem:[#allocation3 + $0x300] sm:$0xff] %vm904_vm3, %v2156_v2 }
 0x3e2   :  { %2081 = vst.msk [vmem:[#allocation3 + $0x510] sm:$0xff] %vm711_vm2, %v2008_v41  ;;  %3906 = vmatmul.f32.gmra.mxu2 %v3234_v22  ;;  %v3240_v41 = vld [vmem:[#allocation3 + $0x1d8] sm:$0xff]  ;;  %v3243_v22 = vld [vmem:[#allocation3 + $0x1f0] sm:$0xff] }
 0x3e3   :  { %2422 = vrot.lane.b32.xlu0 %v6023_v63, %s4392_s12 }
 0x3e5   :  { %v2018_v14 = vpop.permute.xlu0 %2017 }
 0x3e6   :  { %2420 = vrot.lane.b32.xlu2 %v5983_v11, %s4392_s12  ;;  %2086 = vst.msk [vmem:[#allocation3 + $0x588] sm:$0xff] %vm711_vm2, %v2018_v14  ;;  %v6436_v11 = vpop.f32.mrf.mxu0 }
 0x3e7   :  { %2418 = vrot.lane.b32.xlu1 %v5991_v32, %s4392_s12 }
 0x3e8   :  { %v2162_v61 = vpop.permute.xlu2 %2161  ;;  %v3277_v5 = vld [vmem:[#allocation3 + $0x300] sm:$0xff] }
 0x3e9   :  { %v2014_v48 = vpop.permute.xlu1 %2013  ;;  %2254 = vst.msk [vmem:[#allocation3 + $0x348] sm:$0xff] %vm904_vm3, %v2162_v61  ;;  %3533 = vmatmul.f32.gmra.mxu0 %v3277_v5  ;;  %v3246_v5 = vld [vmem:[#allocation3 + $0x208] sm:$0xff] }
 0x3ea   :  { %2084 = vst.msk [vmem:[#allocation3 + $0x558] sm:$0xff] %vm711_vm2, %v2014_v48  ;;  %3909 = vmatmul.f32.gmra.mxu2 %v3237_v1  ;;  %v420_v48 = vld [vmem:[%s7202_s0 + $0x1f8] sm:$0xff] }
 0x3eb   :  { %2428 = vrot.lane.b32.xlu0 %v6050_v40, %s4392_s12  ;;  %486 = vst.msk [vmem:[#allocation2 + $0x450] sm:$0xff] %vm19_vm0, %v420_v48 }
 0x3ed   :  { %v2024_v63 = vpop.permute.xlu0 %2023 }
 0x3ee   :  { %2426 = vrot.lane.b32.xlu2 %v6010_v62, %s4392_s12  ;;  %2089 = vst.msk [vmem:[#allocation3 + $0x5d0] sm:$0xff] %vm711_vm2, %v2024_v63  ;;  %v6448_v14 = vpop.f32.mrf.mxu0 }
 0x3ef   :  { %2424 = vrot.lane.b32.xlu1 %v6018_v28, %s4392_s12 }
 0x3f0   :  { %v2168_v32 = vpop.permute.xlu2 %2167 }
 0x3f1   :  { %v2020_v2 = vpop.permute.xlu1 %2019  ;;  %2257 = vst.msk [vmem:[#allocation3 + $0x390] sm:$0xff] %vm904_vm3, %v2168_v32  ;;  %v6481_v32 = vpop.f32.mrf.mxu2 }
 0x3f2   :  { %2087 = vst.msk [vmem:[#allocation3 + $0x5a0] sm:$0xff] %vm711_vm2, %v2020_v2  ;;  %3912 = vmatmul.f32.gmra.mxu2 %v3240_v41 }
 0x3f3   :  { %2434 = vrot.lane.b32.xlu0 %v6077_v50, %s4392_s12 }
 0x3f5   :  { %v2158_v40 = vpop.permute.xlu0 %2157 }
 0x3f6   :  { %2432 = vrot.lane.b32.xlu2 %v6037_v33, %s4392_s12  ;;  %2252 = vst.msk [vmem:[#allocation3 + $0x318] sm:$0xff] %vm904_vm3, %v2158_v40 }
 0x3f7   :  { %2430 = vrot.lane.b32.xlu1 %v6045_v39, %s4392_s12 }
 0x3f8   :  { %v2174_v62 = vpop.permute.xlu2 %2173 }
 0x3f9   :  { %v2026_v28 = vpop.permute.xlu1 %2025  ;;  %2260 = vst.msk [vmem:[#allocation3 + $0x3d8] sm:$0xff] %vm904_vm3, %v2174_v62  ;;  %v3252_v62 = vld [vmem:[#allocation3 + $0x238] sm:$0xff] }
 0x3fa   :  { %2090 = vst.msk [vmem:[#allocation3 + $0x5e8] sm:$0xff] %vm711_vm2, %v2026_v28  ;;  %3915 = vmatmul.f32.gmra.mxu2 %v3243_v22  ;;  %v3286_v28 = vld [vmem:[#allocation3 + $0x348] sm:$0xff] }
 0x3fb   :  { %2440 = vrot.lane.b32.xlu0 %v6106_v15, %s4392_s12  ;;  %v6462_v15 = vpop.f32.mrf.mxu0 }
 0x3fd   :  { %v2164_v50 = vpop.permute.xlu0 %2163  ;;  %v3280_v33 = vld [vmem:[#allocation3 + $0x318] sm:$0xff] }
 0x3fe   :  { %2438 = vrot.lane.b32.xlu2 %v6064_v45, %s4392_s12  ;;  %2255 = vst.msk [vmem:[#allocation3 + $0x360] sm:$0xff] %vm904_vm3, %v2164_v50  ;;  %3536 = vmatmul.f32.gmra.mxu0 %v3280_v33  ;;  %v3255_v33 = vld [vmem:[#allocation3 + $0x250] sm:$0xff] }
 0x3ff   :  { %2436 = vrot.lane.b32.xlu1 %v6072_v55, %s4392_s12  ;;  %v419_v55 = vld [vmem:[%s7202_s0 + $0x1f0] sm:$0xff] }
 0x400   :  { %v2180_v39 = vpop.permute.xlu2 %2179  ;;  %485 = vst.msk [vmem:[#allocation2 + $0x448] sm:$0xff] %vm19_vm0, %v419_v55 }
 0x401   :  { %v2160_v61 = vpop.permute.xlu1 %2159  ;;  %2263 = vst.msk [vmem:[#allocation3 + $0x420] sm:$0xff] %vm904_vm3, %v2180_v39 }
 0x402   :  { %2253 = vst.msk [vmem:[#allocation3 + $0x330] sm:$0xff] %vm904_vm3, %v2160_v61  ;;  %3918 = vmatmul.f32.gmra.mxu2 %v3246_v5  ;;  %v3258_v5 = vld [vmem:[#allocation3 + $0x268] sm:$0xff] }
 0x403   :  { %2446 = vrot.lane.b32.xlu0 %v6129_v24, %s4392_s12  ;;  %v6483_v2 = vpop.f32.mrf.mxu0 }
 0x405   :  { %v2170_v45 = vpop.permute.xlu0 %2169  ;;  %v3289_v39 = vld [vmem:[#allocation3 + $0x360] sm:$0xff] }
 0x406   :  { %2444 = vrot.lane.b32.xlu2 %v6091_v54, %s4392_s12  ;;  %2258 = vst.msk [vmem:[#allocation3 + $0x3a8] sm:$0xff] %vm904_vm3, %v2170_v45  ;;  %v3249_v54 = vld [vmem:[#allocation3 + $0x220] sm:$0xff] }
 0x407   :  { %2442 = vrot.lane.b32.xlu1 %v6099_v30, %s4392_s12 }
 0x408   :  { %v2186_v24 = vpop.permute.xlu2 %2185 }
 0x409   :  { %v2166_v1 = vpop.permute.xlu1 %2165  ;;  %2266 = vst.msk [vmem:[#allocation3 + $0x468] sm:$0xff] %vm904_vm3, %v2186_v24  ;;  %v3283_v63 = vld [vmem:[#allocation3 + $0x330] sm:$0xff] }
 0x40a   :  { %2256 = vst.msk [vmem:[#allocation3 + $0x378] sm:$0xff] %vm904_vm3, %v2166_v1  ;;  %3921 = vmatmul.f32.gmra.mxu2 %v3249_v54  ;;  %3539 = vmatmul.f32.gmra.mxu0 %v3283_v63  ;;  %v3295_v1 = vld [vmem:[#allocation3 + $0x390] sm:$0xff]  ;;  %v4351_v63 = vld [vmem:[%s7203_s1 + $0x168] sm:$0xff] }
 0x40b   :  { %2452 = vrot.lane.b32.xlu0 %v6146_v35, %s4392_s12 }
 0x40d   :  { %v2176_v30 = vpop.permute.xlu0 %2175 }
 0x40e   :  { %2450 = vrot.lane.b32.xlu2 %v6120_v29, %s4392_s12  ;;  %2261 = vst.msk [vmem:[#allocation3 + $0x3f0] sm:$0xff] %vm904_vm3, %v2176_v30  ;;  %v6494_v29 = vpop.f32.mrf.mxu2 }
 0x40f   :  { %2448 = vrot.lane.b32.xlu1 %v6125_v49, %s4392_s12  ;;  %v6501_v49 = vpop.f32.mrf.mxu0 }
 0x410   :  { %v2192_v41 = vpop.permute.xlu2 %2191 }
 0x411   :  { %v2172_v40 = vpop.permute.xlu1 %2171  ;;  %2269 = vst.msk [vmem:[#allocation3 + $0x4b0] sm:$0xff] %vm904_vm3, %v2192_v41  ;;  %v3292_v45 = vld [vmem:[#allocation3 + $0x378] sm:$0xff]  ;;  %v6544_v41 = vld [vmem:[#allocation2 + $0x448] sm:$0xff] }
 0x412   :  { %2259 = vst.msk [vmem:[#allocation3 + $0x3c0] sm:$0xff] %vm904_vm3, %v2172_v40  ;;  %3924 = vmatmul.f32.gmra.mxu2 %v3252_v62  ;;  %3542 = vmatmul.f32.gmra.mxu0 %v3286_v28  ;;  %v4352_v62 = vld [vmem:[%s7203_s1 + $0x160] sm:$0xff]  ;;  %v4353_v28 = vld [vmem:[%s7203_s1 + $0x158] sm:$0xff] }
 0x413   :  { %2458 = vrot.lane.b32.xlu0 %v6164_v42, %s4392_s12 }
 0x415   :  { %v2182_v35 = vpop.permute.xlu0 %2181 }
 0x416   :  { %2456 = vrot.lane.b32.xlu2 %v6138_v7, %s4392_s12  ;;  %2264 = vst.msk [vmem:[#allocation3 + $0x438] sm:$0xff] %vm904_vm3, %v2182_v35 }
 0x417   :  { %2454 = vrot.lane.b32.xlu1 %v6142_v12, %s4392_s12  ;;  %v6512_v12 = vpop.f32.mrf.mxu2  ;;  %v6515_v55 = vpop.f32.mrf.mxu0 }
 0x418   :  { %v2198_v22 = vpop.permute.xlu2 %2197 }
 0x419   :  { %v2178_v50 = vpop.permute.xlu1 %2177  ;;  %2272 = vst.msk [vmem:[#allocation3 + $0x4f8] sm:$0xff] %vm904_vm3, %v2198_v22 }
 0x41a   :  { %2262 = vst.msk [vmem:[#allocation3 + $0x408] sm:$0xff] %vm904_vm3, %v2178_v50  ;;  %3927 = vmatmul.f32.gmra.mxu2 %v3255_v33  ;;  %3545 = vmatmul.f32.gmra.mxu0 %v3289_v39  ;;  %v3264_v50 = vld [vmem:[#allocation3 + $0x298] sm:$0xff]  ;;  %v3298_v33 = vld [vmem:[#allocation3 + $0x3a8] sm:$0xff]  ;;  %v4354_v39 = vld [vmem:[%s7203_s1 + $0x150] sm:$0xff] }
 0x41b   :  { %2464 = vrot.lane.b32.xlu0 %v6182_v59, %s4392_s12 }
 0x41d   :  { %v2188_v7 = vpop.permute.xlu0 %2187 }
 0x41e   :  { %2462 = vrot.lane.b32.xlu2 %v6155_v47, %s4392_s12  ;;  %2267 = vst.msk [vmem:[#allocation3 + $0x480] sm:$0xff] %vm904_vm3, %v2188_v7 }
 0x41f   :  { %2460 = vrot.lane.b32.xlu1 %v6159_v6, %s4392_s12  ;;  %v4349_v6 = vld [vmem:[%s7203_s1 + $0x178] sm:$0xff]  ;;  %v6532_v54 = vpop.f32.mrf.mxu2  ;;  %v6542_v30 = vpop.f32.mrf.mxu0 }
 0x420   :  { %v2204_v42 = vpop.permute.xlu2 %2203 }
 0x421   :  { %v2184_v61 = vpop.permute.xlu1 %2183  ;;  %2275 = vst.msk [vmem:[#allocation3 + $0x540] sm:$0xff] %vm904_vm3, %v2204_v42 }
 0x422   :  { %2265 = vst.msk [vmem:[#allocation3 + $0x450] sm:$0xff] %vm904_vm3, %v2184_v61  ;;  %3930 = vmatmul.f32.gmra.mxu2 %v3258_v5  ;;  %3548 = vmatmul.f32.gmra.mxu0 %v3292_v45  ;;  %v4355_v61 = vld [vmem:[%s7203_s1 + $0x148] sm:$0xff] }
 0x423   :  { %2470 = vrot.lane.b32.xlu0 %v6195_v38, %s4392_s12  ;;  %v3261_v38 = vld [vmem:[#allocation3 + $0x280] sm:$0xff] }
 0x425   :  { %v2194_v47 = vpop.permute.xlu0 %2193  ;;  %v3325_v59 = vld [vmem:[#allocation3 + $0x480] sm:$0xff] }
 0x426   :  { %2468 = vrot.lane.b32.xlu2 %v6171_v51, %s4392_s12  ;;  %2270 = vst.msk [vmem:[#allocation3 + $0x4c8] sm:$0xff] %vm904_vm3, %v2194_v47  ;;  %3581 = vmatmul.f32.vlgmr.msra.gmra.mxu3 %v3325_v59  ;;  %v4350_v51 = vld [vmem:[%s7203_s1 + $0x170] sm:$0xff]  ;;  %v4356_v47 = vld [vmem:[%s7203_s1 + $0x140] sm:$0xff] }
 0x427   :  { %2466 = vrot.lane.b32.xlu1 %v6177_v23, %s4392_s12  ;;  %4323 = vmatpush.msra.mxu3 %v4349_v6  ;;  %v6535_v23 = vld [vmem:[#allocation2 + $0x450] sm:$0xff]  ;;  %v6565_v42 = vpop.f32.mrf.mxu2  ;;  %v6570_v45 = vpop.f32.mrf.mxu0  ;;  %v4357_v6 = vld [vmem:[%s7203_s1 + $0x138] sm:$0xff] }
 0x428   :  { %v2210_v48 = vpop.permute.xlu2 %2209 }
 0x429   :  { %v2190_v24 = vpop.permute.xlu1 %2189  ;;  %2278 = vst.msk [vmem:[#allocation3 + $0x588] sm:$0xff] %vm904_vm3, %v2210_v48  ;;  %4324 = vmatpush.msra.mxu3 %v4350_v51  ;;  %v3267_v48 = vld [vmem:[#allocation3 + $0x2b0] sm:$0xff] }
 0x42a   :  { %2268 = vst.msk [vmem:[#allocation3 + $0x498] sm:$0xff] %vm904_vm3, %v2190_v24  ;;  %3933 = vmatmul.f32.gmra.mxu2 %v3261_v38  ;;  %3551 = vmatmul.f32.gmra.mxu0 %v3295_v1  ;;  %v3301_v24 = vld [vmem:[#allocation3 + $0x3c0] sm:$0xff]  ;;  %v3331_v38 = vld [vmem:[#allocation3 + $0x4b0] sm:$0xff] }
 0x42b   :  { %2604 = vrot.lane.b32.xlu0 %v6211_v0, %s4393_s21  ;;  %4325 = vmatpush.msra.mxu3 %v4351_v63  ;;  %v2284_v0 = vld [vmem:[#allocation2 + $0x267] sm:$0xff] }
 0x42c   :  { %2316 = vst.msk [vmem:[#allocation3 + $0x308] sm:$0xff] %vm19_vm0, %v2284_v0  ;;  %v4359_v63 = vld [vmem:[%s7203_s1 + $0x128] sm:$0xff] }
 0x42d   :  { %v2200_v40 = vpop.permute.xlu0 %2199  ;;  %4326 = vmatpush.msra.mxu3 %v4352_v62 }
 0x42e   :  { %2474 = vrot.lane.b32.xlu2 %v6535_v23, %s4392_s12  ;;  %2273 = vst.msk [vmem:[#allocation3 + $0x510] sm:$0xff] %vm904_vm3, %v2200_v40 }
 0x42f   :  { %2472 = vrot.lane.b32.xlu1 %v6544_v41, %s4392_s12  ;;  %4327 = vmatpush.msra.mxu3 %v4353_v28  ;;  %v6592_v51 = vpop.f32.mrf.mxu2  ;;  %v6602_v40 = vpop.f32.mrf.mxu0  ;;  %v3270_v28 = vld [vmem:[#allocation3 + $0x2c8] sm:$0xff] }
 0x430   :  { %v2216_v35 = vpop.permute.xlu2 %2215 }
 0x431   :  { %v2196_v22 = vpop.permute.xlu1 %2195  ;;  %2281 = vst.msk [vmem:[#allocation3 + $0x5d0] sm:$0xff] %vm904_vm3, %v2216_v35  ;;  %4328 = vmatpush.msra.mxu3 %v4354_v39  ;;  %v3328_v7 = vld [vmem:[#allocation3 + $0x498] sm:$0xff] }
 0x432   :  { %2271 = vst.msk [vmem:[#allocation3 + $0x4e0] sm:$0xff] %vm904_vm3, %v2196_v22  ;;  %3936 = vmatmul.f32.gmra.mxu2 %v3264_v50  ;;  %3554 = vmatmul.f32.gmra.mxu0 %v3298_v33  ;;  %v3304_v35 = vld [vmem:[#allocation3 + $0x3d8] sm:$0xff]  ;;  %v4362_v33 = vld [vmem:[%s7203_s1 + $0x110] sm:$0xff] }
 0x433   :  { %3584 = vmatmul.f32.gmra.mxu3 %v3328_v7  ;;  %2610 = vrot.lane.b32.xlu0 %v6231_v27, %s4393_s21  ;;  %v2287_v27 = vld [vmem:[#allocation2 + $0x28f] sm:$0xff]  ;;  %v4361_v22 = vld [vmem:[%s7203_s1 + $0x118] sm:$0xff] }
 0x434   :  { %4329 = vmatpush.msra.mxu3 %v4355_v61  ;;  %2319 = vst.msk [vmem:[#allocation3 + $0x350] sm:$0xff] %vm19_vm0, %v2287_v27 }
 0x435   :  { %v2206_v5 = vpop.permute.xlu0 %2205  ;;  %2766 = vst.msk [vmem:[#allocation3 + $0x328] sm:$0xff] %vm19_vm0, %v2287_v27 }
 0x436   :  { %2608 = vrot.lane.b32.xlu2 %v6201_v34, %s4393_s21  ;;  %2276 = vst.msk [vmem:[#allocation3 + $0x558] sm:$0xff] %vm904_vm3, %v2206_v5  ;;  %4330 = vmatpush.msra.mxu3 %v4356_v47  ;;  %v3273_v5 = vld [vmem:[#allocation3 + $0x2e0] sm:$0xff]  ;;  %v3307_v47 = vld [vmem:[#allocation3 + $0x3f0] sm:$0xff] }
 0x437   :  { %2606 = vrot.lane.b32.xlu1 %v6206_v17, %s4393_s21  ;;  %v4358_v17 = vld [vmem:[%s7203_s1 + $0x130] sm:$0xff]  ;;  %v6624_v39 = vpop.f32.mrf.mxu2  ;;  %v6631_v27 = vpop.f32.mrf.mxu0 }
 0x438   :  { %v2415_v59 = vpop.permute.xlu2 %2414  ;;  %4331 = vmatpush.msra.mxu3 %v4357_v6 }
 0x439   :  { %v2202_v34 = vpop.permute.xlu1 %2201  ;;  %2509 = vst.msk [vmem:[#allocation3 + $0x320] sm:$0xff] %vm711_vm2, %v2415_v59  ;;  %v4364_v59 = vld [vmem:[%s7203_s1 + $0x100] sm:$0xff] }
 0x43a   :  { %2274 = vst.msk [vmem:[#allocation3 + $0x528] sm:$0xff] %vm904_vm3, %v2202_v34  ;;  %3939 = vmatmul.f32.gmra.mxu2 %v3267_v48  ;;  %3557 = vmatmul.f32.gmra.mxu0 %v3301_v24  ;;  %v2296_v34 = vld [vmem:[#allocation2 + $0x327] sm:$0xff]  ;;  %v3276_v24 = vld [vmem:[#allocation3 + $0x2f8] sm:$0xff] }
 0x43b   :  { %3587 = vmatmul.f32.gmra.mxu3 %v3331_v38  ;;  %2616 = vrot.lane.b32.xlu0 %v6253_v21, %s4393_s21  ;;  %v2290_v21 = vld [vmem:[#allocation2 + $0x2c7] sm:$0xff]  ;;  %2328 = vst.msk [vmem:[#allocation3 + $0x428] sm:$0xff] %vm19_vm0, %v2296_v34 }
 0x43c   :  { %4332 = vmatpush.msra.mxu3 %v4358_v17  ;;  %2322 = vst.msk [vmem:[#allocation3 + $0x398] sm:$0xff] %vm19_vm0, %v2290_v21  ;;  %v3310_v38 = vld [vmem:[#allocation3 + $0x408] sm:$0xff] }
 0x43d   :  { %v2212_v1 = vpop.permute.xlu0 %2211  ;;  %2769 = vst.msk [vmem:[#allocation3 + $0x370] sm:$0xff] %vm19_vm0, %v2290_v21 }
 0x43e   :  { %2614 = vrot.lane.b32.xlu2 %v6221_v26, %s4393_s21  ;;  %2279 = vst.msk [vmem:[#allocation3 + $0x5a0] sm:$0xff] %vm904_vm3, %v2212_v1  ;;  %4333 = vmatpush.msra.mxu3 %v4359_v63  ;;  %v4360_v26 = vld [vmem:[%s7203_s1 + $0x120] sm:$0xff]  ;;  %v2299_v63 = vld [vmem:[#allocation2 + $0x34f] sm:$0xff] }
 0x43f   :  { %2612 = vrot.lane.b32.xlu1 %v6226_v37, %s4393_s21  ;;  %v3334_v37 = vld [vmem:[#allocation3 + $0x4c8] sm:$0xff]  ;;  %v6647_v17 = vpop.f32.mrf.mxu2  ;;  %2775 = vst.msk [vmem:[#allocation3 + $0x400] sm:$0xff] %vm19_vm0, %v2296_v34 }
 0x440   :  { %v2421_v62 = vpop.permute.xlu2 %2420  ;;  %4334 = vmatpush.msra.mxu3 %v4360_v26  ;;  %2331 = vst.msk [vmem:[#allocation3 + $0x470] sm:$0xff] %vm19_vm0, %v2299_v63  ;;  %v3343_v26 = vld [vmem:[#allocation3 + $0x510] sm:$0xff] }
 0x441   :  { %v2208_v0 = vpop.permute.xlu1 %2207  ;;  %2512 = vst.msk [vmem:[#allocation3 + $0x368] sm:$0xff] %vm711_vm2, %v2421_v62 }
 0x442   :  { %2277 = vst.msk [vmem:[#allocation3 + $0x570] sm:$0xff] %vm904_vm3, %v2208_v0  ;;  %3942 = vmatmul.f32.gmra.mxu2 %v3270_v28  ;;  %3560 = vmatmul.f32.gmra.mxu0 %v3304_v35  ;;  %v2302_v0 = vld [vmem:[#allocation2 + $0x387] sm:$0xff] }
 0x443   :  { %3590 = vmatmul.f32.gmra.mxu3 %v3334_v37  ;;  %2622 = vrot.lane.b32.xlu0 %v6275_v25, %s4393_s21  ;;  %v2293_v25 = vld [vmem:[#allocation2 + $0x2ef] sm:$0xff]  ;;  %2778 = vst.msk [vmem:[#allocation3 + $0x448] sm:$0xff] %vm19_vm0, %v2299_v63 }
 0x444   :  { %4335 = vmatpush.msra.mxu3 %v4361_v22  ;;  %2325 = vst.msk [vmem:[#allocation3 + $0x3e0] sm:$0xff] %vm19_vm0, %v2293_v25  ;;  %v3346_v37 = vld [vmem:[#allocation3 + $0x528] sm:$0xff] }
 0x445   :  { %v2218_v50 = vpop.permute.xlu0 %2217  ;;  %2772 = vst.msk [vmem:[#allocation3 + $0x3b8] sm:$0xff] %vm19_vm0, %v2293_v25  ;;  %v3349_v25 = vld [vmem:[#allocation3 + $0x540] sm:$0xff]  ;;  %v3358_v63 = vld [vmem:[#allocation3 + $0x588] sm:$0xff] }
 0x446   :  { %2620 = vrot.lane.b32.xlu2 %v6243_v4, %s4393_s21  ;;  %2282 = vst.msk [vmem:[#allocation3 + $0x5e8] sm:$0xff] %vm904_vm3, %v2218_v50  ;;  %4336 = vmatpush.msra.mxu3 %v4362_v33  ;;  %v4363_v4 = vld [vmem:[%s7203_s1 + $0x108] sm:$0xff] }
 0x447   :  { %2618 = vrot.lane.b32.xlu1 %v6248_v3, %s4393_s21  ;;  %v3337_v3 = vld [vmem:[#allocation3 + $0x4e0] sm:$0xff]  ;;  %2334 = vst.msk [vmem:[#allocation3 + $0x4b8] sm:$0xff] %vm19_vm0, %v2302_v0 }
 0x448   :  { %v2427_v7 = vpop.permute.xlu2 %2426  ;;  %4337 = vmatpush.msra.mxu3 %v4363_v4  ;;  %2781 = vst.msk [vmem:[#allocation3 + $0x490] sm:$0xff] %vm19_vm0, %v2302_v0 }
 0x449   :  { %v2214_v61 = vpop.permute.xlu1 %2213  ;;  %2515 = vst.msk [vmem:[#allocation3 + $0x3b0] sm:$0xff] %vm711_vm2, %v2427_v7  ;;  %v2308_v7 = vld [vmem:[#allocation2 + $0x3e7] sm:$0xff] }
 0x44a   :  { %2280 = vst.msk [vmem:[#allocation3 + $0x5b8] sm:$0xff] %vm904_vm3, %v2214_v61  ;;  %3945 = vmatmul.f32.gmra.mxu2 %v3273_v5  ;;  %3563 = vmatmul.f32.gmra.mxu0 %v3307_v47  ;;  %v3322_v61 = vld [vmem:[#allocation3 + $0x468] sm:$0xff]  ;;  %v3352_v47 = vld [vmem:[#allocation3 + $0x558] sm:$0xff] }
 0x44b   :  { %3593 = vmatmul.f32.gmra.mxu3 %v3337_v3  ;;  %2628 = vrot.lane.b32.xlu0 %v6295_v52, %s4393_s21  ;;  %2340 = vst.msk [vmem:[#allocation3 + $0x548] sm:$0xff] %vm19_vm0, %v2308_v7  ;;  %v2311_v3 = vld [vmem:[#allocation2 + $0x40f] sm:$0xff] }
 0x44c   :  { %4338 = vmatpush.msra.mxu3 %v4364_v59  ;;  %2787 = vst.msk [vmem:[#allocation3 + $0x520] sm:$0xff] %vm19_vm0, %v2308_v7 }
 0x44d   :  { %v2417_v6 = vpop.permute.xlu0 %2416  ;;  %2343 = vst.msk [vmem:[#allocation3 + $0x590] sm:$0xff] %vm19_vm0, %v2311_v3 }
 0x44e   :  { %2626 = vrot.lane.b32.xlu2 %v6263_v16, %s4393_s21  ;;  %2510 = vst.msk [vmem:[#allocation3 + $0x338] sm:$0xff] %vm711_vm2, %v2417_v6  ;;  %v3340_v16 = vld [vmem:[#allocation3 + $0x4f8] sm:$0xff]  ;;  %v2570_v6 = vld [vmem:[#allocation2 + $0x449] sm:$0xff] }
 0x44f   :  { %2624 = vrot.lane.b32.xlu1 %v6270_v8, %s4393_s21  ;;  %v6653_v8 = vpop.f32.mrf.mxu0  ;;  %2790 = vst.msk [vmem:[#allocation3 + $0x568] sm:$0xff] %vm19_vm0, %v2311_v3 }
 0x450   :  { %v2433_v48 = vpop.permute.xlu2 %2432 }
 0x451   :  { %v2413_v52 = vpop.permute.xlu1 %2412  ;;  %2518 = vst.msk [vmem:[#allocation3 + $0x3f8] sm:$0xff] %vm711_vm2, %v2433_v48  ;;  %v7250_v48 = vld [vmem:[#allocation24_spill] sm:$0xff] }
 0x452   :  { %2508 = vst.msk [vmem:[#allocation3 + $0x308] sm:$0xff] %vm711_vm2, %v2413_v52  ;;  %3948 = vmatmul.f32.gmra.mxu2 %v3276_v24  ;;  %3566 = vmatmul.f32.gmra.mxu0 %v3310_v38  ;;  %v7251_v52 = vld [vmem:[#allocation25_spill] sm:$0xff]  ;;  %v2314_v24 = vld [vmem:[#allocation2 + $0x447] sm:$0xff] }
 0x453   :  { %3596 = vmatmul.f32.gmra.mxu3 %v3340_v16  ;;  %2634 = vrot.lane.b32.xlu0 %v6315_v18, %s4393_s21  ;;  %v3313_v18 = vld [vmem:[#allocation3 + $0x420] sm:$0xff]  ;;  %v2798_v16 = vld [vmem:[#allocation2 + $0x290] sm:$0xff]  ;;  %2346 = vst.msk [vmem:[#allocation3 + $0x5d8] sm:$0xff] %vm19_vm0, %v2314_v24 }
 0x454   :  { %2793 = vst.msk [vmem:[#allocation3 + $0x5b0] sm:$0xff] %vm19_vm0, %v2314_v24 }
 0x455   :  { %v2423_v1 = vpop.permute.xlu0 %2422 }
 0x456   :  { %2632 = vrot.lane.b32.xlu2 %v6285_v58, %s4393_s21  ;;  %2513 = vst.msk [vmem:[#allocation3 + $0x380] sm:$0xff] %vm711_vm2, %v2423_v1 }
 0x457   :  { %2630 = vrot.lane.b32.xlu1 %v6290_v19, %s4393_s21  ;;  %v6666_v19 = vpop.f32.mrf.mxu0 }
 0x458   :  { %v2439_v21 = vpop.permute.xlu2 %2438 }
 0x459   :  { %v2419_v62 = vpop.permute.xlu1 %2418  ;;  %2521 = vst.msk [vmem:[#allocation3 + $0x440] sm:$0xff] %vm711_vm2, %v2439_v21  ;;  %v2797_v21 = vld [vmem:[#allocation2 + $0x288] sm:$0xff] }
 0x45a   :  { %2511 = vst.msk [vmem:[#allocation3 + $0x350] sm:$0xff] %vm711_vm2, %v2419_v62  ;;  %3569 = vmatmul.f32.gmra.mxu0 %v3313_v18  ;;  %v6727_v62 = vld [vmem:[#allocation2 + $0x451] sm:$0xff] }
 0x45b   :  { %3599 = vmatmul.f32.gmra.mxu3 %v3343_v26  ;;  %2640 = vrot.lane.b32.xlu0 %v6335_v20, %s4393_s21  ;;  %v3316_v20 = vld [vmem:[#allocation3 + $0x438] sm:$0xff] }
 0x45d   :  { %v2429_v58 = vpop.permute.xlu0 %2428 }
 0x45e   :  { %2638 = vrot.lane.b32.xlu2 %v6305_v36, %s4393_s21  ;;  %2516 = vst.msk [vmem:[#allocation3 + $0x3c8] sm:$0xff] %vm711_vm2, %v2429_v58  ;;  %v2801_v58 = vld [vmem:[#allocation2 + $0x2c8] sm:$0xff] }
 0x45f   :  { %2636 = vrot.lane.b32.xlu1 %v6310_v53, %s4393_s21  ;;  %v2305_v53 = vld [vmem:[#allocation2 + $0x3af] sm:$0xff]  ;;  %v6684_v22 = vpop.f32.mrf.mxu0 }
 0x460   :  { %v2445_v28 = vpop.permute.xlu2 %2444  ;;  %2337 = vst.msk [vmem:[#allocation3 + $0x500] sm:$0xff] %vm19_vm0, %v2305_v53 }
 0x461   :  { %v2425_v35 = vpop.permute.xlu1 %2424  ;;  %2524 = vst.msk [vmem:[#allocation3 + $0x488] sm:$0xff] %vm711_vm2, %v2445_v28  ;;  %v3361_v28 = vld [vmem:[#allocation3 + $0x5a0] sm:$0xff] }
 0x462   :  { %2514 = vst.msk [vmem:[#allocation3 + $0x398] sm:$0xff] %vm711_vm2, %v2425_v35  ;;  %3572 = vmatmul.f32.gmra.mxu0 %v3316_v20  ;;  %v2800_v35 = vld [vmem:[#allocation2 + $0x2b0] sm:$0xff]  ;;  %v6736_v20 = vpop.f32.mrf.mxu1 }
 0x463   :  { %3602 = vmatmul.f32.gmra.mxu3 %v3346_v37  ;;  %2646 = vrot.lane.b32.xlu0 %v6355_v9, %s4393_s21  ;;  %v3319_v9 = vld [vmem:[#allocation3 + $0x450] sm:$0xff]  ;;  %2784 = vst.msk [vmem:[#allocation3 + $0x4d8] sm:$0xff] %vm19_vm0, %v2305_v53  ;;  %v2799_v37 = vld [vmem:[#allocation2 + $0x2a8] sm:$0xff] }
 0x465   :  { %v2435_v36 = vpop.permute.xlu0 %2434 }
 0x466   :  { %2644 = vrot.lane.b32.xlu2 %v6325_v46, %s4393_s21  ;;  %2519 = vst.msk [vmem:[#allocation3 + $0x410] sm:$0xff] %vm711_vm2, %v2435_v36  ;;  %v2315_v46 = vld [vmem:[#allocation2 + $0x44f] sm:$0xff] }
 0x467   :  { %2642 = vrot.lane.b32.xlu1 %v6330_v31, %s4393_s21  ;;  %2347 = vst.msk [vmem:[#allocation3 + $0x5f0] sm:$0xff] %vm19_vm0, %v2315_v46  ;;  %v6701_v5 = vpop.f32.mrf.mxu0 }
 0x468   :  { %v2451_v50 = vpop.permute.xlu2 %2450  ;;  %2794 = vst.msk [vmem:[#allocation3 + $0x5c8] sm:$0xff] %vm19_vm0, %v2315_v46  ;;  %v2802_v46 = vld [vmem:[#allocation2 + $0x2d0] sm:$0xff] }
 0x469   :  { %v2431_v33 = vpop.permute.xlu1 %2430  ;;  %2527 = vst.msk [vmem:[#allocation3 + $0x4d0] sm:$0xff] %vm711_vm2, %v2451_v50  ;;  %v2804_v50 = vld [vmem:[#allocation2 + $0x2f0] sm:$0xff] }
 0x46a   :  { %2517 = vst.msk [vmem:[#allocation3 + $0x3e0] sm:$0xff] %vm711_vm2, %v2431_v33  ;;  %3575 = vmatmul.f32.gmra.mxu0 %v3319_v9  ;;  %v3364_v9 = vld [vmem:[#allocation3 + $0x5b8] sm:$0xff]  ;;  %v6744_v7 = vpop.f32.mrf.mxu1 }
 0x46b   :  { %3605 = vmatmul.f32.gmra.mxu3 %v3349_v25  ;;  %2652 = vrot.lane.b32.xlu0 %v6374_v44, %s4393_s21  ;;  %v2803_v25 = vld [vmem:[#allocation2 + $0x2e8] sm:$0xff] }
 0x46d   :  { %v2441_v31 = vpop.permute.xlu0 %2440 }
 0x46e   :  { %2650 = vrot.lane.b32.xlu2 %v6345_v13, %s4393_s21  ;;  %2522 = vst.msk [vmem:[#allocation3 + $0x458] sm:$0xff] %vm711_vm2, %v2441_v31 }
 0x46f   :  { %2648 = vrot.lane.b32.xlu1 %v6350_v57, %s4393_s21  ;;  %v7249_v57 = vld [vmem:[#allocation23_spill] sm:$0xff] }
 0x470   :  { %v2457_v4 = vpop.permute.xlu2 %2456 }
 0x471   :  { %v2437_v44 = vpop.permute.xlu1 %2436  ;;  %2530 = vst.msk [vmem:[#allocation3 + $0x518] sm:$0xff] %vm711_vm2, %v2457_v4 }
 0x472   :  { %2520 = vst.msk [vmem:[#allocation3 + $0x428] sm:$0xff] %vm711_vm2, %v2437_v44  ;;  %3578 = vmatmul.f32.gmra.mxu0 %v3322_v61  ;;  %v2807_v44 = vld [vmem:[#allocation2 + $0x328] sm:$0xff] }
 0x473   :  { %3608 = vmatmul.f32.gmra.mxu3 %v3352_v47  ;;  %2658 = vrot.lane.b32.xlu0 %v6393_v56, %s4393_s21  ;;  %v3355_v56 = vld [vmem:[#allocation3 + $0x570] sm:$0xff] }
 0x474   :  { %v3367_v47 = vld [vmem:[#allocation3 + $0x5d0] sm:$0xff] }
 0x475   :  { %v2447_v13 = vpop.permute.xlu0 %2446 }
 0x476   :  { %2656 = vrot.lane.b32.xlu2 %v6364_v43, %s4393_s21  ;;  %2525 = vst.msk [vmem:[#allocation3 + $0x4a0] sm:$0xff] %vm711_vm2, %v2447_v13  ;;  %v2806_v13 = vld [vmem:[#allocation2 + $0x310] sm:$0xff] }
 0x477   :  { %2654 = vrot.lane.b32.xlu1 %v7249_v57, %s4393_s21  ;;  %v2805_v57 = vld [vmem:[#allocation2 + $0x308] sm:$0xff] }
 0x478   :  { %v2463_v59 = vpop.permute.xlu2 %2462 }
 0x479   :  { %v2443_v34 = vpop.permute.xlu1 %2442  ;;  %2533 = vst.msk [vmem:[#allocation3 + $0x560] sm:$0xff] %vm711_vm2, %v2463_v59  ;;  %v6755_v59 = vpop.f32.mrf.mxu1 }
 0x47a   :  { %2523 = vst.msk [vmem:[#allocation3 + $0x470] sm:$0xff] %vm711_vm2, %v2443_v34  ;;  %v2810_v34 = vld [vmem:[#allocation2 + $0x350] sm:$0xff] }
 0x47b   :  { %3611 = vmatmul.f32.gmra.mxu3 %v3355_v56  ;;  %2664 = vrot.lane.b32.xlu0 %v2570_v6, %s4393_s21 }
 0x47d   :  { %v2453_v43 = vpop.permute.xlu0 %2452 }
 0x47e   :  { %2662 = vrot.lane.b32.xlu2 %v7250_v48, %s4393_s21  ;;  %2528 = vst.msk [vmem:[#allocation3 + $0x4e8] sm:$0xff] %vm711_vm2, %v2453_v43  ;;  %v3370_v43 = vld [vmem:[#allocation3 + $0x5e8] sm:$0xff] }
 0x47f   :  { %2660 = vrot.lane.b32.xlu1 %v7251_v52, %s4393_s21  ;;  %v2809_v48 = vld [vmem:[#allocation2 + $0x348] sm:$0xff]  ;;  %v2808_v52 = vld [vmem:[#allocation2 + $0x330] sm:$0xff] }
 0x480   :  { %v2469_v38 = vpop.permute.xlu2 %2468 }
 0x481   :  { %v2449_v1 = vpop.permute.xlu1 %2448  ;;  %2536 = vst.msk [vmem:[#allocation3 + $0x5a8] sm:$0xff] %vm711_vm2, %v2469_v38 }
 0x482   :  { %2526 = vst.msk [vmem:[#allocation3 + $0x4b8] sm:$0xff] %vm711_vm2, %v2449_v1  ;;  %v2813_v1 = vld [vmem:[#allocation2 + $0x388] sm:$0xff] }
 0x483   :  { %3614 = vmatmul.f32.gmra.mxu3 %v3358_v63  ;;  %2863 = vrot.lane.b32.xlu0 %v2798_v16, %s4392_s12 }
 0x485   :  { %v2459_v18 = vpop.permute.xlu0 %2458 }
 0x486   :  { %2861 = vrot.lane.b32.xlu2 %v2797_v21, %s4392_s12  ;;  %2531 = vst.msk [vmem:[#allocation3 + $0x530] sm:$0xff] %vm711_vm2, %v2459_v18  ;;  %v6764_v21 = vpop.f32.mrf.mxu1  ;;  %v2812_v18 = vld [vmem:[#allocation2 + $0x370] sm:$0xff] }
 0x487   :  { %2666 = vrot.lane.b32.xlu1 %v6727_v62, %s4393_s21 }
 0x488   :  { %v2475_v26 = vpop.permute.xlu2 %2474 }
 0x489   :  { %v2455_v0 = vpop.permute.xlu1 %2454  ;;  %2539 = vst.msk [vmem:[#allocation3 + $0x5f0] sm:$0xff] %vm711_vm2, %v2475_v26  ;;  %v2811_v26 = vld [vmem:[#allocation2 + $0x368] sm:$0xff] }
 0x48a   :  { %2529 = vst.msk [vmem:[#allocation3 + $0x500] sm:$0xff] %vm711_vm2, %v2455_v0 }
 0x48b   :  { %3617 = vmatmul.f32.gmra.mxu3 %v3361_v28  ;;  %2869 = vrot.lane.b32.xlu0 %v2801_v58, %s4392_s12  ;;  %v2816_v28 = vld [vmem:[#allocation2 + $0x3b0] sm:$0xff] }
 0x48d   :  { %v2465_v36 = vpop.permute.xlu0 %2464 }
 0x48e   :  { %2867 = vrot.lane.b32.xlu2 %v2800_v35, %s4392_s12  ;;  %2534 = vst.msk [vmem:[#allocation3 + $0x578] sm:$0xff] %vm711_vm2, %v2465_v36  ;;  %v2815_v36 = vld [vmem:[#allocation2 + $0x3a8] sm:$0xff] }
 0x48f   :  { %2865 = vrot.lane.b32.xlu1 %v2799_v37, %s4392_s12 }
 0x490   :  { %v2609_v53 = vpop.permute.xlu2 %2608 }
 0x491   :  { %v2461_v33 = vpop.permute.xlu1 %2460  ;;  %2702 = vst.msk [vmem:[#allocation3 + $0x338] sm:$0xff] %vm904_vm3, %v2609_v53  ;;  %v6774_v53 = vpop.f32.mrf.mxu1 }
 0x492   :  { %2532 = vst.msk [vmem:[#allocation3 + $0x548] sm:$0xff] %vm711_vm2, %v2461_v33 }
 0x493   :  { %3620 = vmatmul.f32.gmra.mxu3 %v3364_v9  ;;  %2875 = vrot.lane.b32.xlu0 %v2804_v50, %s4392_s12  ;;  %v2814_v50 = vld [vmem:[#allocation2 + $0x390] sm:$0xff] }
 0x495   :  { %v2471_v31 = vpop.permute.xlu0 %2470 }
 0x496   :  { %2873 = vrot.lane.b32.xlu2 %v2803_v25, %s4392_s12  ;;  %2537 = vst.msk [vmem:[#allocation3 + $0x5c0] sm:$0xff] %vm711_vm2, %v2471_v31  ;;  %v2819_v25 = vld [vmem:[#allocation2 + $0x3e8] sm:$0xff] }
 0x497   :  { %2871 = vrot.lane.b32.xlu1 %v2802_v46, %s4392_s12 }
 0x498   :  { %v2615_v4 = vpop.permute.xlu2 %2614  ;;  %v3284_v31 = vld [vmem:[#allocation3 + $0x338] sm:$0xff] }
 0x499   :  { %v2467_v61 = vpop.permute.xlu1 %2466  ;;  %2705 = vst.msk [vmem:[#allocation3 + $0x380] sm:$0xff] %vm904_vm3, %v2615_v4  ;;  %v2818_v4 = vld [vmem:[#allocation2 + $0x3d0] sm:$0xff] }
 0x49a   :  { %2535 = vst.msk [vmem:[#allocation3 + $0x590] sm:$0xff] %vm711_vm2, %v2467_v61 }
 0x49b   :  { %3623 = vmatmul.f32.gmra.mxu3 %v3367_v47  ;;  %2881 = vrot.lane.b32.xlu0 %v2807_v44, %s4392_s12  ;;  %v2817_v44 = vld [vmem:[#allocation2 + $0x3c8] sm:$0xff]  ;;  %v6782_v47 = vpop.f32.mrf.mxu1 }
 0x49d   :  { %v2605_v3 = vpop.permute.xlu0 %2604 }
 0x49e   :  { %2879 = vrot.lane.b32.xlu2 %v2806_v13, %s4392_s12  ;;  %2700 = vst.msk [vmem:[#allocation3 + $0x308] sm:$0xff] %vm904_vm3, %v2605_v3  ;;  %v2822_v3 = vld [vmem:[#allocation2 + $0x410] sm:$0xff] }
 0x49f   :  { %2877 = vrot.lane.b32.xlu1 %v2805_v57, %s4392_s12 }
 0x4a0   :  { %v2621_v6 = vpop.permute.xlu2 %2620 }
 0x4a1   :  { %v2473_v56 = vpop.permute.xlu1 %2472  ;;  %2708 = vst.msk [vmem:[#allocation3 + $0x3c8] sm:$0xff] %vm904_vm3, %v2621_v6 }
 0x4a2   :  { %2538 = vst.msk [vmem:[#allocation3 + $0x5d8] sm:$0xff] %vm711_vm2, %v2473_v56  ;;  %v2733_v56 = vld [vmem:[#allocation2 + $0x287] sm:$0xff] }
 0x4a3   :  { %3626 = vmatmul.f32.gmra.mxu3 %v3370_v43  ;;  %2887 = vrot.lane.b32.xlu0 %v2810_v34, %s4392_s12  ;;  %v2821_v43 = vld [vmem:[#allocation2 + $0x408] sm:$0xff]  ;;  %2765 = vst.msk [vmem:[#allocation3 + $0x310] sm:$0xff] %vm19_vm0, %v2733_v56 }
 0x4a5   :  { %v2611_v24 = vpop.permute.xlu0 %2610  ;;  %v3278_v38 = vld [vmem:[#allocation3 + $0x308] sm:$0xff] }
 0x4a6   :  { %2885 = vrot.lane.b32.xlu2 %v2809_v48, %s4392_s12  ;;  %2703 = vst.msk [vmem:[#allocation3 + $0x350] sm:$0xff] %vm904_vm3, %v2611_v24  ;;  %3742 = vmatmul.f32.gmra.mxu1 %v3278_v38  ;;  %v2820_v48 = vld [vmem:[#allocation2 + $0x3f0] sm:$0xff]  ;;  %v6796_v24 = vpop.f32.mrf.mxu1 }
 0x4a7   :  { %2883 = vrot.lane.b32.xlu1 %v2808_v52, %s4392_s12 }
 0x4a8   :  { %v2627_v16 = vpop.permute.xlu2 %2626 }
 0x4a9   :  { %v2607_v63 = vpop.permute.xlu1 %2606  ;;  %2711 = vst.msk [vmem:[#allocation3 + $0x410] sm:$0xff] %vm904_vm3, %v2627_v16  ;;  %v6786_v13 = vpop.f32.mrf.mxu3 }
 0x4aa   :  { %2701 = vst.msk [vmem:[#allocation3 + $0x320] sm:$0xff] %vm904_vm3, %v2607_v63 }
 0x4ab   :  { %2893 = vrot.lane.b32.xlu0 %v2813_v1, %s4392_s12 }
 0x4ad   :  { %v2617_v58 = vpop.permute.xlu0 %2616  ;;  %v3287_v34 = vld [vmem:[#allocation3 + $0x350] sm:$0xff] }
 0x4ae   :  { %2891 = vrot.lane.b32.xlu2 %v2812_v18, %s4392_s12  ;;  %2706 = vst.msk [vmem:[#allocation3 + $0x398] sm:$0xff] %vm904_vm3, %v2617_v58  ;;  %v2736_v18 = vld [vmem:[#allocation2 + $0x2af] sm:$0xff] }
 0x4af   :  { %2889 = vrot.lane.b32.xlu1 %v2811_v26, %s4392_s12  ;;  %v2824_v26 = vld [vmem:[#allocation2 + $0x430] sm:$0xff]  ;;  %2768 = vst.msk [vmem:[#allocation3 + $0x358] sm:$0xff] %vm19_vm0, %v2736_v18  ;;  %v2823_v58 = vld [vmem:[#allocation2 + $0x428] sm:$0xff] }
 0x4b0   :  { %v2633_v0 = vpop.permute.xlu2 %2632  ;;  %v2745_v18 = vld [vmem:[#allocation2 + $0x347] sm:$0xff] }
 0x4b1   :  { %v2613_v35 = vpop.permute.xlu1 %2612  ;;  %2714 = vst.msk [vmem:[#allocation3 + $0x458] sm:$0xff] %vm904_vm3, %v2633_v0  ;;  %v3281_v37 = vld [vmem:[#allocation3 + $0x320] sm:$0xff] }
 0x4b2   :  { %2704 = vst.msk [vmem:[#allocation3 + $0x368] sm:$0xff] %vm904_vm3, %v2613_v35  ;;  %3745 = vmatmul.f32.gmra.mxu1 %v3281_v37  ;;  %v2828_v35 = vld [vmem:[#allocation2 + $0x470] sm:$0xff] }
 0x4b3   :  { %2899 = vrot.lane.b32.xlu0 %v2816_v28, %s4392_s12  ;;  %2777 = vst.msk [vmem:[#allocation3 + $0x430] sm:$0xff] %vm19_vm0, %v2745_v18  ;;  %v2999_v18 = vld [vmem:[#allocation2 + $0x329] sm:$0xff] }
 0x4b5   :  { %v2623_v33 = vpop.permute.xlu0 %2622 }
 0x4b6   :  { %2897 = vrot.lane.b32.xlu2 %v2815_v36, %s4392_s12  ;;  %2709 = vst.msk [vmem:[#allocation3 + $0x3e0] sm:$0xff] %vm904_vm3, %v2623_v33  ;;  %v6798_v16 = vpop.f32.mrf.mxu3  ;;  %v3293_v36 = vld [vmem:[#allocation3 + $0x380] sm:$0xff] }
 0x4b7   :  { %2895 = vrot.lane.b32.xlu1 %v2814_v50, %s4392_s12  ;;  %v6809_v50 = vpop.f32.mrf.mxu1 }
 0x4b8   :  { %v2639_v9 = vpop.permute.xlu2 %2638 }
 0x4b9   :  { %v2619_v46 = vpop.permute.xlu1 %2618  ;;  %2717 = vst.msk [vmem:[#allocation3 + $0x4a0] sm:$0xff] %vm904_vm3, %v2639_v9  ;;  %v3290_v63 = vld [vmem:[#allocation3 + $0x368] sm:$0xff] }
 0x4ba   :  { %2707 = vst.msk [vmem:[#allocation3 + $0x3b0] sm:$0xff] %vm904_vm3, %v2619_v46  ;;  %3748 = vmatmul.f32.gmra.mxu1 %v3284_v31  ;;  %v2827_v9 = vld [vmem:[#allocation2 + $0x468] sm:$0xff] }
 0x4bb   :  { %2905 = vrot.lane.b32.xlu0 %v2819_v25, %s4392_s12  ;;  %v2991_v31 = vld [vmem:[#allocation2 + $0x2a9] sm:$0xff] }
 0x4bd   :  { %v2629_v61 = vpop.permute.xlu0 %2628 }
 0x4be   :  { %2903 = vrot.lane.b32.xlu2 %v2818_v4, %s4392_s12  ;;  %2712 = vst.msk [vmem:[#allocation3 + $0x428] sm:$0xff] %vm904_vm3, %v2629_v61  ;;  %v6812_v33 = vpop.f32.mrf.mxu3  ;;  %v3296_v61 = vld [vmem:[#allocation3 + $0x398] sm:$0xff] }
 0x4bf   :  { %2901 = vrot.lane.b32.xlu1 %v2817_v44, %s4392_s12  ;;  %7252 = vst [vmem:[#allocation23_spill] sm:$0xff] %v6812_v33 }
 0x4c0   :  { %v2645_v57 = vpop.permute.xlu2 %2644 }
 0x4c1   :  { %v2625_v6 = vpop.permute.xlu1 %2624  ;;  %2720 = vst.msk [vmem:[#allocation3 + $0x4e8] sm:$0xff] %vm904_vm3, %v2645_v57  ;;  %v2742_v57 = vld [vmem:[#allocation2 + $0x30f] sm:$0xff] }
 0x4c2   :  { %2710 = vst.msk [vmem:[#allocation3 + $0x3f8] sm:$0xff] %vm904_vm3, %v2625_v6  ;;  %3751 = vmatmul.f32.gmra.mxu1 %v3287_v34  ;;  %v6824_v6 = vpop.f32.mrf.mxu1 }
 0x4c3   :  { %2911 = vrot.lane.b32.xlu0 %v2822_v3, %s4392_s12  ;;  %v2990_v3 = vld [vmem:[#allocation2 + $0x291] sm:$0xff]  ;;  %2774 = vst.msk [vmem:[#allocation3 + $0x3e8] sm:$0xff] %vm19_vm0, %v2742_v57  ;;  %v6848_v57 = vpop.f32.mrf.mxu2 }
 0x4c5   :  { %v2635_v52 = vpop.permute.xlu0 %2634 }
 0x4c6   :  { %2909 = vrot.lane.b32.xlu2 %v2821_v43, %s4392_s12  ;;  %2715 = vst.msk [vmem:[#allocation3 + $0x470] sm:$0xff] %vm904_vm3, %v2635_v52  ;;  %v6826_v34 = vpop.f32.mrf.mxu3  ;;  %v3329_v43 = vld [vmem:[#allocation3 + $0x4a0] sm:$0xff] }
 0x4c7   :  { %2907 = vrot.lane.b32.xlu1 %v2820_v48, %s4392_s12  ;;  %7253 = vst [vmem:[#allocation24_spill] sm:$0xff] %v6826_v34  ;;  %v2735_v48 = vld [vmem:[#allocation2 + $0x2a7] sm:$0xff] }
 0x4c8   :  { %v2651_v38 = vpop.permute.xlu2 %2650  ;;  %2767 = vst.msk [vmem:[#allocation3 + $0x340] sm:$0xff] %vm19_vm0, %v2735_v48 }
 0x4c9   :  { %v2631_v1 = vpop.permute.xlu1 %2630  ;;  %2723 = vst.msk [vmem:[#allocation3 + $0x530] sm:$0xff] %vm904_vm3, %v2651_v38  ;;  %v2994_v38 = vld [vmem:[#allocation2 + $0x2d1] sm:$0xff] }
 0x4ca   :  { %2713 = vst.msk [vmem:[#allocation3 + $0x440] sm:$0xff] %vm904_vm3, %v2631_v1  ;;  %3754 = vmatmul.f32.gmra.mxu1 %v3290_v63  ;;  %v3299_v63 = vld [vmem:[#allocation3 + $0x3b0] sm:$0xff] }
 0x4cb   :  { %2917 = vrot.lane.b32.xlu0 %v6544_v41, %s4392_s12  ;;  %v2739_v41 = vld [vmem:[#allocation2 + $0x2e7] sm:$0xff] }
 0x4cc   :  { %2771 = vst.msk [vmem:[#allocation3 + $0x3a0] sm:$0xff] %vm19_vm0, %v2739_v41 }
 0x4cd   :  { %v2641_v0 = vpop.permute.xlu0 %2640 }
 0x4ce   :  { %2915 = vrot.lane.b32.xlu2 %v2824_v26, %s4392_s12  ;;  %2718 = vst.msk [vmem:[#allocation3 + $0x4b8] sm:$0xff] %vm904_vm3, %v2641_v0  ;;  %v2993_v26 = vld [vmem:[#allocation2 + $0x2c9] sm:$0xff] }
 0x4cf   :  { %2913 = vrot.lane.b32.xlu1 %v2823_v58, %s4392_s12  ;;  %v2992_v58 = vld [vmem:[#allocation2 + $0x2b1] sm:$0xff] }
 0x4d0   :  { %v2657_v28 = vpop.permute.xlu2 %2656 }
 0x4d1   :  { %v2637_v37 = vpop.permute.xlu1 %2636  ;;  %2726 = vst.msk [vmem:[#allocation3 + $0x578] sm:$0xff] %vm904_vm3, %v2657_v28  ;;  %v6836_v28 = vpop.f32.mrf.mxu1 }
 0x4d2   :  { %2716 = vst.msk [vmem:[#allocation3 + $0x488] sm:$0xff] %vm904_vm3, %v2637_v37  ;;  %3757 = vmatmul.f32.gmra.mxu1 %v3293_v36  ;;  %v2738_v36 = vld [vmem:[#allocation2 + $0x2cf] sm:$0xff] }
 0x4d3   :  { %2923 = vrot.lane.b32.xlu0 %v2828_v35, %s4392_s12  ;;  %v6840_v35 = vpop.f32.mrf.mxu3  ;;  %2770 = vst.msk [vmem:[#allocation3 + $0x388] sm:$0xff] %vm19_vm0, %v2738_v36 }
 0x4d4   :  { %7254 = vst [vmem:[#allocation25_spill] sm:$0xff] %v6840_v35 }
 0x4d5   :  { %v2647_v25 = vpop.permute.xlu0 %2646  ;;  %v3332_v37 = vld [vmem:[#allocation3 + $0x4b8] sm:$0xff] }
 0x4d6   :  { %2921 = vrot.lane.b32.xlu2 %v2827_v9, %s4392_s12  ;;  %2721 = vst.msk [vmem:[#allocation3 + $0x500] sm:$0xff] %vm904_vm3, %v2647_v25  ;;  %v2997_v9 = vld [vmem:[#allocation2 + $0x309] sm:$0xff] }
 0x4d7   :  { %2919 = vrot.lane.b32.xlu1 %v6535_v23, %s4392_s12  ;;  %v2989_v23 = vld [vmem:[#allocation2 + $0x289] sm:$0xff] }
 0x4d8   :  { %v2663_v46 = vpop.permute.xlu2 %2662 }
 0x4d9   :  { %v2643_v4 = vpop.permute.xlu1 %2642  ;;  %2729 = vst.msk [vmem:[#allocation3 + $0x5c0] sm:$0xff] %vm904_vm3, %v2663_v46  ;;  %v3326_v44 = vld [vmem:[#allocation3 + $0x488] sm:$0xff] }
 0x4da   :  { %2719 = vst.msk [vmem:[#allocation3 + $0x4d0] sm:$0xff] %vm904_vm3, %v2643_v4  ;;  %3790 = vmatmul.f32.vlgmr.msrb.gmra.mxu3 %v3326_v44  ;;  %3760 = vmatmul.f32.gmra.mxu1 %v3296_v61  ;;  %v3302_v46 = vld [vmem:[#allocation3 + $0x3c8] sm:$0xff]  ;;  %v2996_v4 = vld [vmem:[#allocation2 + $0x2f1] sm:$0xff] }
 0x4db   :  { %3057 = vrot.lane.b32.xlu0 %v2991_v31, %s4393_s21  ;;  %v2748_v31 = vld [vmem:[#allocation2 + $0x36f] sm:$0xff]  ;;  %v6856_v48 = vpop.f32.mrf.mxu3 }
 0x4dc   :  { %2780 = vst.msk [vmem:[#allocation3 + $0x478] sm:$0xff] %vm19_vm0, %v2748_v31  ;;  %v2995_v44 = vld [vmem:[#allocation2 + $0x2e9] sm:$0xff] }
 0x4dd   :  { %v2653_v56 = vpop.permute.xlu0 %2652  ;;  %7255 = vst [vmem:[#allocation26_spill] sm:$0xff] %v6856_v48 }
 0x4de   :  { %3055 = vrot.lane.b32.xlu2 %v2990_v3, %s4393_s21  ;;  %2724 = vst.msk [vmem:[#allocation3 + $0x548] sm:$0xff] %vm904_vm3, %v2653_v56  ;;  %v2741_v3 = vld [vmem:[#allocation2 + $0x307] sm:$0xff] }
 0x4df   :  { %3053 = vrot.lane.b32.xlu1 %v2989_v23, %s4393_s21  ;;  %v6853_v23 = vpop.f32.mrf.mxu1  ;;  %2773 = vst.msk [vmem:[#allocation3 + $0x3d0] sm:$0xff] %vm19_vm0, %v2741_v3  ;;  %v3001_v3 = vld [vmem:[#allocation2 + $0x349] sm:$0xff] }
 0x4e0   :  { %v2862_v52 = vpop.permute.xlu2 %2861  ;;  %v3365_v35 = vld [vmem:[#allocation3 + $0x5c0] sm:$0xff] }
 0x4e1   :  { %v2649_v1 = vpop.permute.xlu1 %2648  ;;  %2957 = vst.msk [vmem:[#allocation3 + $0x310] sm:$0xff] %vm711_vm2, %v2862_v52 }
 0x4e2   :  { %2722 = vst.msk [vmem:[#allocation3 + $0x518] sm:$0xff] %vm904_vm3, %v2649_v1  ;;  %3793 = vmatmul.f32.gmra.mxu3 %v3329_v43  ;;  %3763 = vmatmul.f32.gmra.mxu1 %v3299_v63  ;;  %v3000_v43 = vld [vmem:[#allocation2 + $0x331] sm:$0xff]  ;;  %v3305_v1 = vld [vmem:[#allocation3 + $0x3e0] sm:$0xff] }
 0x4e3   :  { %3063 = vrot.lane.b32.xlu0 %v2994_v38, %s4393_s21  ;;  %v3335_v38 = vld [vmem:[#allocation3 + $0x4d0] sm:$0xff]  ;;  %v2751_v63 = vld [vmem:[#allocation2 + $0x3a7] sm:$0xff] }
 0x4e4   :  { %2783 = vst.msk [vmem:[#allocation3 + $0x4c0] sm:$0xff] %vm19_vm0, %v2751_v63  ;;  %v3341_v63 = vld [vmem:[#allocation3 + $0x500] sm:$0xff] }
 0x4e5   :  { %v2659_v0 = vpop.permute.xlu0 %2658 }
 0x4e6   :  { %3061 = vrot.lane.b32.xlu2 %v2993_v26, %s4393_s21  ;;  %2727 = vst.msk [vmem:[#allocation3 + $0x590] sm:$0xff] %vm904_vm3, %v2659_v0  ;;  %v2998_v26 = vld [vmem:[#allocation2 + $0x311] sm:$0xff] }
 0x4e7   :  { %3059 = vrot.lane.b32.xlu1 %v2992_v58, %s4393_s21  ;;  %v2744_v0 = vld [vmem:[#allocation2 + $0x32f] sm:$0xff]  ;;  %v6869_v31 = vpop.f32.mrf.mxu1 }
 0x4e8   :  { %v2868_v41 = vpop.permute.xlu2 %2867  ;;  %2776 = vst.msk [vmem:[#allocation3 + $0x418] sm:$0xff] %vm19_vm0, %v2744_v0  ;;  %v3005_v0 = vld [vmem:[#allocation2 + $0x389] sm:$0xff] }
 0x4e9   :  { %v2655_v25 = vpop.permute.xlu1 %2654  ;;  %2960 = vst.msk [vmem:[#allocation3 + $0x358] sm:$0xff] %vm711_vm2, %v2868_v41  ;;  %v3003_v41 = vld [vmem:[#allocation2 + $0x369] sm:$0xff] }
 0x4ea   :  { %2725 = vst.msk [vmem:[#allocation3 + $0x560] sm:$0xff] %vm904_vm3, %v2655_v25  ;;  %3796 = vmatmul.f32.gmra.mxu3 %v3332_v37  ;;  %3766 = vmatmul.f32.gmra.mxu1 %v3302_v46  ;;  %v6865_v37 = vpop.f32.mrf.mxu2  ;;  %v3338_v25 = vld [vmem:[#allocation3 + $0x4e8] sm:$0xff]  ;;  %v3308_v46 = vld [vmem:[#allocation3 + $0x3f8] sm:$0xff] }
 0x4eb   :  { %3069 = vrot.lane.b32.xlu0 %v2997_v9, %s4393_s21 }
 0x4ed   :  { %v2665_v61 = vpop.permute.xlu0 %2664 }
 0x4ee   :  { %3067 = vrot.lane.b32.xlu2 %v2996_v4, %s4393_s21  ;;  %2730 = vst.msk [vmem:[#allocation3 + $0x5d8] sm:$0xff] %vm904_vm3, %v2665_v61  ;;  %v2754_v4 = vld [vmem:[#allocation2 + $0x3cf] sm:$0xff] }
 0x4ef   :  { %3065 = vrot.lane.b32.xlu1 %v2995_v44, %s4393_s21  ;;  %v6872_v44 = vpop.f32.mrf.mxu3  ;;  %v3002_v61 = vld [vmem:[#allocation2 + $0x351] sm:$0xff]  ;;  %2786 = vst.msk [vmem:[#allocation3 + $0x508] sm:$0xff] %vm19_vm0, %v2754_v4 }
 0x4f0   :  { %v2874_v56 = vpop.permute.xlu2 %2873  ;;  %7256 = vst [vmem:[#allocation27_spill] sm:$0xff] %v6872_v44  ;;  %v7264_v44 = vld [vmem:[#allocation15_spill] sm:$0xff] }
 0x4f1   :  { %v2661_v52 = vpop.permute.xlu1 %2660  ;;  %2963 = vst.msk [vmem:[#allocation3 + $0x3a0] sm:$0xff] %vm711_vm2, %v2874_v56 }
 0x4f2   :  { %2728 = vst.msk [vmem:[#allocation3 + $0x5a8] sm:$0xff] %vm904_vm3, %v2661_v52  ;;  %3799 = vmatmul.f32.gmra.mxu3 %v3335_v38  ;;  %3769 = vmatmul.f32.gmra.mxu1 %v3305_v1  ;;  %v3006_v38 = vld [vmem:[#allocation2 + $0x391] sm:$0xff] }
 0x4f3   :  { %3075 = vrot.lane.b32.xlu0 %v3000_v43, %s4393_s21  ;;  %v2747_v43 = vld [vmem:[#allocation2 + $0x367] sm:$0xff] }
 0x4f4   :  { %2779 = vst.msk [vmem:[#allocation3 + $0x460] sm:$0xff] %vm19_vm0, %v2747_v43  ;;  %v3314_v43 = vld [vmem:[#allocation3 + $0x428] sm:$0xff] }
 0x4f5   :  { %v2864_v58 = vpop.permute.xlu0 %2863 }
 0x4f6   :  { %3073 = vrot.lane.b32.xlu2 %v2999_v18, %s4393_s21  ;;  %2958 = vst.msk [vmem:[#allocation3 + $0x328] sm:$0xff] %vm711_vm2, %v2864_v58  ;;  %v3311_v18 = vld [vmem:[#allocation3 + $0x410] sm:$0xff]  ;;  %v2757_v58 = vld [vmem:[#allocation2 + $0x407] sm:$0xff] }
 0x4f7   :  { %3071 = vrot.lane.b32.xlu1 %v2998_v26, %s4393_s21  ;;  %v6881_v26 = vpop.f32.mrf.mxu2  ;;  %2789 = vst.msk [vmem:[#allocation3 + $0x550] sm:$0xff] %vm19_vm0, %v2757_v58 }
 0x4f8   :  { %v2880_v36 = vpop.permute.xlu2 %2879 }
 0x4f9   :  { %v2667_v9 = vpop.permute.xlu1 %2666  ;;  %2966 = vst.msk [vmem:[#allocation3 + $0x3e8] sm:$0xff] %vm711_vm2, %v2880_v36  ;;  %v6886_v36 = vpop.f32.mrf.mxu1 }
 0x4fa   :  { %2731 = vst.msk [vmem:[#allocation3 + $0x5f0] sm:$0xff] %vm904_vm3, %v2667_v9  ;;  %3802 = vmatmul.f32.gmra.mxu3 %v3338_v25  ;;  %3772 = vmatmul.f32.gmra.mxu1 %v3308_v46  ;;  %v6888_v9 = vpop.f32.mrf.mxu3  ;;  %v2750_v46 = vld [vmem:[#allocation2 + $0x38f] sm:$0xff] }
 0x4fb   :  { %3081 = vrot.lane.b32.xlu0 %v3003_v41, %s4393_s21  ;;  %v3004_v41 = vld [vmem:[#allocation2 + $0x371] sm:$0xff]  ;;  %7257 = vst [vmem:[#allocation28_spill] sm:$0xff] %v6888_v9 }
 0x4fc   :  { %2782 = vst.msk [vmem:[#allocation3 + $0x4a8] sm:$0xff] %vm19_vm0, %v2750_v46 }
 0x4fd   :  { %v2870_v56 = vpop.permute.xlu0 %2869 }
 0x4fe   :  { %3079 = vrot.lane.b32.xlu2 %v3002_v61, %s4393_s21  ;;  %2961 = vst.msk [vmem:[#allocation3 + $0x370] sm:$0xff] %vm711_vm2, %v2870_v56  ;;  %v3009_v61 = vld [vmem:[#allocation2 + $0x3c9] sm:$0xff]  ;;  %v3344_v56 = vld [vmem:[#allocation3 + $0x518] sm:$0xff] }
 0x4ff   :  { %3077 = vrot.lane.b32.xlu1 %v3001_v3, %s4393_s21 }
 0x500   :  { %v2886_v52 = vpop.permute.xlu2 %2885 }
 0x501   :  { %v2866_v1 = vpop.permute.xlu1 %2865  ;;  %2969 = vst.msk [vmem:[#allocation3 + $0x430] sm:$0xff] %vm711_vm2, %v2886_v52  ;;  %v2760_v52 = vld [vmem:[#allocation2 + $0x42f] sm:$0xff] }
 0x502   :  { %2959 = vst.msk [vmem:[#allocation3 + $0x340] sm:$0xff] %vm711_vm2, %v2866_v1  ;;  %3805 = vmatmul.f32.gmra.mxu3 %v3341_v63  ;;  %3775 = vmatmul.f32.gmra.mxu1 %v3311_v18  ;;  %v3007_v1 = vld [vmem:[#allocation2 + $0x3a9] sm:$0xff]  ;;  %v6900_v18 = vpop.f32.mrf.mxu1  ;;  %v6903_v58 = vpop.f32.mrf.mxu3 }
 0x503   :  { %3087 = vrot.lane.b32.xlu0 %v3006_v38, %s4393_s21  ;;  %2792 = vst.msk [vmem:[#allocation3 + $0x598] sm:$0xff] %vm19_vm0, %v2760_v52  ;;  %v6898_v38 = vpop.f32.mrf.mxu2  ;;  %v3010_v52 = vld [vmem:[#allocation2 + $0x3d1] sm:$0xff] }
 0x504   :  { %7258 = vst [vmem:[#allocation29_spill] sm:$0xff] %v6903_v58  ;;  %v3356_v58 = vld [vmem:[#allocation3 + $0x578] sm:$0xff] }
 0x505   :  { %v2876_v25 = vpop.permute.xlu0 %2875 }
 0x506   :  { %3085 = vrot.lane.b32.xlu2 %v3005_v0, %s4393_s21  ;;  %2964 = vst.msk [vmem:[#allocation3 + $0x3b8] sm:$0xff] %vm711_vm2, %v2876_v25  ;;  %v2753_v0 = vld [vmem:[#allocation2 + $0x3c7] sm:$0xff]  ;;  %v3012_v25 = vld [vmem:[#allocation2 + $0x3f1] sm:$0xff] }
 0x507   :  { %3083 = vrot.lane.b32.xlu1 %v3004_v41, %s4393_s21  ;;  %2785 = vst.msk [vmem:[#allocation3 + $0x4f0] sm:$0xff] %vm19_vm0, %v2753_v0 }
 0x508   :  { %v2892_v4 = vpop.permute.xlu2 %2891 }
 0x509   :  { %v2872_v3 = vpop.permute.xlu1 %2871  ;;  %2972 = vst.msk [vmem:[#allocation3 + $0x478] sm:$0xff] %vm711_vm2, %v2892_v4  ;;  %v3347_v4 = vld [vmem:[#allocation3 + $0x530] sm:$0xff] }
 0x50a   :  { %2962 = vst.msk [vmem:[#allocation3 + $0x388] sm:$0xff] %vm711_vm2, %v2872_v3  ;;  %3808 = vmatmul.f32.gmra.mxu3 %v3344_v56  ;;  %3778 = vmatmul.f32.gmra.mxu1 %v3314_v43  ;;  %v2763_v3 = vld [vmem:[#allocation2 + $0x467] sm:$0xff]  ;;  %v3008_v56 = vld [vmem:[#allocation2 + $0x3b1] sm:$0xff]  ;;  %v6917_v0 = vpop.f32.mrf.mxu1 }
 0x50b   :  { %3093 = vrot.lane.b32.xlu0 %v3009_v61, %s4393_s21  ;;  %v3317_v61 = vld [vmem:[#allocation3 + $0x440] sm:$0xff]  ;;  %v2756_v43 = vld [vmem:[#allocation2 + $0x3ef] sm:$0xff]  ;;  %2795 = vst.msk [vmem:[#allocation3 + $0x5e0] sm:$0xff] %vm19_vm0, %v2763_v3  ;;  %v3320_v3 = vld [vmem:[#allocation3 + $0x458] sm:$0xff] }
 0x50c   :  { %2788 = vst.msk [vmem:[#allocation3 + $0x538] sm:$0xff] %vm19_vm0, %v2756_v43  ;;  %v3013_v43 = vld [vmem:[#allocation2 + $0x409] sm:$0xff] }
 0x50d   :  { %v2882_v63 = vpop.permute.xlu0 %2881 }
 0x50e   :  { %2967 = vst.msk [vmem:[#allocation3 + $0x400] sm:$0xff] %vm711_vm2, %v2882_v63  ;;  %3091 = vrot.lane.b32.xlu2 %v3008_v56, %s4393_s21  ;;  %v6913_v63 = vpop.f32.mrf.mxu2  ;;  %v2759_v56 = vld [vmem:[#allocation2 + $0x427] sm:$0xff] }
 0x50f   :  { %3089 = vrot.lane.b32.xlu1 %v3007_v1, %s4393_s21  ;;  %2791 = vst.msk [vmem:[#allocation3 + $0x580] sm:$0xff] %vm19_vm0, %v2759_v56  ;;  %v3016_v56 = vld [vmem:[#allocation2 + $0x431] sm:$0xff] }
 0x510   :  { %v2898_v41 = vpop.permute.xlu2 %2897 }
 0x511   :  { %v2878_v46 = vpop.permute.xlu1 %2877  ;;  %2975 = vst.msk [vmem:[#allocation3 + $0x4c0] sm:$0xff] %vm711_vm2, %v2898_v41 }
 0x512   :  { %2965 = vst.msk [vmem:[#allocation3 + $0x3d0] sm:$0xff] %vm711_vm2, %v2878_v46  ;;  %3811 = vmatmul.f32.gmra.mxu3 %v3347_v4  ;;  %3781 = vmatmul.f32.gmra.mxu1 %v3317_v61  ;;  %v3015_v46 = vld [vmem:[#allocation2 + $0x429] sm:$0xff]  ;;  %v6919_v4 = vpop.f32.mrf.mxu3 }
 0x513   :  { %3099 = vrot.lane.b32.xlu0 %v3012_v25, %s4393_s21  ;;  %7259 = vst [vmem:[#allocation30_spill] sm:$0xff] %v6919_v4  ;;  %v3350_v61 = vld [vmem:[#allocation3 + $0x548] sm:$0xff] }
 0x515   :  { %v2888_v1 = vpop.permute.xlu0 %2887 }
 0x516   :  { %2970 = vst.msk [vmem:[#allocation3 + $0x448] sm:$0xff] %vm711_vm2, %v2888_v1  ;;  %v6927_v1 = vpop.f32.mrf.mxu2 }
 0x517   :  { %3095 = vrot.lane.b32.xlu1 %v3010_v52, %s4393_s21 }
 0x518   :  { %v2904_v41 = vpop.permute.xlu2 %2903 }
 0x519   :  { %v2884_v25 = vpop.permute.xlu1 %2883  ;;  %2978 = vst.msk [vmem:[#allocation3 + $0x508] sm:$0xff] %vm711_vm2, %v2904_v41 }
 0x51a   :  { %2968 = vst.msk [vmem:[#allocation3 + $0x418] sm:$0xff] %vm711_vm2, %v2884_v25  ;;  %3814 = vmatmul.f32.gmra.mxu3 %v3350_v61  ;;  %3784 = vmatmul.f32.gmra.mxu1 %v3320_v3  ;;  %v3353_v25 = vld [vmem:[#allocation3 + $0x560] sm:$0xff]  ;;  %v3323_v61 = vld [vmem:[#allocation3 + $0x470] sm:$0xff]  ;;  %v6930_v3 = vpop.f32.mrf.mxu1 }
 0x51b   :  { %3105 = vrot.lane.b32.xlu0 %v3015_v46, %s4393_s21  ;;  %v6933_v46 = vpop.f32.mrf.mxu3 }
 0x51c   :  { %7260 = vst [vmem:[#allocation31_spill] sm:$0xff] %v6933_v46 }
 0x51d   :  { %v2894_v52 = vpop.permute.xlu0 %2893 }
 0x51e   :  { %2973 = vst.msk [vmem:[#allocation3 + $0x490] sm:$0xff] %vm711_vm2, %v2894_v52  ;;  %v6940_v9 = vpop.f32.mrf.mxu2 }
 0x51f   :  { %3101 = vrot.lane.b32.xlu1 %v3013_v43, %s4393_s21 }
 0x520   :  { %v2910_v41 = vpop.permute.xlu2 %2909 }
 0x521   :  { %v2890_v4 = vpop.permute.xlu1 %2889  ;;  %2981 = vst.msk [vmem:[#allocation3 + $0x550] sm:$0xff] %vm711_vm2, %v2910_v41 }
 0x522   :  { %2971 = vst.msk [vmem:[#allocation3 + $0x460] sm:$0xff] %vm711_vm2, %v2890_v4  ;;  %3817 = vmatmul.f32.gmra.mxu3 %v3353_v25  ;;  %3787 = vmatmul.f32.gmra.mxu1 %v3323_v61  ;;  %v3011_v4 = vld [vmem:[#allocation2 + $0x3e9] sm:$0xff] }
 0x523   :  { %3111 = vrot.lane.b32.xlu0 %v6727_v62, %s4393_s21  ;;  %v2764_v25 = vld [vmem:[#allocation2 + $0x46f] sm:$0xff]  ;;  %3097 = vrot.lane.b32.xlu2 %v3011_v4, %s4393_s21  ;;  %v6945_v61 = vpop.f32.mrf.mxu3 }
 0x524   :  { %2796 = vst.msk [vmem:[#allocation3 + $0x5f8] sm:$0xff] %vm19_vm0, %v2764_v25  ;;  %v3019_v62 = vld [vmem:[#allocation2 + $0x469] sm:$0xff] }
 0x525   :  { %v2900_v43 = vpop.permute.xlu0 %2899  ;;  %7261 = vst [vmem:[#allocation32_spill] sm:$0xff] %v6945_v61 }
 0x526   :  { %2976 = vst.msk [vmem:[#allocation3 + $0x4d8] sm:$0xff] %vm711_vm2, %v2900_v43 }
 0x527   :  { %3107 = vrot.lane.b32.xlu1 %v3016_v56, %s4393_s21 }
 0x528   :  { %v2916_v52 = vpop.permute.xlu2 %2915 }
 0x529   :  { %v2896_v41 = vpop.permute.xlu1 %2895  ;;  %2984 = vst.msk [vmem:[#allocation3 + $0x598] sm:$0xff] %vm711_vm2, %v2916_v52 }
 0x52a   :  { %2974 = vst.msk [vmem:[#allocation3 + $0x4a8] sm:$0xff] %vm711_vm2, %v2896_v41  ;;  %3820 = vmatmul.f32.gmra.mxu3 %v3356_v58  ;;  %v3359_v41 = vld [vmem:[#allocation3 + $0x590] sm:$0xff]  ;;  %v6951_v58 = vpop.f32.mrf.mxu2 }
 0x52b   :  { %v6954_v25 = vpop.f32.mrf.mxu3 }
 0x52c   :  { %7262 = vst [vmem:[#allocation33_spill] sm:$0xff] %v6954_v25 }
 0x52d   :  { %v2906_v56 = vpop.permute.xlu0 %2905 }
 0x52e   :  { %2979 = vst.msk [vmem:[#allocation3 + $0x520] sm:$0xff] %vm711_vm2, %v2906_v56 }
 0x52f   :  { %3113 = vrot.lane.b32.xlu1 %v3019_v62, %s4393_s21  ;;  %v3362_v62 = vld [vmem:[#allocation3 + $0x5a8] sm:$0xff] }
 0x530   :  { %v2922_v43 = vpop.permute.xlu2 %2921 }
 0x531   :  { %v2902_v52 = vpop.permute.xlu1 %2901  ;;  %2987 = vst.msk [vmem:[#allocation3 + $0x5e0] sm:$0xff] %vm711_vm2, %v2922_v43 }
 0x532   :  { %2977 = vst.msk [vmem:[#allocation3 + $0x4f0] sm:$0xff] %vm711_vm2, %v2902_v52  ;;  %3823 = vmatmul.f32.gmra.mxu3 %v3359_v41  ;;  %v6958_v43 = vpop.f32.mrf.mxu2  ;;  %v7263_v41 = vld [vmem:[#allocation7_spill] sm:$0xff] }
 0x533   :  { %v3648_v48 = vadd.f32 %v7264_v44, %v7263_v41  ;;  %v7266_v41 = vld [vmem:[#allocation8_spill] sm:$0xff] }
 0x535   :  { %v2912_v4 = vpop.permute.xlu0 %2911 }
 0x536   :  { %2982 = vst.msk [vmem:[#allocation3 + $0x568] sm:$0xff] %vm711_vm2, %v2912_v4  ;;  %v6963_v4 = vpop.f32.mrf.mxu3 }
 0x537   :  { %7265 = vst [vmem:[#allocation7_spill] sm:$0xff] %v6963_v4  ;;  %v7267_v4 = vld [vmem:[#allocation16_spill] sm:$0xff] }
 0x538   :  { %v3056_v61 = vpop.permute.xlu2 %3055  ;;  %v3651_v34 = vadd.f32 %v7267_v4, %v7266_v41 }
 0x539   :  { %v2908_v46 = vpop.permute.xlu1 %2907  ;;  %3150 = vst.msk [vmem:[#allocation3 + $0x328] sm:$0xff] %vm904_vm3, %v3056_v61 }
 0x53a   :  { %2980 = vst.msk [vmem:[#allocation3 + $0x538] sm:$0xff] %vm711_vm2, %v2908_v46  ;;  %3826 = vmatmul.f32.gmra.mxu3 %v3362_v62  ;;  %v3857_v46 = vadd.f32 %v6481_v32, %v3648_v48  ;;  %v3014_v62 = vld [vmem:[#allocation2 + $0x411] sm:$0xff]  ;;  %v3860_v32 = vadd.f32 %v6494_v29, %v3651_v34 }
 0x53b   :  { %3103 = vrot.lane.b32.xlu2 %v3014_v62, %s4393_s21  ;;  %v7269_v62 = vld [vmem:[#allocation17_spill] sm:$0xff] }
 0x53d   :  { %v2918_v56 = vpop.permute.xlu0 %2917 }
 0x53e   :  { %2985 = vst.msk [vmem:[#allocation3 + $0x5b0] sm:$0xff] %vm711_vm2, %v2918_v56  ;;  %v6970_v56 = vpop.f32.mrf.mxu2 }
 0x540   :  { %v3062_v52 = vpop.permute.xlu2 %3061 }
 0x541   :  { %v2914_v25 = vpop.permute.xlu1 %2913  ;;  %3153 = vst.msk [vmem:[#allocation3 + $0x370] sm:$0xff] %vm904_vm3, %v3062_v52 }
 0x542   :  { %2983 = vst.msk [vmem:[#allocation3 + $0x580] sm:$0xff] %vm711_vm2, %v2914_v25  ;;  %3829 = vmatmul.f32.gmra.mxu3 %v3365_v35  ;;  %v3368_v25 = vld [vmem:[#allocation3 + $0x5d8] sm:$0xff]  ;;  %v6977_v35 = vpop.f32.mrf.mxu3 }
 0x545   :  { %v2924_v61 = vpop.permute.xlu0 %2923  ;;  %4048 = vxpose.xlu0.b32.start [1/16] (narrow) %v3857_v46, 32 }
 0x546   :  { %2988 = vst.msk [vmem:[#allocation3 + $0x5f8] sm:$0xff] %vm711_vm2, %v2924_v61  ;;  %v7268_v61 = vld [vmem:[#allocation9_spill] sm:$0xff]  ;;  %v6983_v41 = vpop.f32.mrf.mxu2 }
 0x547   :  { %v3654_v33 = vadd.f32 %v7269_v62, %v7268_v61 }
 0x548   :  { %v3068_v44 = vpop.permute.xlu2 %3067 }
 0x549   :  { %v2920_v52 = vpop.permute.xlu1 %2919  ;;  %3156 = vst.msk [vmem:[#allocation3 + $0x3b8] sm:$0xff] %vm904_vm3, %v3068_v44  ;;  %v3371_v44 = vld [vmem:[#allocation3 + $0x5f0] sm:$0xff]  ;;  %v3863_v29 = vadd.f32 %v6512_v12, %v3654_v33 }
 0x54a   :  { %2986 = vst.msk [vmem:[#allocation3 + $0x5c8] sm:$0xff] %vm711_vm2, %v2920_v52  ;;  %3832 = vmatmul.f32.gmra.mxu3 %v3368_v25  ;;  %v6987_v34 = vpop.f32.mrf.mxu3 }
 0x54d   :  { %v3058_v48 = vpop.permute.xlu0 %3057  ;;  %4049 = vxpose.xlu0.b32.cont [2/16] (narrow) %v3860_v32, 32  ;;  %v7270_v32 = vld [vmem:[#allocation10_spill] sm:$0xff] }
 0x54e   :  { %3151 = vst.msk [vmem:[#allocation3 + $0x340] sm:$0xff] %vm904_vm3, %v3058_v48  ;;  %v7271_v48 = vld [vmem:[#allocation18_spill] sm:$0xff]  ;;  %v6995_v12 = vpop.f32.mrf.mxu2 }
 0x54f   :  { %v3657_v61 = vadd.f32 %v7271_v48, %v7270_v32  ;;  %v7272_v48 = vld [vmem:[#allocation11_spill] sm:$0xff] }
 0x550   :  { %v3074_v46 = vpop.permute.xlu2 %3073 }
 0x551   :  { %v3054_v4 = vpop.permute.xlu1 %3053  ;;  %3159 = vst.msk [vmem:[#allocation3 + $0x400] sm:$0xff] %vm904_vm3, %v3074_v46 }
 0x552   :  { %3149 = vst.msk [vmem:[#allocation3 + $0x310] sm:$0xff] %vm904_vm3, %v3054_v4  ;;  %3835 = vmatmul.f32.gmra.mxu3 %v3371_v44  ;;  %v3866_v4 = vadd.f32 %v6532_v54, %v3657_v61 }
 0x555   :  { %v3064_v52 = vpop.permute.xlu0 %3063  ;;  %4050 = vxpose.xlu0.b32.cont [3/16] (narrow) %v3863_v29, 32  ;;  %v3017_v29 = vld [vmem:[#allocation2 + $0x449] sm:$0xff] }
 0x556   :  { %3154 = vst.msk [vmem:[#allocation3 + $0x388] sm:$0xff] %vm904_vm3, %v3064_v52  ;;  %3109 = vrot.lane.b32.xlu2 %v3017_v29, %s4393_s21  ;;  %v3282_v52 = vld [vmem:[#allocation3 + $0x328] sm:$0xff] }
 0x558   :  { %v3080_v25 = vpop.permute.xlu2 %3079 }
 0x559   :  { %3162 = vst.msk [vmem:[#allocation3 + $0x448] sm:$0xff] %vm904_vm3, %v3080_v25  ;;  %v3279_v46 = vld [vmem:[#allocation3 + $0x310] sm:$0xff]  ;;  %v3060_v62 = vpop.permute.xlu1 %3059  ;;  %v3696_v25 = vadd.f32 %v6824_v6, %v6542_v30  ;;  %v3916_v30 = vpop.f32.mrf.mxu2  ;;  %v3285_v6 = vld [vmem:[#allocation3 + $0x340] sm:$0xff] }
 0x55a   :  { %3951 = vmatmul.f32.gmra.mxu2 %v3279_v46  ;;  %3152 = vst.msk [vmem:[#allocation3 + $0x358] sm:$0xff] %vm904_vm3, %v3060_v62  ;;  %v7273_v46 = vld [vmem:[#allocation19_spill] sm:$0xff] }
 0x55b   :  { %v3660_v62 = vadd.f32 %v7273_v46, %v7272_v48  ;;  %v3905_v61 = vadd.f32 %v6958_v43, %v3696_v25  ;;  %v7274_v46 = vld [vmem:[#allocation12_spill] sm:$0xff] }
 0x55c   :  { %v7275_v43 = vld [vmem:[#allocation20_spill] sm:$0xff] }
 0x55d   :  { %v6997_v33 = vpop.f32.mrf.mxu3  ;;  %v3070_v44 = vpop.permute.xlu0 %3069  ;;  %4051 = vxpose.xlu0.b32.cont [4/16] (narrow) %v3866_v4, 32  ;;  %v3869_v4 = vadd.f32 %v6565_v42, %v3660_v62 }
 0x55e   :  { %3157 = vst.msk [vmem:[#allocation3 + $0x3d0] sm:$0xff] %vm904_vm3, %v3070_v44 }
 0x560   :  { %v3086_v32 = vpop.permute.xlu2 %3085 }
 0x561   :  { %3165 = vst.msk [vmem:[#allocation3 + $0x490] sm:$0xff] %vm904_vm3, %v3086_v32  ;;  %v3066_v54 = vpop.permute.xlu1 %3065  ;;  %v3699_v32 = vadd.f32 %v6836_v28, %v6570_v45 }
 0x562   :  { %3954 = vmatmul.f32.gmra.mxu2 %v3282_v52  ;;  %3155 = vst.msk [vmem:[#allocation3 + $0x3a0] sm:$0xff] %vm904_vm3, %v3066_v54  ;;  %v3663_v52 = vadd.f32 %v7275_v43, %v7274_v46  ;;  %v7019_v54 = vpop.f32.mrf.mxu0 }
 0x563   :  { %v3908_v42 = vadd.f32 %v6970_v56, %v3699_v32  ;;  %v3702_v56 = vadd.f32 %v6853_v23, %v6602_v40  ;;  %v3291_v23 = vld [vmem:[#allocation3 + $0x370] sm:$0xff] }
 0x564   :  { %4080 = vxpose.xlu1.b32.start [1/16] (narrow) %v3905_v61, 32  ;;  %v3872_v62 = vadd.f32 %v6592_v51, %v3663_v52  ;;  %v7021_v61 = vpop.f32.mrf.mxu1  ;;  %v7277_v51 = vld [vmem:[#allocation21_spill] sm:$0xff] }
 0x565   :  { %v7009_v44 = vpop.f32.mrf.mxu3  ;;  %v3076_v29 = vpop.permute.xlu0 %3075  ;;  %4052 = vxpose.xlu0.b32.cont [5/16] (narrow) %v3869_v4, 32  ;;  %v3911_v43 = vadd.f32 %v6983_v41, %v3702_v56  ;;  %v3705_v41 = vadd.f32 %v6869_v31, %v6631_v27  ;;  %v3294_v27 = vld [vmem:[#allocation3 + $0x388] sm:$0xff]  ;;  %v3708_v31 = vadd.f32 %v6886_v36, %v6653_v8 }
 0x566   :  { %3160 = vst.msk [vmem:[#allocation3 + $0x418] sm:$0xff] %vm904_vm3, %v3076_v29  ;;  %v3288_v29 = vld [vmem:[#allocation3 + $0x358] sm:$0xff] }
 0x568   :  { %v3327_v48 = vld [vmem:[#allocation3 + $0x490] sm:$0xff]  ;;  %v3092_v28 = vpop.permute.xlu2 %3091 }
 0x569   :  { %3999 = vmatmul.f32.vlgmr.msra.gmra.mxu3 %v3327_v48  ;;  %v3072_v25 = vpop.permute.xlu1 %3071  ;;  %3168 = vst.msk [vmem:[#allocation3 + $0x4d8] sm:$0xff] %vm904_vm3, %v3092_v28  ;;  %v3919_v48 = vpop.f32.mrf.mxu2  ;;  %v7278_v28 = vld [vmem:[#allocation14_spill] sm:$0xff]  ;;  %v3297_v36 = vld [vmem:[#allocation3 + $0x3a0] sm:$0xff] }
 0x56a   :  { %3957 = vmatmul.f32.gmra.mxu2 %v3285_v6  ;;  %3158 = vst.msk [vmem:[#allocation3 + $0x3e8] sm:$0xff] %vm904_vm3, %v3072_v25  ;;  %v7276_v6 = vld [vmem:[#allocation13_spill] sm:$0xff]  ;;  %v7040_v40 = vpop.f32.mrf.mxu0 }
 0x56b   :  { %v3666_v32 = vadd.f32 %v7277_v51, %v7276_v6  ;;  %v3914_v6 = vadd.f32 %v6995_v12, %v3705_v41 }
 0x56c   :  { %4081 = vxpose.xlu1.b32.cont [2/16] (narrow) %v3908_v42, 32 }
 0x56d   :  { %v7023_v4 = vpop.f32.mrf.mxu3  ;;  %v3082_v45 = vpop.permute.xlu0 %3081  ;;  %4053 = vxpose.xlu0.b32.cont [6/16] (narrow) %v3872_v62, 32  ;;  %v3875_v52 = vadd.f32 %v6624_v39, %v3666_v32  ;;  %v3020_v62 = vld [vmem:[#allocation2 + $0x471] sm:$0xff] }
 0x56e   :  { %3163 = vst.msk [vmem:[#allocation3 + $0x460] sm:$0xff] %vm904_vm3, %v3082_v45  ;;  %v7036_v45 = vpop.f32.mrf.mxu1  ;;  %3115 = vrot.lane.b32.xlu2 %v3020_v62, %s4393_s21  ;;  %v7279_v39 = vld [vmem:[#allocation22_spill] sm:$0xff] }
 0x571   :  { %v3078_v46 = vpop.permute.xlu1 %3077  ;;  %v3922_v32 = vpop.f32.mrf.mxu2 }
 0x572   :  { %3960 = vmatmul.f32.gmra.mxu2 %v3288_v29  ;;  %3161 = vst.msk [vmem:[#allocation3 + $0x430] sm:$0xff] %vm904_vm3, %v3078_v46  ;;  %v3669_v29 = vadd.f32 %v7279_v39, %v7278_v28 }
 0x574   :  { %4082 = vxpose.xlu1.b32.cont [3/16] (narrow) %v3911_v43, 32  ;;  %v3878_v51 = vadd.f32 %v6647_v17, %v3669_v29  ;;  %v3672_v17 = vadd.f32 %v6736_v20, %v6408_v60  ;;  %v3711_v29 = vadd.f32 %v6900_v18, %v6666_v19  ;;  %v3675_v60 = vadd.f32 %v6744_v7, %v6420_v10  ;;  %v3300_v10 = vld [vmem:[#allocation3 + $0x3b8] sm:$0xff] }
 0x575   :  { %v7034_v25 = vpop.f32.mrf.mxu3  ;;  %v3088_v42 = vpop.permute.xlu0 %3087  ;;  %4054 = vxpose.xlu0.b32.cont [7/16] (narrow) %v3875_v52, 32  ;;  %v3336_v7 = vld [vmem:[#allocation3 + $0x4d8] sm:$0xff] }
 0x576   :  { %3166 = vst.msk [vmem:[#allocation3 + $0x4a8] sm:$0xff] %vm904_vm3, %v3088_v42  ;;  %v7054_v12 = vpop.f32.mrf.mxu1  ;;  %v7056_v42 = vpop.f32.mrf.mxu0  ;;  %v3881_v41 = vadd.f32 %v6848_v57, %v3672_v17  ;;  %v3920_v57 = vadd.f32 %v3919_v48, %v3711_v29  ;;  %v3714_v48 = vadd.f32 %v6917_v0, %v6684_v22  ;;  %v3681_v22 = vadd.f32 %v6764_v21, %v6448_v14 }
 0x577   :  { %v3684_v21 = vadd.f32 %v6774_v53, %v6462_v15 }
 0x578   :  { %v3890_v0 = vadd.f32 %v6898_v38, %v3681_v22 }
 0x579   :  { %v3084_v56 = vpop.permute.xlu1 %3083  ;;  %v3925_v28 = vpop.f32.mrf.mxu2 }
 0x57a   :  { %3963 = vmatmul.f32.gmra.mxu2 %v3291_v23  ;;  %3164 = vst.msk [vmem:[#allocation3 + $0x478] sm:$0xff] %vm904_vm3, %v3084_v56  ;;  %v3917_v23 = vadd.f32 %v3916_v30, %v3708_v31 }
 0x57c   :  { %4083 = vxpose.xlu1.b32.cont [4/16] (narrow) %v3914_v6, 32 }
 0x57d   :  { %v7049_v46 = vpop.f32.mrf.mxu3  ;;  %4055 = vxpose.xlu0.b32.cont [8/16] (narrow) %v3878_v51, 32  ;;  %v3330_v43 = vld [vmem:[#allocation3 + $0x4a8] sm:$0xff]  ;;  %v3094_v52 = vpop.permute.xlu0 %3093  ;;  %v3884_v51 = vadd.f32 %v6865_v37, %v3675_v60 }
 0x57e   :  { %4002 = vmatmul.f32.gmra.mxu3 %v3330_v43  ;;  %3169 = vst.msk [vmem:[#allocation3 + $0x4f0] sm:$0xff] %vm904_vm3, %v3094_v52  ;;  %v3098_v8 = vpop.permute.xlu2 %3097  ;;  %v7069_v56 = vpop.f32.mrf.mxu1  ;;  %v3678_v52 = vadd.f32 %v6755_v59, %v6436_v11  ;;  %v3717_v11 = vadd.f32 %v6930_v3, %v6701_v5  ;;  %v3306_v60 = vld [vmem:[#allocation3 + $0x3e8] sm:$0xff]  ;;  %v3720_v5 = vadd.f32 %v7021_v61, %v7019_v54 }
 0x57f   :  { %3171 = vst.msk [vmem:[#allocation3 + $0x520] sm:$0xff] %vm904_vm3, %v3098_v8  ;;  %v7072_v6 = vpop.f32.mrf.mxu0  ;;  %v3893_v3 = vadd.f32 %v6913_v63, %v3684_v21  ;;  %v3723_v54 = vadd.f32 %v7036_v45, %v7040_v40  ;;  %v3687_v63 = vadd.f32 %v6782_v47, %v6483_v2  ;;  %v3726_v40 = vadd.f32 %v7054_v12, %v7056_v42 }
 0x580   :  { %v3887_v37 = vadd.f32 %v6881_v26, %v3678_v52  ;;  %v3926_v26 = vadd.f32 %v3925_v28, %v3717_v11  ;;  %v3690_v52 = vadd.f32 %v6796_v24, %v6501_v49  ;;  %v3729_v12 = vadd.f32 %v7069_v56, %v7072_v6 }
 0x581   :  { %v3090_v62 = vpop.permute.xlu1 %3089  ;;  %v3928_v18 = vpop.f32.mrf.mxu2  ;;  %v3693_v49 = vadd.f32 %v6809_v50, %v6515_v55 }
 0x582   :  { %3966 = vmatmul.f32.gmra.mxu2 %v3294_v27  ;;  %3167 = vst.msk [vmem:[#allocation3 + $0x4c0] sm:$0xff] %vm904_vm3, %v3090_v62  ;;  %v3923_v27 = vadd.f32 %v3922_v32, %v3714_v48  ;;  %v3929_v38 = vadd.f32 %v3928_v18, %v3720_v5  ;;  %v3896_v18 = vadd.f32 %v6927_v1, %v3687_v63  ;;  %v3312_v48 = vld [vmem:[#allocation3 + $0x418] sm:$0xff] }
 0x584   :  { %4084 = vxpose.xlu1.b32.cont [5/16] (narrow) %v3917_v23, 32 }
 0x585   :  { %v7062_v39 = vpop.f32.mrf.mxu3  ;;  %4056 = vxpose.xlu0.b32.cont [9/16] (narrow) %v3881_v41, 32  ;;  %v3100_v19 = vpop.permute.xlu0 %3099  ;;  %v3303_v41 = vld [vmem:[#allocation3 + $0x3d0] sm:$0xff] }
 0x586   :  { %3172 = vst.msk [vmem:[#allocation3 + $0x538] sm:$0xff] %vm904_vm3, %v3100_v19  ;;  %v7083_v31 = vpop.f32.mrf.mxu1  ;;  %v3339_v8 = vld [vmem:[#allocation3 + $0x4f0] sm:$0xff] }
 0x587   :  { %v7085_v17 = vpop.f32.mrf.mxu0 }
 0x588   :  { %v3732_v55 = vadd.f32 %v7083_v31, %v7085_v17 }
 0x589   :  { %v3333_v20 = vld [vmem:[#allocation3 + $0x4c0] sm:$0xff]  ;;  %v3096_v30 = vpop.permute.xlu1 %3095  ;;  %v3931_v59 = vpop.f32.mrf.mxu2 }
 0x58a   :  { %3969 = vmatmul.f32.gmra.mxu2 %v3297_v36  ;;  %4005 = vmatmul.f32.gmra.mxu3 %v3333_v20  ;;  %3170 = vst.msk [vmem:[#allocation3 + $0x508] sm:$0xff] %vm904_vm3, %v3096_v30  ;;  %v3932_v19 = vadd.f32 %v3931_v59, %v3723_v54 }
 0x58c   :  { %4085 = vxpose.xlu1.b32.cont [6/16] (narrow) %v3920_v57, 32  ;;  %v3309_v57 = vld [vmem:[#allocation3 + $0x400] sm:$0xff] }
 0x58d   :  { %v7075_v43 = vpop.f32.mrf.mxu3  ;;  %4057 = vxpose.xlu0.b32.cont [10/16] (narrow) %v3884_v51, 32  ;;  %v3106_v30 = vpop.permute.xlu0 %3105  ;;  %v3345_v51 = vld [vmem:[#allocation3 + $0x520] sm:$0xff]  ;;  %v3348_v45 = vld [vmem:[#allocation3 + $0x538] sm:$0xff] }
 0x58e   :  { %v7095_v32 = vpop.f32.mrf.mxu1  ;;  %3175 = vst.msk [vmem:[#allocation3 + $0x580] sm:$0xff] %vm904_vm3, %v3106_v30  ;;  %v3324_v30 = vld [vmem:[#allocation3 + $0x478] sm:$0xff] }
 0x58f   :  { %v7099_v29 = vpop.f32.mrf.mxu0 }
 0x591   :  { %v3102_v23 = vpop.permute.xlu1 %3101  ;;  %v3342_v20 = vld [vmem:[#allocation3 + $0x508] sm:$0xff]  ;;  %v3934_v28 = vpop.f32.mrf.mxu2 }
 0x592   :  { %3972 = vmatmul.f32.gmra.mxu2 %v3300_v10  ;;  %4008 = vmatmul.f32.gmra.mxu3 %v3336_v7  ;;  %3173 = vst.msk [vmem:[#allocation3 + $0x550] sm:$0xff] %vm904_vm3, %v3102_v23  ;;  %v3935_v47 = vadd.f32 %v3934_v28, %v3726_v40 }
 0x594   :  { %4086 = vxpose.xlu1.b32.cont [7/16] (narrow) %v3923_v27, 32 }
 0x595   :  { %v7087_v62 = vpop.f32.mrf.mxu3  ;;  %4058 = vxpose.xlu0.b32.cont [11/16] (narrow) %v3887_v37, 32  ;;  %v3104_v14 = vpop.permute.xlu2 %3103  ;;  %v3899_v37 = vadd.f32 %v6940_v9, %v3690_v52  ;;  %v3902_v9 = vadd.f32 %v6951_v58, %v3693_v49  ;;  %v3357_v21 = vld [vmem:[#allocation3 + $0x580] sm:$0xff] }
 0x596   :  { %3174 = vst.msk [vmem:[#allocation3 + $0x568] sm:$0xff] %vm904_vm3, %v3104_v14  ;;  %v7110_v61 = vpop.f32.mrf.mxu1  ;;  %v3321_v14 = vld [vmem:[#allocation3 + $0x460] sm:$0xff] }
 0x597   :  { %v7114_v53 = vpop.f32.mrf.mxu0 }
 0x599   :  { %v3937_v10 = vpop.f32.mrf.mxu2  ;;  %v3108_v7 = vpop.permute.xlu1 %3107 }
 0x59a   :  { %3975 = vmatmul.f32.gmra.mxu2 %v3303_v41  ;;  %4011 = vmatmul.f32.gmra.mxu3 %v3339_v8  ;;  %3176 = vst.msk [vmem:[#allocation3 + $0x598] sm:$0xff] %vm904_vm3, %v3108_v7  ;;  %v3315_v41 = vld [vmem:[#allocation3 + $0x430] sm:$0xff]  ;;  %v3938_v24 = vadd.f32 %v3937_v10, %v3729_v12  ;;  %v3792_v12 = vadd.f32 %v6997_v33, %v6786_v13 }
 0x59b   :  { %v3351_v8 = vld [vmem:[#allocation3 + $0x550] sm:$0xff]  ;;  %v3795_v33 = vadd.f32 %v7009_v44, %v6798_v16 }
 0x59c   :  { %4087 = vxpose.xlu1.b32.cont [8/16] (narrow) %v3926_v26, 32  ;;  %v3112_v26 = vpop.permute.xlu0 %3111 }
 0x59d   :  { %4059 = vxpose.xlu0.b32.cont [12/16] (narrow) %v3890_v0, 32  ;;  %v7097_v36 = vpop.f32.mrf.mxu3  ;;  %v3318_v0 = vld [vmem:[#allocation3 + $0x448] sm:$0xff]  ;;  %3178 = vst.msk [vmem:[#allocation3 + $0x5c8] sm:$0xff] %vm904_vm3, %v3112_v26 }
 0x59e   :  { %v3740_v2 = vpop.f32.mrf.mxu1  ;;  %v3354_v56 = vld [vmem:[#allocation3 + $0x568] sm:$0xff] }
 0x59f   :  { %v3531_v1 = vpop.f32.mrf.mxu0 }
 0x5a1   :  { %v3940_v23 = vpop.f32.mrf.mxu2  ;;  %v3114_v5 = vpop.permute.xlu1 %3113 }
 0x5a2   :  { %3978 = vmatmul.f32.gmra.mxu2 %v3306_v60  ;;  %4014 = vmatmul.f32.gmra.mxu3 %v3342_v20  ;;  %v3941_v6 = vadd.f32 %v3940_v23, %v3732_v55  ;;  %3179 = vst.msk [vmem:[#allocation3 + $0x5e0] sm:$0xff] %vm904_vm3, %v3114_v5 }
 0x5a4   :  { %4088 = vxpose.xlu1.b32.cont [9/16] (narrow) %v3929_v38, 32  ;;  %v3735_v38 = vadd.f32 %v7095_v32, %v7099_v29  ;;  %v3366_v52 = vld [vmem:[#allocation3 + $0x5c8] sm:$0xff] }
 0x5a5   :  { %4060 = vxpose.xlu0.b32.cont [13/16] (narrow) %v3893_v3, 32  ;;  %v7112_v15 = vpop.f32.mrf.mxu3 }
 0x5a6   :  { %v3743_v11 = vpop.f32.mrf.mxu1 }
 0x5a7   :  { %v3534_v22 = vpop.f32.mrf.mxu0 }
 0x5a8   :  { %v3744_v40 = vadd.f32 %v3743_v11, %v3534_v22 }
 0x5a9   :  { %v3943_v50 = vpop.f32.mrf.mxu2 }
 0x5aa   :  { %3981 = vmatmul.f32.gmra.mxu2 %v3309_v57  ;;  %4017 = vmatmul.f32.gmra.mxu3 %v3345_v51  ;;  %v3944_v3 = vadd.f32 %v3943_v50, %v3735_v38  ;;  %v3360_v57 = vld [vmem:[#allocation3 + $0x598] sm:$0xff]  ;;  %v3738_v51 = vadd.f32 %v7110_v61, %v7114_v53 }
 0x5ac   :  { %4089 = vxpose.xlu1.b32.cont [10/16] (narrow) %v3932_v19, 32 }
 0x5ad   :  { %4061 = vxpose.xlu0.b32.cont [14/16] (narrow) %v3896_v18, 32  ;;  %v7124_v27 = vpop.f32.mrf.mxu3  ;;  %v3741_v18 = vadd.f32 %v3740_v2, %v3531_v1  ;;  %v3369_v1 = vld [vmem:[#allocation3 + $0x5e0] sm:$0xff] }
 0x5ae   :  { %v3746_v60 = vpop.f32.mrf.mxu1 }
 0x5af   :  { %v3537_v58 = vpop.f32.mrf.mxu0 }
 0x5b0   :  { %v3110_v42 = vpop.permute.xlu2 %3109  ;;  %v3747_v23 = vadd.f32 %v3746_v60, %v3537_v58 }
 0x5b1   :  { %3177 = vst.msk [vmem:[#allocation3 + $0x5b0] sm:$0xff] %vm904_vm3, %v3110_v42  ;;  %v3946_v31 = vpop.f32.mrf.mxu2 }
 0x5b2   :  { %3984 = vmatmul.f32.gmra.mxu2 %v3312_v48  ;;  %4020 = vmatmul.f32.gmra.mxu3 %v3348_v45  ;;  %v3947_v19 = vadd.f32 %v3946_v31, %v3738_v51 }
 0x5b4   :  { %4090 = vxpose.xlu1.b32.cont [11/16] (narrow) %v3935_v47, 32 }
 0x5b5   :  { %4062 = vxpose.xlu0.b32.cont [15/16] (narrow) %v3899_v37, 32  ;;  %v7133_v59 = vpop.f32.mrf.mxu3 }
 0x5b6   :  { %v3749_v17 = vpop.f32.mrf.mxu1 }
 0x5b7   :  { %v3540_v28 = vpop.f32.mrf.mxu0 }
 0x5b8   :  { %v3363_v29 = vld [vmem:[#allocation3 + $0x5b0] sm:$0xff]  ;;  %v3750_v42 = vadd.f32 %v3749_v17, %v3540_v28 }
 0x5b9   :  { %v3949_v32 = vpop.f32.mrf.mxu2 }
 0x5ba   :  { %3987 = vmatmul.f32.gmra.mxu2 %v3315_v41  ;;  %4023 = vmatmul.f32.gmra.mxu3 %v3351_v8  ;;  %v3950_v48 = vadd.f32 %v3949_v32, %v3741_v18 }
 0x5bc   :  { %4091 = vxpose.xlu1.b32.cont [12/16] (narrow) %v3938_v24, 32 }
 0x5bd   :  { %4063 = vxpose.xlu0.b32.end [16/16] (narrow) %v3902_v9, 32  ;;  %v7138_v20 = vpop.f32.mrf.mxu3 }
 0x5be   :  { %v3752_v10 = vpop.f32.mrf.mxu1 }
 0x5bf   :  { %v3543_v7 = vpop.f32.mrf.mxu0 }
 0x5c2   :  { %3990 = vmatmul.f32.gmra.mxu2 %v3318_v0  ;;  %4026 = vmatmul.f32.gmra.mxu3 %v3354_v56  ;;  %v3753_v56 = vadd.f32 %v3752_v10, %v3543_v7  ;;  %v7281_v10 = vld [vmem:[#allocation24_spill] sm:$0xff] }
 0x5c3   :  { %v3801_v7 = vadd.f32 %v7034_v25, %v7281_v10 }
 0x5c4   :  { %4092 = vxpose.xlu1.b32.cont [13/16] (narrow) %v3941_v6, 32 }
 0x5c5   :  { %v7145_v54 = vpop.f32.mrf.mxu3 }
 0x5c6   :  { %v3755_v47 = vpop.f32.mrf.mxu1 }
 0x5c7   :  { %v3546_v37 = vpop.f32.mrf.mxu0 }
 0x5c8   :  { %v3116_v63 = vpop.permute.xlu2 %3115  ;;  %v3756_v58 = vadd.f32 %v3755_v47, %v3546_v37 }
 0x5c9   :  { %3180 = vst.msk [vmem:[#allocation3 + $0x5f8] sm:$0xff] %vm904_vm3, %v3116_v63  ;;  %v7280_v63 = vld [vmem:[#allocation23_spill] sm:$0xff] }
 0x5ca   :  { %3993 = vmatmul.f32.gmra.mxu2 %v3321_v14  ;;  %4029 = vmatmul.f32.gmra.mxu3 %v3357_v21 }
 0x5cc   :  { %4093 = vxpose.xlu1.b32.cont [14/16] (narrow) %v3944_v3, 32 }
 0x5cd   :  { %v7148_v45 = vpop.f32.mrf.mxu3 }
 0x5ce   :  { %v3758_v49 = vpop.f32.mrf.mxu1 }
 0x5cf   :  { %v3549_v22 = vpop.f32.mrf.mxu0 }
 0x5d0   :  { %v3372_v0 = vld [vmem:[#allocation3 + $0x5f8] sm:$0xff]  ;;  %v3759_v31 = vadd.f32 %v3758_v49, %v3549_v22 }
 0x5d2   :  { %3996 = vmatmul.f32.gmra.mxu2 %v3324_v30  ;;  %4032 = vmatmul.f32.gmra.mxu3 %v3360_v57 }
 0x5d4   :  { %4094 = vxpose.xlu1.b32.cont [15/16] (narrow) %v3947_v19, 32  ;;  %v3798_v19 = vadd.f32 %v7023_v4, %v7280_v63  ;;  %v7282_v4 = vld [vmem:[#allocation25_spill] sm:$0xff] }
 0x5d5   :  { %v7150_v41 = vpop.f32.mrf.mxu3 }
 0x5d6   :  { %v3761_v50 = vpop.f32.mrf.mxu1 }
 0x5d7   :  { %v3552_v60 = vpop.f32.mrf.mxu0 }
 0x5d8   :  { %v3762_v51 = vadd.f32 %v3761_v50, %v3552_v60  ;;  %v7284_v50 = vld [vmem:[#allocation27_spill] sm:$0xff] }
 0x5da   :  { %4035 = vmatmul.f32.gmra.mxu3 %v3363_v29 }
 0x5dc   :  { %4095 = vxpose.xlu1.b32.end [16/16] (narrow) %v3950_v48, 32 }
 0x5dd   :  { %v3952_v61 = vpop.f32.mrf.mxu2 }
 0x5de   :  { %v3953_v53 = vadd.f32 %v3952_v61, %v3744_v40  ;;  %v3764_v14 = vpop.f32.mrf.mxu1 }
 0x5df   :  { %v3555_v38 = vpop.f32.mrf.mxu0 }
 0x5e0   :  { %4160 = vxpose.xlu2.b32.start [1/16] (narrow) %v3953_v53, 32  ;;  %v3765_v44 = vadd.f32 %v3764_v14, %v3555_v38 }
 0x5e2   :  { %4038 = vmatmul.f32.gmra.mxu3 %v3366_v52 }
 0x5e5   :  { %v3955_v8 = vpop.f32.mrf.mxu2 }
 0x5e6   :  { %v3956_v2 = vadd.f32 %v3955_v8, %v3747_v23  ;;  %v3767_v30 = vpop.f32.mrf.mxu1  ;;  %v3804_v23 = vadd.f32 %v7049_v46, %v7282_v4 }
 0x5e7   :  { %v3558_v57 = vpop.f32.mrf.mxu0 }
 0x5e8   :  { %4161 = vxpose.xlu2.b32.cont [2/16] (narrow) %v3956_v2, 32  ;;  %v3768_v37 = vadd.f32 %v3767_v30, %v3558_v57  ;;  %v7286_v57 = vld [vmem:[#allocation29_spill] sm:$0xff] }
 0x5ea   :  { %4041 = vmatmul.f32.gmra.mxu3 %v3369_v1 }
 0x5ec   :  { %v4000_v24 = vpop.f32.mrf.mxu3 }
 0x5ed   :  { %v3958_v11 = vpop.f32.mrf.mxu2  ;;  %v4001_v9 = vadd.f32 %v4000_v24, %v3792_v12  ;;  %v7283_v24 = vld [vmem:[#allocation26_spill] sm:$0xff] }
 0x5ee   :  { %v3959_v26 = vadd.f32 %v3958_v11, %v3750_v42  ;;  %v3770_v48 = vpop.f32.mrf.mxu1  ;;  %v3807_v11 = vadd.f32 %v7062_v39, %v7283_v24 }
 0x5ef   :  { %4192 = vxpose.xlu0.b32.start [1/16] (narrow) %v4001_v9, 32  ;;  %v3561_v53 = vpop.f32.mrf.mxu0 }
 0x5f0   :  { %4162 = vxpose.xlu2.b32.cont [3/16] (narrow) %v3959_v26, 32  ;;  %v3771_v25 = vadd.f32 %v3770_v48, %v3561_v53 }
 0x5f2   :  { %4044 = vmatmul.f32.gmra.mxu3 %v3372_v0 }
 0x5f5   :  { %v3961_v55 = vpop.f32.mrf.mxu2 }
 0x5f6   :  { %v3962_v6 = vadd.f32 %v3961_v55, %v3753_v56  ;;  %v3773_v1 = vpop.f32.mrf.mxu1 }
 0x5f7   :  { %v3564_v49 = vpop.f32.mrf.mxu0 }
 0x5f8   :  { %4163 = vxpose.xlu2.b32.cont [4/16] (narrow) %v3962_v6, 32  ;;  %v3774_v55 = vadd.f32 %v3773_v1, %v3564_v49  ;;  %v3810_v6 = vadd.f32 %v7075_v43, %v7284_v50 }
 0x5fd   :  { %v3964_v5 = vpop.f32.mrf.mxu2 }
 0x5fe   :  { %v3965_v13 = vadd.f32 %v3964_v5, %v3756_v58  ;;  %v3776_v56 = vpop.f32.mrf.mxu1 }
 0x5ff   :  { %v3567_v46 = vpop.f32.mrf.mxu0 }
 0x600   :  { %4164 = vxpose.xlu2.b32.cont [5/16] (narrow) %v3965_v13, 32  ;;  %v3777_v14 = vadd.f32 %v3776_v56, %v3567_v46  ;;  %v7291_v46 = vld [vmem:[#allocation7_spill] sm:$0xff] }
 0x601   :  { %v4003_v21 = vpop.f32.mrf.mxu3 }
 0x602   :  { %v4004_v3 = vadd.f32 %v4003_v21, %v3795_v33  ;;  %v7285_v21 = vld [vmem:[#allocation28_spill] sm:$0xff] }
 0x603   :  { %v3813_v38 = vadd.f32 %v7087_v62, %v7285_v21  ;;  %v7287_v62 = vld [vmem:[#allocation30_spill] sm:$0xff]  ;;  %v4064_v21 = vpop.trf.xlu0 }
 0x604   :  { %4193 = vxpose.xlu0.b32.cont [2/16] (narrow) %v4004_v3, 32 }
 0x605   :  { %v3967_v17 = vpop.f32.mrf.mxu2 }
 0x606   :  { %v3968_v28 = vadd.f32 %v3967_v17, %v3759_v31  ;;  %v3779_v33 = vpop.f32.mrf.mxu1 }
 0x607   :  { %v3570_v39 = vpop.f32.mrf.mxu0 }
 0x608   :  { %4165 = vxpose.xlu2.b32.cont [6/16] (narrow) %v3968_v28, 32  ;;  %v3780_v30 = vadd.f32 %v3779_v33, %v3570_v39 }
 0x60d   :  { %v3970_v32 = vpop.f32.mrf.mxu2  ;;  %v4006_v29 = vpop.f32.mrf.mxu3 }
 0x60e   :  { %v3971_v18 = vadd.f32 %v3970_v32, %v3762_v51  ;;  %v4007_v16 = vadd.f32 %v4006_v29, %v3798_v19  ;;  %v3782_v43 = vpop.f32.mrf.mxu1  ;;  %v3816_v51 = vadd.f32 %v7097_v36, %v7286_v57 }
 0x610   :  { %4166 = vxpose.xlu2.b32.cont [7/16] (narrow) %v3971_v18, 32  ;;  %4194 = vxpose.xlu0.b32.cont [3/16] (narrow) %v4007_v16, 32  ;;  %v3573_v18 = vpop.f32.mrf.mxu0 }
 0x611   :  { %v3783_v16 = vadd.f32 %v3782_v43, %v3573_v18 }
 0x615   :  { %v3973_v40 = vpop.f32.mrf.mxu2  ;;  %v4009_v61 = vpop.f32.mrf.mxu3 }
 0x616   :  { %v3974_v52 = vadd.f32 %v3973_v40, %v3765_v44  ;;  %v4010_v47 = vadd.f32 %v4009_v61, %v3801_v7  ;;  %v3819_v44 = vadd.f32 %v7112_v15, %v7287_v62  ;;  %v3785_v61 = vpop.f32.mrf.mxu1 }
 0x618   :  { %4167 = vxpose.xlu2.b32.cont [8/16] (narrow) %v3974_v52, 32  ;;  %4195 = vxpose.xlu0.b32.cont [4/16] (narrow) %v4010_v47, 32  ;;  %v3576_v53 = vpop.f32.mrf.mxu0  ;;  %v7288_v52 = vld [vmem:[#allocation31_spill] sm:$0xff] }
 0x619   :  { %v3786_v36 = vadd.f32 %v3785_v61, %v3576_v53  ;;  %v3822_v47 = vadd.f32 %v7124_v27, %v7288_v52  ;;  %v4224_v27 = vld [vmem:[%s7204_s2] sm:$0xff] }
 0x61d   :  { %v3976_v8 = vpop.f32.mrf.mxu2  ;;  %v4012_v2 = vpop.f32.mrf.mxu3 }
 0x61e   :  { %v3977_v12 = vadd.f32 %v3976_v8, %v3768_v37  ;;  %v4013_v42 = vadd.f32 %v4012_v2, %v3804_v23  ;;  %v3788_v2 = vpop.f32.mrf.mxu1 }
 0x620   :  { %4168 = vxpose.xlu2.b32.cont [9/16] (narrow) %v3977_v12, 32  ;;  %4196 = vxpose.xlu0.b32.cont [5/16] (narrow) %v4013_v42, 32  ;;  %v3579_v15 = vpop.f32.mrf.mxu0  ;;  %v7289_v12 = vld [vmem:[#allocation32_spill] sm:$0xff] }
 0x621   :  { %v3789_v1 = vadd.f32 %v3788_v2, %v3579_v15  ;;  %v3825_v42 = vadd.f32 %v7133_v59, %v7289_v12  ;;  %v4226_v59 = vld [vmem:[%s7204_s2 + $0x10] sm:$0xff] }
 0x625   :  { %v3979_v9 = vpop.f32.mrf.mxu2  ;;  %v4015_v22 = vpop.f32.mrf.mxu3 }
 0x626   :  { %v3980_v26 = vadd.f32 %v3979_v9, %v3771_v25  ;;  %v4016_v0 = vadd.f32 %v4015_v22, %v3807_v11  ;;  %v4394_v9 = vmov 0   ;;  %v7290_v22 = vld [vmem:[#allocation33_spill] sm:$0xff] }
 0x628   :  { %4169 = vxpose.xlu2.b32.cont [10/16] (narrow) %v3980_v26, 32  ;;  %4197 = vxpose.xlu0.b32.cont [6/16] (narrow) %v4016_v0, 32  ;;  %v3828_v26 = vadd.f32 %v7138_v20, %v7290_v22  ;;  %v3834_v20 = vadd.f32 %v7148_v45, %v6977_v35  ;;  %v4065_v45 = vpop.trf.xlu0 }
 0x62d   :  { %v3982_v60 = vpop.f32.mrf.mxu2  ;;  %v4018_v58 = vpop.f32.mrf.mxu3 }
 0x62e   :  { %v3983_v5 = vadd.f32 %v3982_v60, %v3774_v55  ;;  %v4019_v13 = vadd.f32 %v4018_v58, %v3810_v6  ;;  %v3831_v55 = vadd.f32 %v7145_v54, %v7291_v46  ;;  %v4227_v60 = vld [vmem:[%s7204_s2 + $0x18] sm:$0xff]  ;;  %v4096_v54 = vpop.trf.xlu1 }
 0x62f   :  { %4347 = vset.pattern.permute.xlu1 %v4394_v9 }
 0x630   :  { %4170 = vxpose.xlu2.b32.cont [11/16] (narrow) %v3983_v5, 32  ;;  %4198 = vxpose.xlu0.b32.cont [7/16] (narrow) %v4019_v13, 32  ;;  %v3837_v13 = vadd.f32 %v7150_v41, %v6987_v34 }
 0x635   :  { %v3985_v3 = vpop.f32.mrf.mxu2  ;;  %v4021_v31 = vpop.f32.mrf.mxu3 }
 0x636   :  { %v3986_v17 = vadd.f32 %v3985_v3, %v3777_v14  ;;  %v4022_v28 = vadd.f32 %v4021_v31, %v3813_v38  ;;  %4230 = vperm.xlu1 %4347, %v4224_v27   ;;  %v4097_v14 = vpop.trf.xlu1  ;;  %v4113_v38 = vld [vmem:[%s7204_s2 + $0x8] sm:$0xff]  ;;  %s4395_s2 = smov [#allocation4]  }
 0x637   :  { %s4277_s20 = sshll.u32 %s4395_s2, 4  ;;  %s4278_s20 = int_to_ptr.vmem [resolvable:$true] %s4277_s20 }
 0x638   :  { %4171 = vxpose.xlu2.b32.cont [12/16] (narrow) %v3986_v17, 32  ;;  %4199 = vxpose.xlu0.b32.cont [8/16] (narrow) %v4022_v28, 32  ;;  %v4066_v17 = vpop.trf.xlu0 }
 0x63d   :  { %v3988_v63 = vpop.f32.mrf.mxu2  ;;  %v4024_v19 = vpop.f32.mrf.mxu3 }
 0x63e   :  { %v3989_v32 = vadd.f32 %v3988_v63, %v3780_v30  ;;  %v4025_v29 = vadd.f32 %v4024_v19, %v3816_v51  ;;  %4240 = vperm.xlu1 %4347, %v4226_v59   ;;  %v4098_v35 = vpop.trf.xlu1 }
 0x640   :  { %4172 = vxpose.xlu2.b32.cont [13/16] (narrow) %v3989_v32, 32  ;;  %4200 = vxpose.xlu0.b32.cont [9/16] (narrow) %v4025_v29, 32  ;;  %v4067_v28 = vpop.trf.xlu0 }
 0x645   :  { %v3991_v10 = vpop.f32.mrf.mxu2  ;;  %v4027_v7 = vpop.f32.mrf.mxu3 }
 0x646   :  { %v3992_v48 = vadd.f32 %v3991_v10, %v3783_v16  ;;  %v4028_v40 = vadd.f32 %v4027_v7, %v3819_v44  ;;  %4245 = vperm.xlu1 %4347, %v4227_v60   ;;  %v4099_v31 = vpop.trf.xlu1 }
 0x648   :  { %4173 = vxpose.xlu2.b32.cont [14/16] (narrow) %v3992_v48, 32  ;;  %4201 = vxpose.xlu0.b32.cont [10/16] (narrow) %v4028_v40, 32 }
 0x64d   :  { %v3994_v37 = vpop.f32.mrf.mxu2  ;;  %v4030_v4 = vpop.f32.mrf.mxu3 }
 0x64e   :  { %v3995_v23 = vadd.f32 %v3994_v37, %v3786_v36  ;;  %v4031_v8 = vadd.f32 %v4030_v4, %v3822_v47 }
 0x650   :  { %4174 = vxpose.xlu2.b32.cont [15/16] (narrow) %v3995_v23, 32  ;;  %4202 = vxpose.xlu0.b32.cont [11/16] (narrow) %v4031_v8, 32 }
 0x655   :  { %v3997_v49 = vpop.f32.mrf.mxu2  ;;  %v4033_v25 = vpop.f32.mrf.mxu3 }
 0x656   :  { %v3998_v24 = vadd.f32 %v3997_v49, %v3789_v1  ;;  %v4034_v11 = vadd.f32 %v4033_v25, %v3825_v42 }
 0x658   :  { %4175 = vxpose.xlu2.b32.end [16/16] (narrow) %v3998_v24, 32  ;;  %4203 = vxpose.xlu0.b32.cont [12/16] (narrow) %v4034_v11, 32 }
 0x65d   :  { %v4036_v0 = vpop.f32.mrf.mxu3 }
 0x65e   :  { %v4037_v56 = vadd.f32 %v4036_v0, %v3828_v26 }
 0x660   :  { %4204 = vxpose.xlu0.b32.cont [13/16] (narrow) %v4037_v56, 32 }
 0x665   :  { %v4039_v50 = vpop.f32.mrf.mxu3 }
 0x666   :  { %v4040_v6 = vadd.f32 %v4039_v50, %v3831_v55 }
 0x668   :  { %4205 = vxpose.xlu0.b32.cont [14/16] (narrow) %v4040_v6, 32 }
 0x66d   :  { %v4042_v58 = vpop.f32.mrf.mxu3 }
 0x66e   :  { %v4043_v5 = vadd.f32 %v4042_v58, %v3834_v20 }
 0x670   :  { %4206 = vxpose.xlu0.b32.cont [15/16] (narrow) %v4043_v5, 32 }
 0x675   :  { %v4045_v33 = vpop.f32.mrf.mxu3 }
 0x676   :  { %v4046_v39 = vadd.f32 %v4045_v33, %v3837_v13 }
 0x678   :  { %4207 = vxpose.xlu0.b32.end [16/16] (narrow) %v4046_v39, 32 }
 0x679   :  { %v4176_v3 = vpop.trf.xlu2 }
 0x681   :  { %v7196_v34 = vpop.trf.xlu2 }
 0x689   :  { %v4178_v57 = vpop.trf.xlu2 }
 0x691   :  { %v4179_v16 = vpop.trf.xlu2 }
 0x6a4   :  { %v4208_v63 = vpop.trf.xlu0 }
 0x6a8   :  { %v4231_v41 = vpop.permute.xlu1 %4230 }
 0x6a9   :  { %v4248_v30 = vadd.f32 %v4231_v41, %v4176_v3  ;;  %v4249_v32 = vadd.f32 %v4231_v41, %v4208_v63 }
 0x6ab   :  { %v4256_v43 = vmax.f32 %v4248_v30, 0.0  ;;  %v4257_v18 = vmax.f32 %v4249_v32, 0.0 }
 0x6ac   :  { %v4209_v7 = vpop.trf.xlu0 }
 0x6ad   :  { %4265 = vst [vmem:[#allocation4 + $0x40] sm:$0xff] %v4256_v43 }
 0x6ae   :  { %4266 = vst [vmem:[#allocation4 + $0x48] sm:$0xff] %v4257_v18 }
 0x6b0   :  { %v4241_v51 = vpop.permute.xlu1 %4240 }
 0x6b1   :  { %v4252_v19 = vadd.f32 %v4241_v51, %v4178_v57 }
 0x6b3   :  { %v4260_v29 = vmax.f32 %v4252_v19, 0.0 }
 0x6b4   :  { %v4210_v48 = vpop.trf.xlu0 }
 0x6b5   :  { %4269 = vst [vmem:[#allocation4 + $0x60] sm:$0xff] %v4260_v29  ;;  %v4253_v40 = vadd.f32 %v4241_v51, %v4210_v48 }
 0x6b7   :  { %v4261_v61 = vmax.f32 %v4253_v40, 0.0 }
 0x6b8   :  { %v4246_v62 = vpop.permute.xlu1 %4245 }
 0x6b9   :  { %v4254_v44 = vadd.f32 %v4246_v62, %v4179_v16  ;;  %4270 = vst [vmem:[#allocation4 + $0x68] sm:$0xff] %v4261_v61 }
 0x6ba   :  { %4346 = vset.pattern.permute.xlu2 %v4394_v9 }
 0x6bb   :  { %v4262_v10 = vmax.f32 %v4254_v44, 0.0 }
 0x6bc   :  { %v4211_v53 = vpop.trf.xlu0 }
 0x6bd   :  { %4271 = vst [vmem:[#allocation4 + $0x70] sm:$0xff] %v4262_v10  ;;  %v4255_v36 = vadd.f32 %v4246_v62, %v4211_v53 }
 0x6bf   :  { %v4263_v52 = vmax.f32 %v4255_v36, 0.0 }
 0x6c1   :  { %4118 = vperm.xlu2 %4346, %v4224_v27   ;;  %4272 = vst [vmem:[#allocation4 + $0x78] sm:$0xff] %v4263_v52 }
 0x6c9   :  { %4123 = vperm.xlu2 %4346, %v4113_v38  }
 0x6d1   :  { %4128 = vperm.xlu2 %4346, %v4226_v59  }
 0x6d9   :  { %4133 = vperm.xlu2 %4346, %v4227_v60  }
 0x6df   :  { %4348 = vset.pattern.permute.xlu0 %v4394_v9 }
 0x6e1   :  { %4235 = vperm.xlu2 %4346, %v4113_v38  }
 0x71b   :  { %v4119_v47 = vpop.permute.xlu2 %4118 }
 0x71c   :  { %v4136_v37 = vadd.f32 %v4119_v47, %v4064_v21  ;;  %v4137_v4 = vadd.f32 %v4119_v47, %v4096_v54 }
 0x71e   :  { %v4144_v23 = vmax.f32 %v4136_v37, 0.0  ;;  %v4145_v8 = vmax.f32 %v4137_v4, 0.0 }
 0x720   :  { %4152 = vst [vmem:[#allocation4] sm:$0xff] %v4144_v23 }
 0x721   :  { %4153 = vst [vmem:[#allocation4 + $0x8] sm:$0xff] %v4145_v8 }
 0x723   :  { %v4124_v2 = vpop.permute.xlu2 %4123 }
 0x724   :  { %v4138_v15 = vadd.f32 %v4124_v2, %v4065_v45  ;;  %v4139_v1 = vadd.f32 %v4124_v2, %v4097_v14 }
 0x726   :  { %v4146_v12 = vmax.f32 %v4138_v15, 0.0  ;;  %v4147_v42 = vmax.f32 %v4139_v1, 0.0 }
 0x728   :  { %4154 = vst [vmem:[#allocation4 + $0x10] sm:$0xff] %v4146_v12 }
 0x729   :  { %4155 = vst [vmem:[#allocation4 + $0x18] sm:$0xff] %v4147_v42 }
 0x72b   :  { %v4129_v49 = vpop.permute.xlu2 %4128 }
 0x72c   :  { %v4140_v25 = vadd.f32 %v4129_v49, %v4066_v17  ;;  %v4141_v24 = vadd.f32 %v4129_v49, %v4098_v35 }
 0x72e   :  { %v4148_v11 = vmax.f32 %v4140_v25, 0.0  ;;  %v4149_v27 = vmax.f32 %v4141_v24, 0.0 }
 0x730   :  { %4156 = vst [vmem:[#allocation4 + $0x20] sm:$0xff] %v4148_v11 }
 0x731   :  { %4157 = vst [vmem:[#allocation4 + $0x28] sm:$0xff] %v4149_v27 }
 0x733   :  { %v4134_v9 = vpop.permute.xlu2 %4133 }
 0x734   :  { %v4142_v22 = vadd.f32 %v4134_v9, %v4067_v28  ;;  %v4143_v26 = vadd.f32 %v4134_v9, %v4099_v31 }
 0x736   :  { %v4150_v0 = vmax.f32 %v4142_v22, 0.0  ;;  %v4151_v56 = vmax.f32 %v4143_v26, 0.0 }
 0x738   :  { %4158 = vst [vmem:[#allocation4 + $0x30] sm:$0xff] %v4150_v0 }
 0x739   :  { %4159 = vst [vmem:[#allocation4 + $0x38] sm:$0xff] %v4151_v56 }
 0x73b   :  { %v4236_v59 = vpop.permute.xlu2 %4235 }
 0x73c   :  { %v4250_v46 = vadd.f32 %v4236_v59, %v7196_v34  ;;  %v4251_v55 = vadd.f32 %v4236_v59, %v4209_v7 }
 0x73e   :  { %v4258_v50 = vmax.f32 %v4250_v46, 0.0  ;;  %v4259_v6 = vmax.f32 %v4251_v55, 0.0 }
 0x740   :  { %4267 = vst [vmem:[#allocation4 + $0x50] sm:$0xff] %v4258_v50 }
 0x741   :  { %4268 = vst [vmem:[#allocation4 + $0x58] sm:$0xff] %v4259_v6 }
 0x742   :  { %4285 = dma.vmem_to_hbm [thread:$0]  %s4278_s20, 2048, %s4280_s24, [#allocation5], %s4396_s25, %s4396_s25, %s4397_s26  }
 0x743   :  { %4389 = dma.done.wait [#allocation5], 2048  }
 0x744   :  { %4390 = vsyncadd [#allocation5], 4294965248 }
 0x745   :  { %4290 = vsyncpa [#allocation5], 1 }

</bundles_post_ra>
